<compile_context>
chip_gen: v7x
topology: tpu7x:2x2x1
jax: 0.10.0
libtpu: 0.0.40
codegen_flags: <defaults>
</compile_context>

<pallas_src>
import functools

import jax
import jax.numpy as jnp
from jax.experimental import pallas as pl
from jax.experimental.pallas import tpu as pltpu


# Packed (kernel-layout) parameter order.
PARAM_NAMES = (
    "in_w_en", "in_w_r", "in_w_i", "in_b",   # HighOrderBlock.in_conv split per source
    "tcm_in_w",                              # (M, d_feat, nb*cd1), nb = 2 if gated
    "lr_alpha", "lr_gamma", "lr_beta",       # (M, 1, nb*cd1)  left|right stacked
    "lr_w",                                  # (M, kd1*nb*cd1, nb*cd1) im2col block-diag
    "o_alpha",                               # (M, 1, cd1)
    "o_w", "o_b",                            # (M, cd1, d_feat), (M, 1, d_feat) norm folded
    "rr_w", "ri_w", "out_b",                 # (d_feat, 2F) zero-padded halves, (1, 2F)
)


# ----------------------------------------------------------------------------- kernel --


def _high_order_kernel(en_ref, pre_ref, *refs, cfg):
    kd1, dilations, group_num, is_gate, is_squeezed, is_causal, cd1 = cfg
    out_ref = refs[-1]
    # Keep weights as Refs; per-module static indexing keeps live ranges short.
    w = dict(zip(PARAM_NAMES, refs[:-1]))

    n_dil = len(dilations)
    n_mod = group_num * n_dil
    T = out_ref.shape[1]

    # ---- in_conv, split into three matmuls (no pre-concatenated HBM input) ----
    en_t = en_ref[0]                               # (T, d_feat)
    pre_r = pre_ref[0, 0]                          # (T, F)
    pre_i = pre_ref[0, 1]                          # (T, F)
    x0 = (jnp.dot(en_t, w["in_w_en"][...], preferred_element_type=jnp.float32)
          + jnp.dot(pre_r, w["in_w_r"][...], preferred_element_type=jnp.float32)
          + jnp.dot(pre_i, w["in_w_i"][...], preferred_element_type=jnp.float32)
          + w["in_b"][...])

    t_idx = jax.lax.broadcasted_iota(jnp.int32, (T, 1), 0)

    def shifted(y, s):
        # y[t - s] with zeros where t - s is out of range (constant-pad semantics),
        # via XLU roll + VPU mask (no pad/concat/misaligned slices).
        if s == 0:
            return y
        if abs(s) >= T:
            return jnp.zeros_like(y)
        r = pltpu.roll(y, shift=s % T, axis=0)
        if s > 0:
            return jnp.where(t_idx >= s, r, 0.0)
        return jnp.where(t_idx < T + s, r, 0.0)

    def tcm(x, m):
        dilation = dilations[m % n_dil]
        # 1x1 in_conv; columns are duplicated host-side so left|right share one matmul.
        h = jnp.dot(x, w["tcm_in_w"][m], preferred_element_type=jnp.float32)
        # PReLU + eval-mode per-channel affine norm, both branches in one (T, 2*cd1) tile.
        y = jnp.where(h >= 0, h, w["lr_alpha"][m] * h)
        y = y * w["lr_gamma"][m] + w["lr_beta"][m]
        # Dilated conv: im2col along lanes + ONE block-diagonal fused matmul.
        if is_causal:
            shifts = [(kd1 - 1 - k) * dilation for k in range(kd1)]
        else:
            pad_l = (kd1 - 1) * dilation // 2
            shifts = [pad_l - k * dilation for k in range(kd1)]
        ycat = jnp.concatenate([shifted(y, s) for s in shifts], axis=-1)
        hc = jnp.dot(ycat, w["lr_w"][m], preferred_element_type=jnp.float32)
        if is_gate:
            h2 = hc[:, :cd1] * jax.nn.sigmoid(hc[:, cd1:])
        else:
            h2 = hc
        # out conv: PReLU then 1x1 conv with gamma/beta folded host-side into (o_w, o_b).
        y2 = jnp.where(h2 >= 0, h2, w["o_alpha"][m] * h2)
        y2 = jnp.dot(y2, w["o_w"][m], preferred_element_type=jnp.float32) + w["o_b"][m]
        return y2 + x

    if is_squeezed:
        xx = x0
        for m in range(n_mod):
            xx = tcm(xx, m)
        x_r = x_i = xx
    else:
        x_r = x0
        for m in range(n_mod):
            x_r = tcm(x_r, m)                 # real stack: modules [0, n_mod)
        x_i = x0
        for m in range(n_mod):
            x_i = tcm(x_i, n_mod + m)         # imag stack: modules [n_mod, 2*n_mod)

    # real_resi / imag_resi fused into one lane-dense (T, 2F) store; rr_w / ri_w are
    # zero-padded to the full 2F output columns so no in-kernel concat is needed.
    out = (jnp.dot(x_r, w["rr_w"][...], preferred_element_type=jnp.float32)
           + jnp.dot(x_i, w["ri_w"][...], preferred_element_type=jnp.float32)
           + w["out_b"][...])
    out_ref[0] = out.astype(out_ref.dtype)


# ---------------------------------------------------------------------------- wrapper --


def high_order_block(en_x, pre_x, packed, *, kd1, cd1, dilations, group_num,
                     is_gate, is_squeezed, is_causal):
    """Pallas implementation of HighOrderBlock.forward.  Returns (B, 2, T, F)."""
    B, d_feat, T = en_x.shape
    Bp, two, Tp, F = pre_x.shape
    assert Bp == B and two == 2 and Tp == T

    # TODO(synk): have the upstream producer emit en_x already as (B, T, C) so even this
    # small transpose disappears; pre_x is consumed directly (no concatenated HBM copy).
    en_t = jnp.transpose(en_x, (0, 2, 1))          # (B, T, d_feat)

    cfg = (kd1, tuple(dilations), group_num, bool(is_gate), bool(is_squeezed),
           bool(is_causal), cd1)
    kernel = functools.partial(_high_order_kernel, cfg=cfg)
    weights = [packed[name] for name in PARAM_NAMES]

    in_specs = [
        pl.BlockSpec((1, T, d_feat), lambda b: (b, 0, 0)),
        pl.BlockSpec((1, 2, T, F), lambda b: (b, 0, 0, 0)),
    ]
    for arr in weights:
        in_specs.append(pl.BlockSpec(arr.shape, lambda b, _nd=arr.ndim: (0,) * _nd))
    out_spec = pl.BlockSpec((1, T, 2 * F), lambda b: (b, 0, 0))

    out = pl.pallas_call(
        kernel,
        out_shape=jax.ShapeDtypeStruct((B, T, 2 * F), en_x.dtype),
        grid_spec=pltpu.PrefetchScalarGridSpec(
            num_scalar_prefetch=0,
            grid=(B,),                       # batch axis; splits across TCs on v7x
            in_specs=in_specs,
            out_specs=out_spec,
        ),
        compiler_params=pltpu.CompilerParams(
            dimension_semantics=("parallel",),
            vmem_limit_bytes=64 * 1024 * 1024,
        ),
    )(en_t, pre_x, *weights)

    # Lane-dense kernel layout (T, [real F | imag F]) -> module contract (B, 2, T, F).
    return jnp.transpose(out.reshape(B, T, 2, F), (0, 2, 1, 3))


# ------------------------------------------------------------- weights: raw & packing --


def init_raw_params(key, *, d_feat, cd1, kd1, in_feat, freq, n_modules):
    """Deterministic random weights in a straightforward (in, out) matmul layout."""
    ks = jax.random.split(key, 20)

    def w(k, shape, fan_in):
        return jax.random.normal(k, shape, jnp.float32) / jnp.sqrt(float(fan_in))

    p = {}
    p["in_w"] = w(ks[0], (in_feat, d_feat), in_feat)
    p["in_b"] = 0.01 * jax.random.normal(ks[1], (d_feat,), jnp.float32)
    p["tcm_in_w"] = w(ks[2], (n_modules, d_feat, cd1), d_feat)
    i = 3
    for pre in ("l", "r"):
        p[pre + "_alpha"] = 0.25 + 0.01 * jax.random.normal(ks[i], (n_modules, cd1), jnp.float32); i += 1
        p[pre + "_gamma"] = 1.0 + 0.05 * jax.random.normal(ks[i], (n_modules, cd1), jnp.float32); i += 1
        p[pre + "_beta"] = 0.05 * jax.random.normal(ks[i], (n_modules, cd1), jnp.float32); i += 1
        # tap k of the PyTorch Conv1d weight W[:, :, k], transposed to (in, out)
        p[pre + "_w"] = w(ks[i], (n_modules, kd1, cd1, cd1), cd1 * kd1); i += 1
    p["o_alpha"] = 0.25 + 0.01 * jax.random.normal(ks[i], (n_modules, cd1), jnp.float32); i += 1
    p["o_gamma"] = 1.0 + 0.05 * jax.random.normal(ks[i], (n_modules, cd1), jnp.float32); i += 1
    p["o_beta"] = 0.05 * jax.random.normal(ks[i], (n_modules, cd1), jnp.float32); i += 1
    p["o_w"] = w(ks[i], (n_modules, cd1, d_feat), cd1); i += 1
    p["rr_w"] = w(ks[i], (d_feat, freq), d_feat); i += 1
    p["rr_b"] = 0.01 * jax.random.normal(ks[i], (freq,), jnp.float32); i += 1
    p["ri_w"] = w(ks[i], (d_feat, freq), d_feat); i += 1
    p["ri_b"] = 0.01 * jax.random.normal(ks[i], (freq,), jnp.float32); i += 1
    return p


def pack_params(raw, *, kd1, cd1, d_feat, freq, is_gate):
    """Host-side fusion/folding of raw weights into the kernel layout."""
    nb = 2 if is_gate else 1
    M = raw["tcm_in_w"].shape[0]
    p = {}
    p["in_w_en"] = raw["in_w"][:d_feat]
    p["in_w_r"] = raw["in_w"][d_feat:d_feat + freq]
    p["in_w_i"] = raw["in_w"][d_feat + freq:]
    p["in_b"] = raw["in_b"].reshape(1, d_feat)

    if is_gate:
        # Duplicate in_conv columns so one matmul feeds both branches.
        p["tcm_in_w"] = jnp.concatenate([raw["tcm_in_w"], raw["tcm_in_w"]], axis=-1)
        p["lr_alpha"] = jnp.concatenate([raw["l_alpha"], raw["r_alpha"]], -1).reshape(M, 1, nb * cd1)
        p["lr_gamma"] = jnp.concatenate([raw["l_gamma"], raw["r_gamma"]], -1).reshape(M, 1, nb * cd1)
        p["lr_beta"] = jnp.concatenate([raw["l_beta"], raw["r_beta"]], -1).reshape(M, 1, nb * cd1)
        # Block-diagonal im2col weight: rows = kd1 tap blocks of (left | right) inputs.
        wblk = jnp.zeros((M, kd1, nb * cd1, nb * cd1), jnp.float32)
        wblk = wblk.at[:, :, :cd1, :cd1].set(raw["l_w"])
        wblk = wblk.at[:, :, cd1:, cd1:].set(raw["r_w"])
        p["lr_w"] = wblk.reshape(M, kd1 * nb * cd1, nb * cd1)
    else:
        p["tcm_in_w"] = raw["tcm_in_w"]
        p["lr_alpha"] = raw["l_alpha"].reshape(M, 1, cd1)
        p["lr_gamma"] = raw["l_gamma"].reshape(M, 1, cd1)
        p["lr_beta"] = raw["l_beta"].reshape(M, 1, cd1)
        p["lr_w"] = raw["l_w"].reshape(M, kd1 * cd1, cd1)

    p["o_alpha"] = raw["o_alpha"].reshape(M, 1, cd1)
    # Fold the out-branch affine norm (no padding after it, so this is exact):
    #   (g*p + b) @ W  ==  p @ (diag(g) @ W) + b @ W
    p["o_w"] = raw["o_gamma"][:, :, None] * raw["o_w"]
    p["o_b"] = jnp.einsum("mc,mcd->md", raw["o_beta"], raw["o_w"]).reshape(M, 1, d_feat)

    zf = jnp.zeros((d_feat, freq), jnp.float32)
    p["rr_w"] = jnp.concatenate([raw["rr_w"], zf], axis=-1)      # writes cols [0, F)
    p["ri_w"] = jnp.concatenate([zf, raw["ri_w"]], axis=-1)      # writes cols [F, 2F)
    p["out_b"] = jnp.concatenate([raw["rr_b"], raw["ri_b"]], -1).reshape(1, 2 * freq)
    return p


# -------------------------------------------------------------------- pure-JAX reference


def _reference_forward(en_x, pre_x, raw, cfg):
    """Direct translation of the PyTorch forward (pad-based conv, unfused weights)."""
    kd1, dilations, group_num, is_gate, is_squeezed, is_causal = cfg
    B, _, T, F = pre_x.shape
    n_dil = len(dilations)
    n_mod = group_num * n_dil

    x1 = jnp.transpose(pre_x, (0, 2, 1, 3)).reshape(B, T, 2 * F)
    en_t = jnp.transpose(en_x, (0, 2, 1))
    x = jnp.concatenate([en_t, x1], axis=-1) @ raw["in_w"] + raw["in_b"]

    def dilated_conv(y, w_taps, dilation):
        if is_causal:
            pad_l, pad_r = (kd1 - 1) * dilation, 0
        else:
            pad_l = (kd1 - 1) * dilation // 2
            pad_r = (kd1 - 1) * dilation - pad_l
        yp = jnp.pad(y, ((0, 0), (pad_l, pad_r), (0, 0)))
        out = 0.0
        for k in range(kd1):
            out = out + yp[:, k * dilation: k * dilation + T] @ w_taps[k]
        return out

    def tcm(x, m):
        resi = x
        dil = dilations[m % n_dil]
        h = x @ raw["tcm_in_w"][m]

        def branch(pre):
            a, g, b = raw[pre + "_alpha"][m], raw[pre + "_gamma"][m], raw[pre + "_beta"][m]
            y = jnp.where(h >= 0, h, a * h) * g + b
            return dilated_conv(y, raw[pre + "_w"][m], dil)

        h2 = branch("l")
        if is_gate:
            h2 = h2 * jax.nn.sigmoid(branch("r"))
        a, g, b = raw["o_alpha"][m], raw["o_gamma"][m], raw["o_beta"][m]
        y = jnp.where(h2 >= 0, h2, a * h2) * g + b
        return y @ raw["o_w"][m] + resi

    if is_squeezed:
        for m in range(n_mod):
            x = tcm(x, m)
        x_r = x_i = x
    else:
        x_r, x_i = x, x
        for m in range(n_mod):
            x_r = tcm(x_r, m)
        for m in range(n_mod):
            x_i = tcm(x_i, n_mod + m)

    out_r = x_r @ raw["rr_w"] + raw["rr_b"]
    out_i = x_i @ raw["ri_w"] + raw["ri_b"]
    return jnp.stack([out_r, out_i], axis=1)


# ----------------------------------------------------------------------------- driver --


if __name__ == "__main__":
    key = jax.random.PRNGKey(0)

    # Small shapes consistent with the module.
    B, d_feat, T = 2, 32, 16
    fft_num = 30
    F = fft_num // 2 + 1                  # 16
    kd1, cd1 = 3, 16
    dilations = (1, 2)
    group_num = 2
    is_gate, is_causal, is_squeezed = True, True, False

    n_modules = group_num * len(dilations) * (1 if is_squeezed else 2)
    in_feat = 2 * F + d_feat              # (fft_num//2+1)*2 + d_feat

    k_en, k_pre, k_par = jax.random.split(key, 3)
    en_x = jax.random.normal(k_en, (B, d_feat, T), jnp.float32)
    pre_x = jax.random.normal(k_pre, (B, 2, T, F), jnp.float32)

    raw = init_raw_params(k_par, d_feat=d_feat, cd1=cd1, kd1=kd1,
                          in_feat=in_feat, freq=F, n_modules=n_modules)
    packed = pack_params(raw, kd1=kd1, cd1=cd1, d_feat=d_feat, freq=F, is_gate=is_gate)

    out = high_order_block(en_x, pre_x, packed, kd1=kd1, cd1=cd1, dilations=dilations,
                           group_num=group_num, is_gate=is_gate,
                           is_squeezed=is_squeezed, is_causal=is_causal)
    out = jax.block_until_ready(out)
    assert out.shape == (B, 2, T, F), out.shape

    cfg = (kd1, tuple(dilations), group_num, is_gate, is_squeezed, is_causal)
    ref = jax.block_until_ready(_reference_forward(en_x, pre_x, raw, cfg))
    max_err = float(jnp.max(jnp.abs(out - ref)))
    assert jnp.allclose(out, ref, atol=2e-2, rtol=2e-2), f"mismatch, max abs err {max_err}"

    print("KERNEL_OK")
</pallas_src>

<mosaic_0001>
module attributes {stable_mosaic.version = 11 : i64} {
  func.func @_high_order_kernel(%arg0: i32, %arg1: memref<1x16x32xf32, #tpu.memory_space<vmem>>, %arg2: memref<1x2x16x16xf32, #tpu.memory_space<vmem>>, %arg3: memref<32x32xf32, #tpu.memory_space<vmem>>, %arg4: memref<16x32xf32, #tpu.memory_space<vmem>>, %arg5: memref<16x32xf32, #tpu.memory_space<vmem>>, %arg6: memref<1x32xf32, #tpu.memory_space<vmem>>, %arg7: memref<8x32x32xf32, #tpu.memory_space<vmem>>, %arg8: memref<8x1x32xf32, #tpu.memory_space<vmem>>, %arg9: memref<8x1x32xf32, #tpu.memory_space<vmem>>, %arg10: memref<8x1x32xf32, #tpu.memory_space<vmem>>, %arg11: memref<8x96x32xf32, #tpu.memory_space<vmem>>, %arg12: memref<8x1x16xf32, #tpu.memory_space<vmem>>, %arg13: memref<8x16x32xf32, #tpu.memory_space<vmem>>, %arg14: memref<8x1x32xf32, #tpu.memory_space<vmem>>, %arg15: memref<32x32xf32, #tpu.memory_space<vmem>>, %arg16: memref<32x32xf32, #tpu.memory_space<vmem>>, %arg17: memref<1x32xf32, #tpu.memory_space<vmem>>, %arg18: memref<1x16x32xf32, #tpu.memory_space<vmem>>) attributes {dimension_semantics = [#tpu.dimension_semantics<parallel>], iteration_bounds = array<i64: 2>, scalar_prefetch = 0 : i64, scratch_operands = 0 : i64, tpu.core_type = #tpu.core_type<tc>, window_params = [{transform_indices = @transform_0, window_bounds = array<i64: 1, 16, 32>}, {transform_indices = @transform_1, window_bounds = array<i64: 1, 2, 16, 16>}, {pipeline_mode = #tpu.pipeline_mode<synchronous>, transform_indices = @transform_2, window_bounds = array<i64: 32, 32>}, {pipeline_mode = #tpu.pipeline_mode<synchronous>, transform_indices = @transform_3, window_bounds = array<i64: 16, 32>}, {pipeline_mode = #tpu.pipeline_mode<synchronous>, transform_indices = @transform_4, window_bounds = array<i64: 16, 32>}, {pipeline_mode = #tpu.pipeline_mode<synchronous>, transform_indices = @transform_5, window_bounds = array<i64: 1, 32>}, {pipeline_mode = #tpu.pipeline_mode<synchronous>, transform_indices = @transform_6, window_bounds = array<i64: 8, 32, 32>}, {pipeline_mode = #tpu.pipeline_mode<synchronous>, transform_indices = @transform_7, window_bounds = array<i64: 8, 1, 32>}, {pipeline_mode = #tpu.pipeline_mode<synchronous>, transform_indices = @transform_8, window_bounds = array<i64: 8, 1, 32>}, {pipeline_mode = #tpu.pipeline_mode<synchronous>, transform_indices = @transform_9, window_bounds = array<i64: 8, 1, 32>}, {pipeline_mode = #tpu.pipeline_mode<synchronous>, transform_indices = @transform_10, window_bounds = array<i64: 8, 96, 32>}, {pipeline_mode = #tpu.pipeline_mode<synchronous>, transform_indices = @transform_11, window_bounds = array<i64: 8, 1, 16>}, {pipeline_mode = #tpu.pipeline_mode<synchronous>, transform_indices = @transform_12, window_bounds = array<i64: 8, 16, 32>}, {pipeline_mode = #tpu.pipeline_mode<synchronous>, transform_indices = @transform_13, window_bounds = array<i64: 8, 1, 32>}, {pipeline_mode = #tpu.pipeline_mode<synchronous>, transform_indices = @transform_14, window_bounds = array<i64: 32, 32>}, {pipeline_mode = #tpu.pipeline_mode<synchronous>, transform_indices = @transform_15, window_bounds = array<i64: 32, 32>}, {pipeline_mode = #tpu.pipeline_mode<synchronous>, transform_indices = @transform_16, window_bounds = array<i64: 1, 32>}, {transform_indices = @transform_17, window_bounds = array<i64: 1, 16, 32>}]} {
    %c0 = arith.constant 0 : index
    %c0_0 = arith.constant 0 : index
    %c0_1 = arith.constant 0 : index
    %0 = vector.load %arg1[%c0, %c0_0, %c0_1] : memref<1x16x32xf32, #tpu.memory_space<vmem>>, vector<1x16x32xf32>
    %1 = vector.shape_cast %0 : vector<1x16x32xf32> to vector<16x32xf32>
    %c0_2 = arith.constant 0 : index
    %c0_3 = arith.constant 0 : index
    %c0_4 = arith.constant 0 : index
    %c0_5 = arith.constant 0 : index
    %2 = vector.load %arg2[%c0_2, %c0_3, %c0_4, %c0_5] : memref<1x2x16x16xf32, #tpu.memory_space<vmem>>, vector<1x1x16x16xf32>
    %3 = vector.shape_cast %2 : vector<1x1x16x16xf32> to vector<16x16xf32>
    %c0_6 = arith.constant 0 : index
    %c1 = arith.constant 1 : index
    %c0_7 = arith.constant 0 : index
    %c0_8 = arith.constant 0 : index
    %4 = vector.load %arg2[%c0_6, %c1, %c0_7, %c0_8] : memref<1x2x16x16xf32, #tpu.memory_space<vmem>>, vector<1x1x16x16xf32>
    %5 = vector.shape_cast %4 : vector<1x1x16x16xf32> to vector<16x16xf32>
    %c0_9 = arith.constant 0 : index
    %c0_10 = arith.constant 0 : index
    %6 = vector.load %arg3[%c0_9, %c0_10] : memref<32x32xf32, #tpu.memory_space<vmem>>, vector<32x32xf32>
    %cst = arith.constant dense<0.000000e+00> : vector<16x32xf32>
    %7 = tpu.matmul %1, %6, %cst {dimension_numbers = #tpu.dot_dimension_numbers<[1], [0], [0], [1], [0, 0, 1, 1], [], []>} : vector<16x32xf32>, vector<32x32xf32>, vector<16x32xf32> -> vector<16x32xf32>
    %c0_11 = arith.constant 0 : index
    %c0_12 = arith.constant 0 : index
    %8 = vector.load %arg4[%c0_11, %c0_12] : memref<16x32xf32, #tpu.memory_space<vmem>>, vector<16x32xf32>
    %cst_13 = arith.constant dense<0.000000e+00> : vector<16x32xf32>
    %9 = tpu.matmul %3, %8, %cst_13 {dimension_numbers = #tpu.dot_dimension_numbers<[1], [0], [0], [1], [0, 0, 1, 1], [], []>} : vector<16x16xf32>, vector<16x32xf32>, vector<16x32xf32> -> vector<16x32xf32>
    %10 = arith.addf %7, %9 : vector<16x32xf32>
    %c0_14 = arith.constant 0 : index
    %c0_15 = arith.constant 0 : index
    %11 = vector.load %arg5[%c0_14, %c0_15] : memref<16x32xf32, #tpu.memory_space<vmem>>, vector<16x32xf32>
    %cst_16 = arith.constant dense<0.000000e+00> : vector<16x32xf32>
    %12 = tpu.matmul %5, %11, %cst_16 {dimension_numbers = #tpu.dot_dimension_numbers<[1], [0], [0], [1], [0, 0, 1, 1], [], []>} : vector<16x16xf32>, vector<16x32xf32>, vector<16x32xf32> -> vector<16x32xf32>
    %13 = arith.addf %10, %12 : vector<16x32xf32>
    %c0_17 = arith.constant 0 : index
    %c0_18 = arith.constant 0 : index
    %14 = vector.load %arg6[%c0_17, %c0_18] : memref<1x32xf32, #tpu.memory_space<vmem>>, vector<1x32xf32>
    %15 = vector.broadcast %14 : vector<1x32xf32> to vector<16x32xf32>
    %16 = arith.addf %13, %15 : vector<16x32xf32>
    %17 = tpu.iota {dimensions = array<i32: 0>} : vector<16x1xi32>
    %c0_19 = arith.constant 0 : index
    %c0_20 = arith.constant 0 : index
    %c0_21 = arith.constant 0 : index
    %18 = vector.load %arg7[%c0_19, %c0_20, %c0_21] : memref<8x32x32xf32, #tpu.memory_space<vmem>>, vector<1x32x32xf32>
    %19 = vector.shape_cast %18 : vector<1x32x32xf32> to vector<32x32xf32>
    %cst_22 = arith.constant dense<0.000000e+00> : vector<16x32xf32>
    %20 = tpu.matmul %16, %19, %cst_22 {dimension_numbers = #tpu.dot_dimension_numbers<[1], [0], [0], [1], [0, 0, 1, 1], [], []>} : vector<16x32xf32>, vector<32x32xf32>, vector<16x32xf32> -> vector<16x32xf32>
    %cst_23 = arith.constant 0.000000e+00 : f32
    %21 = vector.broadcast %cst_23 : f32 to vector<16x32xf32>
    %22 = arith.cmpf oge, %20, %21 : vector<16x32xf32>
    %c0_24 = arith.constant 0 : index
    %c0_25 = arith.constant 0 : index
    %c0_26 = arith.constant 0 : index
    %23 = vector.load %arg8[%c0_24, %c0_25, %c0_26] : memref<8x1x32xf32, #tpu.memory_space<vmem>>, vector<1x1x32xf32>
    %24 = vector.shape_cast %23 : vector<1x1x32xf32> to vector<1x32xf32>
    %25 = vector.broadcast %24 : vector<1x32xf32> to vector<16x32xf32>
    %26 = arith.mulf %25, %20 : vector<16x32xf32>
    %27 = arith.select %22, %20, %26 : vector<16x32xi1>, vector<16x32xf32>
    %c0_27 = arith.constant 0 : index
    %c0_28 = arith.constant 0 : index
    %c0_29 = arith.constant 0 : index
    %28 = vector.load %arg9[%c0_27, %c0_28, %c0_29] : memref<8x1x32xf32, #tpu.memory_space<vmem>>, vector<1x1x32xf32>
    %29 = vector.shape_cast %28 : vector<1x1x32xf32> to vector<1x32xf32>
    %30 = vector.broadcast %29 : vector<1x32xf32> to vector<16x32xf32>
    %31 = arith.mulf %27, %30 : vector<16x32xf32>
    %c0_30 = arith.constant 0 : index
    %c0_31 = arith.constant 0 : index
    %c0_32 = arith.constant 0 : index
    %32 = vector.load %arg10[%c0_30, %c0_31, %c0_32] : memref<8x1x32xf32, #tpu.memory_space<vmem>>, vector<1x1x32xf32>
    %33 = vector.shape_cast %32 : vector<1x1x32xf32> to vector<1x32xf32>
    %34 = vector.broadcast %33 : vector<1x32xf32> to vector<16x32xf32>
    %35 = arith.addf %31, %34 : vector<16x32xf32>
    %c2_i32 = arith.constant 2 : i32
    %36 = tpu.dynamic_rotate %35 by %c2_i32 dim 0 : vector<16x32xf32>, i32 -> vector<16x32xf32>
    %c2_i32_33 = arith.constant 2 : i32
    %37 = vector.broadcast %c2_i32_33 : i32 to vector<16x1xi32>
    %38 = arith.cmpi sge, %17, %37 : vector<16x1xi32>
    %cst_34 = arith.constant 0.000000e+00 : f32
    %39 = vector.shape_cast %38 : vector<16x1xi1> to vector<16x1xi1>
    %40 = vector.broadcast %39 : vector<16x1xi1> to vector<16x32xi1>
    %41 = vector.broadcast %cst_34 : f32 to vector<16x32xf32>
    %42 = arith.select %40, %36, %41 : vector<16x32xi1>, vector<16x32xf32>
    %c1_i32 = arith.constant 1 : i32
    %43 = tpu.dynamic_rotate %35 by %c1_i32 dim 0 : vector<16x32xf32>, i32 -> vector<16x32xf32>
    %c1_i32_35 = arith.constant 1 : i32
    %44 = vector.broadcast %c1_i32_35 : i32 to vector<16x1xi32>
    %45 = arith.cmpi sge, %17, %44 : vector<16x1xi32>
    %cst_36 = arith.constant 0.000000e+00 : f32
    %46 = vector.shape_cast %45 : vector<16x1xi1> to vector<16x1xi1>
    %47 = vector.broadcast %46 : vector<16x1xi1> to vector<16x32xi1>
    %48 = vector.broadcast %cst_36 : f32 to vector<16x32xf32>
    %49 = arith.select %47, %43, %48 : vector<16x32xi1>, vector<16x32xf32>
    %50 = tpu.concatenate %42, %49, %35 in 1 : vector<16x32xf32>, vector<16x32xf32>, vector<16x32xf32> -> vector<16x96xf32>
    %c0_37 = arith.constant 0 : index
    %c0_38 = arith.constant 0 : index
    %c0_39 = arith.constant 0 : index
    %51 = vector.load %arg11[%c0_37, %c0_38, %c0_39] : memref<8x96x32xf32, #tpu.memory_space<vmem>>, vector<1x96x32xf32>
    %52 = vector.shape_cast %51 : vector<1x96x32xf32> to vector<96x32xf32>
    %cst_40 = arith.constant dense<0.000000e+00> : vector<16x32xf32>
    %53 = tpu.matmul %50, %52, %cst_40 {dimension_numbers = #tpu.dot_dimension_numbers<[1], [0], [0], [1], [0, 0, 1, 1], [], []>} : vector<16x96xf32>, vector<96x32xf32>, vector<16x32xf32> -> vector<16x32xf32>
    %54 = vector.extract_strided_slice %53 {offsets = [0, 0], sizes = [16, 16], strides = [1, 1]} : vector<16x32xf32> to vector<16x16xf32>
    %55 = vector.extract_strided_slice %53 {offsets = [0, 16], sizes = [16, 16], strides = [1, 1]} : vector<16x32xf32> to vector<16x16xf32>
    %56 = arith.negf %55 : vector<16x16xf32>
    %57 = math.exp %56 : vector<16x16xf32>
    %cst_41 = arith.constant 1.000000e+00 : f32
    %58 = vector.broadcast %cst_41 : f32 to vector<16x16xf32>
    %59 = arith.addf %58, %57 : vector<16x16xf32>
    %60 = arith.divf %58, %59 : vector<16x16xf32>
    %61 = arith.mulf %54, %60 : vector<16x16xf32>
    %cst_42 = arith.constant 0.000000e+00 : f32
    %62 = vector.broadcast %cst_42 : f32 to vector<16x16xf32>
    %63 = arith.cmpf oge, %61, %62 : vector<16x16xf32>
    %c0_43 = arith.constant 0 : index
    %c0_44 = arith.constant 0 : index
    %c0_45 = arith.constant 0 : index
    %64 = vector.load %arg12[%c0_43, %c0_44, %c0_45] : memref<8x1x16xf32, #tpu.memory_space<vmem>>, vector<1x1x16xf32>
    %65 = vector.shape_cast %64 : vector<1x1x16xf32> to vector<1x16xf32>
    %66 = vector.broadcast %65 : vector<1x16xf32> to vector<16x16xf32>
    %67 = arith.mulf %66, %61 : vector<16x16xf32>
    %68 = arith.select %63, %61, %67 : vector<16x16xi1>, vector<16x16xf32>
    %c0_46 = arith.constant 0 : index
    %c0_47 = arith.constant 0 : index
    %c0_48 = arith.constant 0 : index
    %69 = vector.load %arg13[%c0_46, %c0_47, %c0_48] : memref<8x16x32xf32, #tpu.memory_space<vmem>>, vector<1x16x32xf32>
    %70 = vector.shape_cast %69 : vector<1x16x32xf32> to vector<16x32xf32>
    %cst_49 = arith.constant dense<0.000000e+00> : vector<16x32xf32>
    %71 = tpu.matmul %68, %70, %cst_49 {dimension_numbers = #tpu.dot_dimension_numbers<[1], [0], [0], [1], [0, 0, 1, 1], [], []>} : vector<16x16xf32>, vector<16x32xf32>, vector<16x32xf32> -> vector<16x32xf32>
    %c0_50 = arith.constant 0 : index
    %c0_51 = arith.constant 0 : index
    %c0_52 = arith.constant 0 : index
    %72 = vector.load %arg14[%c0_50, %c0_51, %c0_52] : memref<8x1x32xf32, #tpu.memory_space<vmem>>, vector<1x1x32xf32>
    %73 = vector.shape_cast %72 : vector<1x1x32xf32> to vector<1x32xf32>
    %74 = vector.broadcast %73 : vector<1x32xf32> to vector<16x32xf32>
    %75 = arith.addf %71, %74 : vector<16x32xf32>
    %76 = arith.addf %75, %16 : vector<16x32xf32>
    %c1_53 = arith.constant 1 : index
    %c0_54 = arith.constant 0 : index
    %c0_55 = arith.constant 0 : index
    %77 = vector.load %arg7[%c1_53, %c0_54, %c0_55] : memref<8x32x32xf32, #tpu.memory_space<vmem>>, vector<1x32x32xf32>
    %78 = vector.shape_cast %77 : vector<1x32x32xf32> to vector<32x32xf32>
    %cst_56 = arith.constant dense<0.000000e+00> : vector<16x32xf32>
    %79 = tpu.matmul %76, %78, %cst_56 {dimension_numbers = #tpu.dot_dimension_numbers<[1], [0], [0], [1], [0, 0, 1, 1], [], []>} : vector<16x32xf32>, vector<32x32xf32>, vector<16x32xf32> -> vector<16x32xf32>
    %cst_57 = arith.constant 0.000000e+00 : f32
    %80 = vector.broadcast %cst_57 : f32 to vector<16x32xf32>
    %81 = arith.cmpf oge, %79, %80 : vector<16x32xf32>
    %c1_58 = arith.constant 1 : index
    %c0_59 = arith.constant 0 : index
    %c0_60 = arith.constant 0 : index
    %82 = vector.load %arg8[%c1_58, %c0_59, %c0_60] : memref<8x1x32xf32, #tpu.memory_space<vmem>>, vector<1x1x32xf32>
    %83 = vector.shape_cast %82 : vector<1x1x32xf32> to vector<1x32xf32>
    %84 = vector.broadcast %83 : vector<1x32xf32> to vector<16x32xf32>
    %85 = arith.mulf %84, %79 : vector<16x32xf32>
    %86 = arith.select %81, %79, %85 : vector<16x32xi1>, vector<16x32xf32>
    %c1_61 = arith.constant 1 : index
    %c0_62 = arith.constant 0 : index
    %c0_63 = arith.constant 0 : index
    %87 = vector.load %arg9[%c1_61, %c0_62, %c0_63] : memref<8x1x32xf32, #tpu.memory_space<vmem>>, vector<1x1x32xf32>
    %88 = vector.shape_cast %87 : vector<1x1x32xf32> to vector<1x32xf32>
    %89 = vector.broadcast %88 : vector<1x32xf32> to vector<16x32xf32>
    %90 = arith.mulf %86, %89 : vector<16x32xf32>
    %c1_64 = arith.constant 1 : index
    %c0_65 = arith.constant 0 : index
    %c0_66 = arith.constant 0 : index
    %91 = vector.load %arg10[%c1_64, %c0_65, %c0_66] : memref<8x1x32xf32, #tpu.memory_space<vmem>>, vector<1x1x32xf32>
    %92 = vector.shape_cast %91 : vector<1x1x32xf32> to vector<1x32xf32>
    %93 = vector.broadcast %92 : vector<1x32xf32> to vector<16x32xf32>
    %94 = arith.addf %90, %93 : vector<16x32xf32>
    %c4_i32 = arith.constant 4 : i32
    %95 = tpu.dynamic_rotate %94 by %c4_i32 dim 0 : vector<16x32xf32>, i32 -> vector<16x32xf32>
    %c4_i32_67 = arith.constant 4 : i32
    %96 = vector.broadcast %c4_i32_67 : i32 to vector<16x1xi32>
    %97 = arith.cmpi sge, %17, %96 : vector<16x1xi32>
    %cst_68 = arith.constant 0.000000e+00 : f32
    %98 = vector.shape_cast %97 : vector<16x1xi1> to vector<16x1xi1>
    %99 = vector.broadcast %98 : vector<16x1xi1> to vector<16x32xi1>
    %100 = vector.broadcast %cst_68 : f32 to vector<16x32xf32>
    %101 = arith.select %99, %95, %100 : vector<16x32xi1>, vector<16x32xf32>
    %c2_i32_69 = arith.constant 2 : i32
    %102 = tpu.dynamic_rotate %94 by %c2_i32_69 dim 0 : vector<16x32xf32>, i32 -> vector<16x32xf32>
    %c2_i32_70 = arith.constant 2 : i32
    %103 = vector.broadcast %c2_i32_70 : i32 to vector<16x1xi32>
    %104 = arith.cmpi sge, %17, %103 : vector<16x1xi32>
    %cst_71 = arith.constant 0.000000e+00 : f32
    %105 = vector.shape_cast %104 : vector<16x1xi1> to vector<16x1xi1>
    %106 = vector.broadcast %105 : vector<16x1xi1> to vector<16x32xi1>
    %107 = vector.broadcast %cst_71 : f32 to vector<16x32xf32>
    %108 = arith.select %106, %102, %107 : vector<16x32xi1>, vector<16x32xf32>
    %109 = tpu.concatenate %101, %108, %94 in 1 : vector<16x32xf32>, vector<16x32xf32>, vector<16x32xf32> -> vector<16x96xf32>
    %c1_72 = arith.constant 1 : index
    %c0_73 = arith.constant 0 : index
    %c0_74 = arith.constant 0 : index
    %110 = vector.load %arg11[%c1_72, %c0_73, %c0_74] : memref<8x96x32xf32, #tpu.memory_space<vmem>>, vector<1x96x32xf32>
    %111 = vector.shape_cast %110 : vector<1x96x32xf32> to vector<96x32xf32>
    %cst_75 = arith.constant dense<0.000000e+00> : vector<16x32xf32>
    %112 = tpu.matmul %109, %111, %cst_75 {dimension_numbers = #tpu.dot_dimension_numbers<[1], [0], [0], [1], [0, 0, 1, 1], [], []>} : vector<16x96xf32>, vector<96x32xf32>, vector<16x32xf32> -> vector<16x32xf32>
    %113 = vector.extract_strided_slice %112 {offsets = [0, 0], sizes = [16, 16], strides = [1, 1]} : vector<16x32xf32> to vector<16x16xf32>
    %114 = vector.extract_strided_slice %112 {offsets = [0, 16], sizes = [16, 16], strides = [1, 1]} : vector<16x32xf32> to vector<16x16xf32>
    %115 = arith.negf %114 : vector<16x16xf32>
    %116 = math.exp %115 : vector<16x16xf32>
    %cst_76 = arith.constant 1.000000e+00 : f32
    %117 = vector.broadcast %cst_76 : f32 to vector<16x16xf32>
    %118 = arith.addf %117, %116 : vector<16x16xf32>
    %119 = arith.divf %117, %118 : vector<16x16xf32>
    %120 = arith.mulf %113, %119 : vector<16x16xf32>
    %cst_77 = arith.constant 0.000000e+00 : f32
    %121 = vector.broadcast %cst_77 : f32 to vector<16x16xf32>
    %122 = arith.cmpf oge, %120, %121 : vector<16x16xf32>
    %c1_78 = arith.constant 1 : index
    %c0_79 = arith.constant 0 : index
    %c0_80 = arith.constant 0 : index
    %123 = vector.load %arg12[%c1_78, %c0_79, %c0_80] : memref<8x1x16xf32, #tpu.memory_space<vmem>>, vector<1x1x16xf32>
    %124 = vector.shape_cast %123 : vector<1x1x16xf32> to vector<1x16xf32>
    %125 = vector.broadcast %124 : vector<1x16xf32> to vector<16x16xf32>
    %126 = arith.mulf %125, %120 : vector<16x16xf32>
    %127 = arith.select %122, %120, %126 : vector<16x16xi1>, vector<16x16xf32>
    %c1_81 = arith.constant 1 : index
    %c0_82 = arith.constant 0 : index
    %c0_83 = arith.constant 0 : index
    %128 = vector.load %arg13[%c1_81, %c0_82, %c0_83] : memref<8x16x32xf32, #tpu.memory_space<vmem>>, vector<1x16x32xf32>
    %129 = vector.shape_cast %128 : vector<1x16x32xf32> to vector<16x32xf32>
    %cst_84 = arith.constant dense<0.000000e+00> : vector<16x32xf32>
    %130 = tpu.matmul %127, %129, %cst_84 {dimension_numbers = #tpu.dot_dimension_numbers<[1], [0], [0], [1], [0, 0, 1, 1], [], []>} : vector<16x16xf32>, vector<16x32xf32>, vector<16x32xf32> -> vector<16x32xf32>
    %c1_85 = arith.constant 1 : index
    %c0_86 = arith.constant 0 : index
    %c0_87 = arith.constant 0 : index
    %131 = vector.load %arg14[%c1_85, %c0_86, %c0_87] : memref<8x1x32xf32, #tpu.memory_space<vmem>>, vector<1x1x32xf32>
    %132 = vector.shape_cast %131 : vector<1x1x32xf32> to vector<1x32xf32>
    %133 = vector.broadcast %132 : vector<1x32xf32> to vector<16x32xf32>
    %134 = arith.addf %130, %133 : vector<16x32xf32>
    %135 = arith.addf %134, %76 : vector<16x32xf32>
    %c2 = arith.constant 2 : index
    %c0_88 = arith.constant 0 : index
    %c0_89 = arith.constant 0 : index
    %136 = vector.load %arg7[%c2, %c0_88, %c0_89] : memref<8x32x32xf32, #tpu.memory_space<vmem>>, vector<1x32x32xf32>
    %137 = vector.shape_cast %136 : vector<1x32x32xf32> to vector<32x32xf32>
    %cst_90 = arith.constant dense<0.000000e+00> : vector<16x32xf32>
    %138 = tpu.matmul %135, %137, %cst_90 {dimension_numbers = #tpu.dot_dimension_numbers<[1], [0], [0], [1], [0, 0, 1, 1], [], []>} : vector<16x32xf32>, vector<32x32xf32>, vector<16x32xf32> -> vector<16x32xf32>
    %cst_91 = arith.constant 0.000000e+00 : f32
    %139 = vector.broadcast %cst_91 : f32 to vector<16x32xf32>
    %140 = arith.cmpf oge, %138, %139 : vector<16x32xf32>
    %c2_92 = arith.constant 2 : index
    %c0_93 = arith.constant 0 : index
    %c0_94 = arith.constant 0 : index
    %141 = vector.load %arg8[%c2_92, %c0_93, %c0_94] : memref<8x1x32xf32, #tpu.memory_space<vmem>>, vector<1x1x32xf32>
    %142 = vector.shape_cast %141 : vector<1x1x32xf32> to vector<1x32xf32>
    %143 = vector.broadcast %142 : vector<1x32xf32> to vector<16x32xf32>
    %144 = arith.mulf %143, %138 : vector<16x32xf32>
    %145 = arith.select %140, %138, %144 : vector<16x32xi1>, vector<16x32xf32>
    %c2_95 = arith.constant 2 : index
    %c0_96 = arith.constant 0 : index
    %c0_97 = arith.constant 0 : index
    %146 = vector.load %arg9[%c2_95, %c0_96, %c0_97] : memref<8x1x32xf32, #tpu.memory_space<vmem>>, vector<1x1x32xf32>
    %147 = vector.shape_cast %146 : vector<1x1x32xf32> to vector<1x32xf32>
    %148 = vector.broadcast %147 : vector<1x32xf32> to vector<16x32xf32>
    %149 = arith.mulf %145, %148 : vector<16x32xf32>
    %c2_98 = arith.constant 2 : index
    %c0_99 = arith.constant 0 : index
    %c0_100 = arith.constant 0 : index
    %150 = vector.load %arg10[%c2_98, %c0_99, %c0_100] : memref<8x1x32xf32, #tpu.memory_space<vmem>>, vector<1x1x32xf32>
    %151 = vector.shape_cast %150 : vector<1x1x32xf32> to vector<1x32xf32>
    %152 = vector.broadcast %151 : vector<1x32xf32> to vector<16x32xf32>
    %153 = arith.addf %149, %152 : vector<16x32xf32>
    %c2_i32_101 = arith.constant 2 : i32
    %154 = tpu.dynamic_rotate %153 by %c2_i32_101 dim 0 : vector<16x32xf32>, i32 -> vector<16x32xf32>
    %c2_i32_102 = arith.constant 2 : i32
    %155 = vector.broadcast %c2_i32_102 : i32 to vector<16x1xi32>
    %156 = arith.cmpi sge, %17, %155 : vector<16x1xi32>
    %cst_103 = arith.constant 0.000000e+00 : f32
    %157 = vector.shape_cast %156 : vector<16x1xi1> to vector<16x1xi1>
    %158 = vector.broadcast %157 : vector<16x1xi1> to vector<16x32xi1>
    %159 = vector.broadcast %cst_103 : f32 to vector<16x32xf32>
    %160 = arith.select %158, %154, %159 : vector<16x32xi1>, vector<16x32xf32>
    %c1_i32_104 = arith.constant 1 : i32
    %161 = tpu.dynamic_rotate %153 by %c1_i32_104 dim 0 : vector<16x32xf32>, i32 -> vector<16x32xf32>
    %c1_i32_105 = arith.constant 1 : i32
    %162 = vector.broadcast %c1_i32_105 : i32 to vector<16x1xi32>
    %163 = arith.cmpi sge, %17, %162 : vector<16x1xi32>
    %cst_106 = arith.constant 0.000000e+00 : f32
    %164 = vector.shape_cast %163 : vector<16x1xi1> to vector<16x1xi1>
    %165 = vector.broadcast %164 : vector<16x1xi1> to vector<16x32xi1>
    %166 = vector.broadcast %cst_106 : f32 to vector<16x32xf32>
    %167 = arith.select %165, %161, %166 : vector<16x32xi1>, vector<16x32xf32>
    %168 = tpu.concatenate %160, %167, %153 in 1 : vector<16x32xf32>, vector<16x32xf32>, vector<16x32xf32> -> vector<16x96xf32>
    %c2_107 = arith.constant 2 : index
    %c0_108 = arith.constant 0 : index
    %c0_109 = arith.constant 0 : index
    %169 = vector.load %arg11[%c2_107, %c0_108, %c0_109] : memref<8x96x32xf32, #tpu.memory_space<vmem>>, vector<1x96x32xf32>
    %170 = vector.shape_cast %169 : vector<1x96x32xf32> to vector<96x32xf32>
    %cst_110 = arith.constant dense<0.000000e+00> : vector<16x32xf32>
    %171 = tpu.matmul %168, %170, %cst_110 {dimension_numbers = #tpu.dot_dimension_numbers<[1], [0], [0], [1], [0, 0, 1, 1], [], []>} : vector<16x96xf32>, vector<96x32xf32>, vector<16x32xf32> -> vector<16x32xf32>
    %172 = vector.extract_strided_slice %171 {offsets = [0, 0], sizes = [16, 16], strides = [1, 1]} : vector<16x32xf32> to vector<16x16xf32>
    %173 = vector.extract_strided_slice %171 {offsets = [0, 16], sizes = [16, 16], strides = [1, 1]} : vector<16x32xf32> to vector<16x16xf32>
    %174 = arith.negf %173 : vector<16x16xf32>
    %175 = math.exp %174 : vector<16x16xf32>
    %cst_111 = arith.constant 1.000000e+00 : f32
    %176 = vector.broadcast %cst_111 : f32 to vector<16x16xf32>
    %177 = arith.addf %176, %175 : vector<16x16xf32>
    %178 = arith.divf %176, %177 : vector<16x16xf32>
    %179 = arith.mulf %172, %178 : vector<16x16xf32>
    %cst_112 = arith.constant 0.000000e+00 : f32
    %180 = vector.broadcast %cst_112 : f32 to vector<16x16xf32>
    %181 = arith.cmpf oge, %179, %180 : vector<16x16xf32>
    %c2_113 = arith.constant 2 : index
    %c0_114 = arith.constant 0 : index
    %c0_115 = arith.constant 0 : index
    %182 = vector.load %arg12[%c2_113, %c0_114, %c0_115] : memref<8x1x16xf32, #tpu.memory_space<vmem>>, vector<1x1x16xf32>
    %183 = vector.shape_cast %182 : vector<1x1x16xf32> to vector<1x16xf32>
    %184 = vector.broadcast %183 : vector<1x16xf32> to vector<16x16xf32>
    %185 = arith.mulf %184, %179 : vector<16x16xf32>
    %186 = arith.select %181, %179, %185 : vector<16x16xi1>, vector<16x16xf32>
    %c2_116 = arith.constant 2 : index
    %c0_117 = arith.constant 0 : index
    %c0_118 = arith.constant 0 : index
    %187 = vector.load %arg13[%c2_116, %c0_117, %c0_118] : memref<8x16x32xf32, #tpu.memory_space<vmem>>, vector<1x16x32xf32>
    %188 = vector.shape_cast %187 : vector<1x16x32xf32> to vector<16x32xf32>
    %cst_119 = arith.constant dense<0.000000e+00> : vector<16x32xf32>
    %189 = tpu.matmul %186, %188, %cst_119 {dimension_numbers = #tpu.dot_dimension_numbers<[1], [0], [0], [1], [0, 0, 1, 1], [], []>} : vector<16x16xf32>, vector<16x32xf32>, vector<16x32xf32> -> vector<16x32xf32>
    %c2_120 = arith.constant 2 : index
    %c0_121 = arith.constant 0 : index
    %c0_122 = arith.constant 0 : index
    %190 = vector.load %arg14[%c2_120, %c0_121, %c0_122] : memref<8x1x32xf32, #tpu.memory_space<vmem>>, vector<1x1x32xf32>
    %191 = vector.shape_cast %190 : vector<1x1x32xf32> to vector<1x32xf32>
    %192 = vector.broadcast %191 : vector<1x32xf32> to vector<16x32xf32>
    %193 = arith.addf %189, %192 : vector<16x32xf32>
    %194 = arith.addf %193, %135 : vector<16x32xf32>
    %c3 = arith.constant 3 : index
    %c0_123 = arith.constant 0 : index
    %c0_124 = arith.constant 0 : index
    %195 = vector.load %arg7[%c3, %c0_123, %c0_124] : memref<8x32x32xf32, #tpu.memory_space<vmem>>, vector<1x32x32xf32>
    %196 = vector.shape_cast %195 : vector<1x32x32xf32> to vector<32x32xf32>
    %cst_125 = arith.constant dense<0.000000e+00> : vector<16x32xf32>
    %197 = tpu.matmul %194, %196, %cst_125 {dimension_numbers = #tpu.dot_dimension_numbers<[1], [0], [0], [1], [0, 0, 1, 1], [], []>} : vector<16x32xf32>, vector<32x32xf32>, vector<16x32xf32> -> vector<16x32xf32>
    %cst_126 = arith.constant 0.000000e+00 : f32
    %198 = vector.broadcast %cst_126 : f32 to vector<16x32xf32>
    %199 = arith.cmpf oge, %197, %198 : vector<16x32xf32>
    %c3_127 = arith.constant 3 : index
    %c0_128 = arith.constant 0 : index
    %c0_129 = arith.constant 0 : index
    %200 = vector.load %arg8[%c3_127, %c0_128, %c0_129] : memref<8x1x32xf32, #tpu.memory_space<vmem>>, vector<1x1x32xf32>
    %201 = vector.shape_cast %200 : vector<1x1x32xf32> to vector<1x32xf32>
    %202 = vector.broadcast %201 : vector<1x32xf32> to vector<16x32xf32>
    %203 = arith.mulf %202, %197 : vector<16x32xf32>
    %204 = arith.select %199, %197, %203 : vector<16x32xi1>, vector<16x32xf32>
    %c3_130 = arith.constant 3 : index
    %c0_131 = arith.constant 0 : index
    %c0_132 = arith.constant 0 : index
    %205 = vector.load %arg9[%c3_130, %c0_131, %c0_132] : memref<8x1x32xf32, #tpu.memory_space<vmem>>, vector<1x1x32xf32>
    %206 = vector.shape_cast %205 : vector<1x1x32xf32> to vector<1x32xf32>
    %207 = vector.broadcast %206 : vector<1x32xf32> to vector<16x32xf32>
    %208 = arith.mulf %204, %207 : vector<16x32xf32>
    %c3_133 = arith.constant 3 : index
    %c0_134 = arith.constant 0 : index
    %c0_135 = arith.constant 0 : index
    %209 = vector.load %arg10[%c3_133, %c0_134, %c0_135] : memref<8x1x32xf32, #tpu.memory_space<vmem>>, vector<1x1x32xf32>
    %210 = vector.shape_cast %209 : vector<1x1x32xf32> to vector<1x32xf32>
    %211 = vector.broadcast %210 : vector<1x32xf32> to vector<16x32xf32>
    %212 = arith.addf %208, %211 : vector<16x32xf32>
    %c4_i32_136 = arith.constant 4 : i32
    %213 = tpu.dynamic_rotate %212 by %c4_i32_136 dim 0 : vector<16x32xf32>, i32 -> vector<16x32xf32>
    %c4_i32_137 = arith.constant 4 : i32
    %214 = vector.broadcast %c4_i32_137 : i32 to vector<16x1xi32>
    %215 = arith.cmpi sge, %17, %214 : vector<16x1xi32>
    %cst_138 = arith.constant 0.000000e+00 : f32
    %216 = vector.shape_cast %215 : vector<16x1xi1> to vector<16x1xi1>
    %217 = vector.broadcast %216 : vector<16x1xi1> to vector<16x32xi1>
    %218 = vector.broadcast %cst_138 : f32 to vector<16x32xf32>
    %219 = arith.select %217, %213, %218 : vector<16x32xi1>, vector<16x32xf32>
    %c2_i32_139 = arith.constant 2 : i32
    %220 = tpu.dynamic_rotate %212 by %c2_i32_139 dim 0 : vector<16x32xf32>, i32 -> vector<16x32xf32>
    %c2_i32_140 = arith.constant 2 : i32
    %221 = vector.broadcast %c2_i32_140 : i32 to vector<16x1xi32>
    %222 = arith.cmpi sge, %17, %221 : vector<16x1xi32>
    %cst_141 = arith.constant 0.000000e+00 : f32
    %223 = vector.shape_cast %222 : vector<16x1xi1> to vector<16x1xi1>
    %224 = vector.broadcast %223 : vector<16x1xi1> to vector<16x32xi1>
    %225 = vector.broadcast %cst_141 : f32 to vector<16x32xf32>
    %226 = arith.select %224, %220, %225 : vector<16x32xi1>, vector<16x32xf32>
    %227 = tpu.concatenate %219, %226, %212 in 1 : vector<16x32xf32>, vector<16x32xf32>, vector<16x32xf32> -> vector<16x96xf32>
    %c3_142 = arith.constant 3 : index
    %c0_143 = arith.constant 0 : index
    %c0_144 = arith.constant 0 : index
    %228 = vector.load %arg11[%c3_142, %c0_143, %c0_144] : memref<8x96x32xf32, #tpu.memory_space<vmem>>, vector<1x96x32xf32>
    %229 = vector.shape_cast %228 : vector<1x96x32xf32> to vector<96x32xf32>
    %cst_145 = arith.constant dense<0.000000e+00> : vector<16x32xf32>
    %230 = tpu.matmul %227, %229, %cst_145 {dimension_numbers = #tpu.dot_dimension_numbers<[1], [0], [0], [1], [0, 0, 1, 1], [], []>} : vector<16x96xf32>, vector<96x32xf32>, vector<16x32xf32> -> vector<16x32xf32>
    %231 = vector.extract_strided_slice %230 {offsets = [0, 0], sizes = [16, 16], strides = [1, 1]} : vector<16x32xf32> to vector<16x16xf32>
    %232 = vector.extract_strided_slice %230 {offsets = [0, 16], sizes = [16, 16], strides = [1, 1]} : vector<16x32xf32> to vector<16x16xf32>
    %233 = arith.negf %232 : vector<16x16xf32>
    %234 = math.exp %233 : vector<16x16xf32>
    %cst_146 = arith.constant 1.000000e+00 : f32
    %235 = vector.broadcast %cst_146 : f32 to vector<16x16xf32>
    %236 = arith.addf %235, %234 : vector<16x16xf32>
    %237 = arith.divf %235, %236 : vector<16x16xf32>
    %238 = arith.mulf %231, %237 : vector<16x16xf32>
    %cst_147 = arith.constant 0.000000e+00 : f32
    %239 = vector.broadcast %cst_147 : f32 to vector<16x16xf32>
    %240 = arith.cmpf oge, %238, %239 : vector<16x16xf32>
    %c3_148 = arith.constant 3 : index
    %c0_149 = arith.constant 0 : index
    %c0_150 = arith.constant 0 : index
    %241 = vector.load %arg12[%c3_148, %c0_149, %c0_150] : memref<8x1x16xf32, #tpu.memory_space<vmem>>, vector<1x1x16xf32>
    %242 = vector.shape_cast %241 : vector<1x1x16xf32> to vector<1x16xf32>
    %243 = vector.broadcast %242 : vector<1x16xf32> to vector<16x16xf32>
    %244 = arith.mulf %243, %238 : vector<16x16xf32>
    %245 = arith.select %240, %238, %244 : vector<16x16xi1>, vector<16x16xf32>
    %c3_151 = arith.constant 3 : index
    %c0_152 = arith.constant 0 : index
    %c0_153 = arith.constant 0 : index
    %246 = vector.load %arg13[%c3_151, %c0_152, %c0_153] : memref<8x16x32xf32, #tpu.memory_space<vmem>>, vector<1x16x32xf32>
    %247 = vector.shape_cast %246 : vector<1x16x32xf32> to vector<16x32xf32>
    %cst_154 = arith.constant dense<0.000000e+00> : vector<16x32xf32>
    %248 = tpu.matmul %245, %247, %cst_154 {dimension_numbers = #tpu.dot_dimension_numbers<[1], [0], [0], [1], [0, 0, 1, 1], [], []>} : vector<16x16xf32>, vector<16x32xf32>, vector<16x32xf32> -> vector<16x32xf32>
    %c3_155 = arith.constant 3 : index
    %c0_156 = arith.constant 0 : index
    %c0_157 = arith.constant 0 : index
    %249 = vector.load %arg14[%c3_155, %c0_156, %c0_157] : memref<8x1x32xf32, #tpu.memory_space<vmem>>, vector<1x1x32xf32>
    %250 = vector.shape_cast %249 : vector<1x1x32xf32> to vector<1x32xf32>
    %251 = vector.broadcast %250 : vector<1x32xf32> to vector<16x32xf32>
    %252 = arith.addf %248, %251 : vector<16x32xf32>
    %253 = arith.addf %252, %194 : vector<16x32xf32>
    %c4 = arith.constant 4 : index
    %c0_158 = arith.constant 0 : index
    %c0_159 = arith.constant 0 : index
    %254 = vector.load %arg7[%c4, %c0_158, %c0_159] : memref<8x32x32xf32, #tpu.memory_space<vmem>>, vector<1x32x32xf32>
    %255 = vector.shape_cast %254 : vector<1x32x32xf32> to vector<32x32xf32>
    %cst_160 = arith.constant dense<0.000000e+00> : vector<16x32xf32>
    %256 = tpu.matmul %16, %255, %cst_160 {dimension_numbers = #tpu.dot_dimension_numbers<[1], [0], [0], [1], [0, 0, 1, 1], [], []>} : vector<16x32xf32>, vector<32x32xf32>, vector<16x32xf32> -> vector<16x32xf32>
    %cst_161 = arith.constant 0.000000e+00 : f32
    %257 = vector.broadcast %cst_161 : f32 to vector<16x32xf32>
    %258 = arith.cmpf oge, %256, %257 : vector<16x32xf32>
    %c4_162 = arith.constant 4 : index
    %c0_163 = arith.constant 0 : index
    %c0_164 = arith.constant 0 : index
    %259 = vector.load %arg8[%c4_162, %c0_163, %c0_164] : memref<8x1x32xf32, #tpu.memory_space<vmem>>, vector<1x1x32xf32>
    %260 = vector.shape_cast %259 : vector<1x1x32xf32> to vector<1x32xf32>
    %261 = vector.broadcast %260 : vector<1x32xf32> to vector<16x32xf32>
    %262 = arith.mulf %261, %256 : vector<16x32xf32>
    %263 = arith.select %258, %256, %262 : vector<16x32xi1>, vector<16x32xf32>
    %c4_165 = arith.constant 4 : index
    %c0_166 = arith.constant 0 : index
    %c0_167 = arith.constant 0 : index
    %264 = vector.load %arg9[%c4_165, %c0_166, %c0_167] : memref<8x1x32xf32, #tpu.memory_space<vmem>>, vector<1x1x32xf32>
    %265 = vector.shape_cast %264 : vector<1x1x32xf32> to vector<1x32xf32>
    %266 = vector.broadcast %265 : vector<1x32xf32> to vector<16x32xf32>
    %267 = arith.mulf %263, %266 : vector<16x32xf32>
    %c4_168 = arith.constant 4 : index
    %c0_169 = arith.constant 0 : index
    %c0_170 = arith.constant 0 : index
    %268 = vector.load %arg10[%c4_168, %c0_169, %c0_170] : memref<8x1x32xf32, #tpu.memory_space<vmem>>, vector<1x1x32xf32>
    %269 = vector.shape_cast %268 : vector<1x1x32xf32> to vector<1x32xf32>
    %270 = vector.broadcast %269 : vector<1x32xf32> to vector<16x32xf32>
    %271 = arith.addf %267, %270 : vector<16x32xf32>
    %c2_i32_171 = arith.constant 2 : i32
    %272 = tpu.dynamic_rotate %271 by %c2_i32_171 dim 0 : vector<16x32xf32>, i32 -> vector<16x32xf32>
    %c2_i32_172 = arith.constant 2 : i32
    %273 = vector.broadcast %c2_i32_172 : i32 to vector<16x1xi32>
    %274 = arith.cmpi sge, %17, %273 : vector<16x1xi32>
    %cst_173 = arith.constant 0.000000e+00 : f32
    %275 = vector.shape_cast %274 : vector<16x1xi1> to vector<16x1xi1>
    %276 = vector.broadcast %275 : vector<16x1xi1> to vector<16x32xi1>
    %277 = vector.broadcast %cst_173 : f32 to vector<16x32xf32>
    %278 = arith.select %276, %272, %277 : vector<16x32xi1>, vector<16x32xf32>
    %c1_i32_174 = arith.constant 1 : i32
    %279 = tpu.dynamic_rotate %271 by %c1_i32_174 dim 0 : vector<16x32xf32>, i32 -> vector<16x32xf32>
    %c1_i32_175 = arith.constant 1 : i32
    %280 = vector.broadcast %c1_i32_175 : i32 to vector<16x1xi32>
    %281 = arith.cmpi sge, %17, %280 : vector<16x1xi32>
    %cst_176 = arith.constant 0.000000e+00 : f32
    %282 = vector.shape_cast %281 : vector<16x1xi1> to vector<16x1xi1>
    %283 = vector.broadcast %282 : vector<16x1xi1> to vector<16x32xi1>
    %284 = vector.broadcast %cst_176 : f32 to vector<16x32xf32>
    %285 = arith.select %283, %279, %284 : vector<16x32xi1>, vector<16x32xf32>
    %286 = tpu.concatenate %278, %285, %271 in 1 : vector<16x32xf32>, vector<16x32xf32>, vector<16x32xf32> -> vector<16x96xf32>
    %c4_177 = arith.constant 4 : index
    %c0_178 = arith.constant 0 : index
    %c0_179 = arith.constant 0 : index
    %287 = vector.load %arg11[%c4_177, %c0_178, %c0_179] : memref<8x96x32xf32, #tpu.memory_space<vmem>>, vector<1x96x32xf32>
    %288 = vector.shape_cast %287 : vector<1x96x32xf32> to vector<96x32xf32>
    %cst_180 = arith.constant dense<0.000000e+00> : vector<16x32xf32>
    %289 = tpu.matmul %286, %288, %cst_180 {dimension_numbers = #tpu.dot_dimension_numbers<[1], [0], [0], [1], [0, 0, 1, 1], [], []>} : vector<16x96xf32>, vector<96x32xf32>, vector<16x32xf32> -> vector<16x32xf32>
    %290 = vector.extract_strided_slice %289 {offsets = [0, 0], sizes = [16, 16], strides = [1, 1]} : vector<16x32xf32> to vector<16x16xf32>
    %291 = vector.extract_strided_slice %289 {offsets = [0, 16], sizes = [16, 16], strides = [1, 1]} : vector<16x32xf32> to vector<16x16xf32>
    %292 = arith.negf %291 : vector<16x16xf32>
    %293 = math.exp %292 : vector<16x16xf32>
    %cst_181 = arith.constant 1.000000e+00 : f32
    %294 = vector.broadcast %cst_181 : f32 to vector<16x16xf32>
    %295 = arith.addf %294, %293 : vector<16x16xf32>
    %296 = arith.divf %294, %295 : vector<16x16xf32>
    %297 = arith.mulf %290, %296 : vector<16x16xf32>
    %cst_182 = arith.constant 0.000000e+00 : f32
    %298 = vector.broadcast %cst_182 : f32 to vector<16x16xf32>
    %299 = arith.cmpf oge, %297, %298 : vector<16x16xf32>
    %c4_183 = arith.constant 4 : index
    %c0_184 = arith.constant 0 : index
    %c0_185 = arith.constant 0 : index
    %300 = vector.load %arg12[%c4_183, %c0_184, %c0_185] : memref<8x1x16xf32, #tpu.memory_space<vmem>>, vector<1x1x16xf32>
    %301 = vector.shape_cast %300 : vector<1x1x16xf32> to vector<1x16xf32>
    %302 = vector.broadcast %301 : vector<1x16xf32> to vector<16x16xf32>
    %303 = arith.mulf %302, %297 : vector<16x16xf32>
    %304 = arith.select %299, %297, %303 : vector<16x16xi1>, vector<16x16xf32>
    %c4_186 = arith.constant 4 : index
    %c0_187 = arith.constant 0 : index
    %c0_188 = arith.constant 0 : index
    %305 = vector.load %arg13[%c4_186, %c0_187, %c0_188] : memref<8x16x32xf32, #tpu.memory_space<vmem>>, vector<1x16x32xf32>
    %306 = vector.shape_cast %305 : vector<1x16x32xf32> to vector<16x32xf32>
    %cst_189 = arith.constant dense<0.000000e+00> : vector<16x32xf32>
    %307 = tpu.matmul %304, %306, %cst_189 {dimension_numbers = #tpu.dot_dimension_numbers<[1], [0], [0], [1], [0, 0, 1, 1], [], []>} : vector<16x16xf32>, vector<16x32xf32>, vector<16x32xf32> -> vector<16x32xf32>
    %c4_190 = arith.constant 4 : index
    %c0_191 = arith.constant 0 : index
    %c0_192 = arith.constant 0 : index
    %308 = vector.load %arg14[%c4_190, %c0_191, %c0_192] : memref<8x1x32xf32, #tpu.memory_space<vmem>>, vector<1x1x32xf32>
    %309 = vector.shape_cast %308 : vector<1x1x32xf32> to vector<1x32xf32>
    %310 = vector.broadcast %309 : vector<1x32xf32> to vector<16x32xf32>
    %311 = arith.addf %307, %310 : vector<16x32xf32>
    %312 = arith.addf %311, %16 : vector<16x32xf32>
    %c5 = arith.constant 5 : index
    %c0_193 = arith.constant 0 : index
    %c0_194 = arith.constant 0 : index
    %313 = vector.load %arg7[%c5, %c0_193, %c0_194] : memref<8x32x32xf32, #tpu.memory_space<vmem>>, vector<1x32x32xf32>
    %314 = vector.shape_cast %313 : vector<1x32x32xf32> to vector<32x32xf32>
    %cst_195 = arith.constant dense<0.000000e+00> : vector<16x32xf32>
    %315 = tpu.matmul %312, %314, %cst_195 {dimension_numbers = #tpu.dot_dimension_numbers<[1], [0], [0], [1], [0, 0, 1, 1], [], []>} : vector<16x32xf32>, vector<32x32xf32>, vector<16x32xf32> -> vector<16x32xf32>
    %cst_196 = arith.constant 0.000000e+00 : f32
    %316 = vector.broadcast %cst_196 : f32 to vector<16x32xf32>
    %317 = arith.cmpf oge, %315, %316 : vector<16x32xf32>
    %c5_197 = arith.constant 5 : index
    %c0_198 = arith.constant 0 : index
    %c0_199 = arith.constant 0 : index
    %318 = vector.load %arg8[%c5_197, %c0_198, %c0_199] : memref<8x1x32xf32, #tpu.memory_space<vmem>>, vector<1x1x32xf32>
    %319 = vector.shape_cast %318 : vector<1x1x32xf32> to vector<1x32xf32>
    %320 = vector.broadcast %319 : vector<1x32xf32> to vector<16x32xf32>
    %321 = arith.mulf %320, %315 : vector<16x32xf32>
    %322 = arith.select %317, %315, %321 : vector<16x32xi1>, vector<16x32xf32>
    %c5_200 = arith.constant 5 : index
    %c0_201 = arith.constant 0 : index
    %c0_202 = arith.constant 0 : index
    %323 = vector.load %arg9[%c5_200, %c0_201, %c0_202] : memref<8x1x32xf32, #tpu.memory_space<vmem>>, vector<1x1x32xf32>
    %324 = vector.shape_cast %323 : vector<1x1x32xf32> to vector<1x32xf32>
    %325 = vector.broadcast %324 : vector<1x32xf32> to vector<16x32xf32>
    %326 = arith.mulf %322, %325 : vector<16x32xf32>
    %c5_203 = arith.constant 5 : index
    %c0_204 = arith.constant 0 : index
    %c0_205 = arith.constant 0 : index
    %327 = vector.load %arg10[%c5_203, %c0_204, %c0_205] : memref<8x1x32xf32, #tpu.memory_space<vmem>>, vector<1x1x32xf32>
    %328 = vector.shape_cast %327 : vector<1x1x32xf32> to vector<1x32xf32>
    %329 = vector.broadcast %328 : vector<1x32xf32> to vector<16x32xf32>
    %330 = arith.addf %326, %329 : vector<16x32xf32>
    %c4_i32_206 = arith.constant 4 : i32
    %331 = tpu.dynamic_rotate %330 by %c4_i32_206 dim 0 : vector<16x32xf32>, i32 -> vector<16x32xf32>
    %c4_i32_207 = arith.constant 4 : i32
    %332 = vector.broadcast %c4_i32_207 : i32 to vector<16x1xi32>
    %333 = arith.cmpi sge, %17, %332 : vector<16x1xi32>
    %cst_208 = arith.constant 0.000000e+00 : f32
    %334 = vector.shape_cast %333 : vector<16x1xi1> to vector<16x1xi1>
    %335 = vector.broadcast %334 : vector<16x1xi1> to vector<16x32xi1>
    %336 = vector.broadcast %cst_208 : f32 to vector<16x32xf32>
    %337 = arith.select %335, %331, %336 : vector<16x32xi1>, vector<16x32xf32>
    %c2_i32_209 = arith.constant 2 : i32
    %338 = tpu.dynamic_rotate %330 by %c2_i32_209 dim 0 : vector<16x32xf32>, i32 -> vector<16x32xf32>
    %c2_i32_210 = arith.constant 2 : i32
    %339 = vector.broadcast %c2_i32_210 : i32 to vector<16x1xi32>
    %340 = arith.cmpi sge, %17, %339 : vector<16x1xi32>
    %cst_211 = arith.constant 0.000000e+00 : f32
    %341 = vector.shape_cast %340 : vector<16x1xi1> to vector<16x1xi1>
    %342 = vector.broadcast %341 : vector<16x1xi1> to vector<16x32xi1>
    %343 = vector.broadcast %cst_211 : f32 to vector<16x32xf32>
    %344 = arith.select %342, %338, %343 : vector<16x32xi1>, vector<16x32xf32>
    %345 = tpu.concatenate %337, %344, %330 in 1 : vector<16x32xf32>, vector<16x32xf32>, vector<16x32xf32> -> vector<16x96xf32>
    %c5_212 = arith.constant 5 : index
    %c0_213 = arith.constant 0 : index
    %c0_214 = arith.constant 0 : index
    %346 = vector.load %arg11[%c5_212, %c0_213, %c0_214] : memref<8x96x32xf32, #tpu.memory_space<vmem>>, vector<1x96x32xf32>
    %347 = vector.shape_cast %346 : vector<1x96x32xf32> to vector<96x32xf32>
    %cst_215 = arith.constant dense<0.000000e+00> : vector<16x32xf32>
    %348 = tpu.matmul %345, %347, %cst_215 {dimension_numbers = #tpu.dot_dimension_numbers<[1], [0], [0], [1], [0, 0, 1, 1], [], []>} : vector<16x96xf32>, vector<96x32xf32>, vector<16x32xf32> -> vector<16x32xf32>
    %349 = vector.extract_strided_slice %348 {offsets = [0, 0], sizes = [16, 16], strides = [1, 1]} : vector<16x32xf32> to vector<16x16xf32>
    %350 = vector.extract_strided_slice %348 {offsets = [0, 16], sizes = [16, 16], strides = [1, 1]} : vector<16x32xf32> to vector<16x16xf32>
    %351 = arith.negf %350 : vector<16x16xf32>
    %352 = math.exp %351 : vector<16x16xf32>
    %cst_216 = arith.constant 1.000000e+00 : f32
    %353 = vector.broadcast %cst_216 : f32 to vector<16x16xf32>
    %354 = arith.addf %353, %352 : vector<16x16xf32>
    %355 = arith.divf %353, %354 : vector<16x16xf32>
    %356 = arith.mulf %349, %355 : vector<16x16xf32>
    %cst_217 = arith.constant 0.000000e+00 : f32
    %357 = vector.broadcast %cst_217 : f32 to vector<16x16xf32>
    %358 = arith.cmpf oge, %356, %357 : vector<16x16xf32>
    %c5_218 = arith.constant 5 : index
    %c0_219 = arith.constant 0 : index
    %c0_220 = arith.constant 0 : index
    %359 = vector.load %arg12[%c5_218, %c0_219, %c0_220] : memref<8x1x16xf32, #tpu.memory_space<vmem>>, vector<1x1x16xf32>
    %360 = vector.shape_cast %359 : vector<1x1x16xf32> to vector<1x16xf32>
    %361 = vector.broadcast %360 : vector<1x16xf32> to vector<16x16xf32>
    %362 = arith.mulf %361, %356 : vector<16x16xf32>
    %363 = arith.select %358, %356, %362 : vector<16x16xi1>, vector<16x16xf32>
    %c5_221 = arith.constant 5 : index
    %c0_222 = arith.constant 0 : index
    %c0_223 = arith.constant 0 : index
    %364 = vector.load %arg13[%c5_221, %c0_222, %c0_223] : memref<8x16x32xf32, #tpu.memory_space<vmem>>, vector<1x16x32xf32>
    %365 = vector.shape_cast %364 : vector<1x16x32xf32> to vector<16x32xf32>
    %cst_224 = arith.constant dense<0.000000e+00> : vector<16x32xf32>
    %366 = tpu.matmul %363, %365, %cst_224 {dimension_numbers = #tpu.dot_dimension_numbers<[1], [0], [0], [1], [0, 0, 1, 1], [], []>} : vector<16x16xf32>, vector<16x32xf32>, vector<16x32xf32> -> vector<16x32xf32>
    %c5_225 = arith.constant 5 : index
    %c0_226 = arith.constant 0 : index
    %c0_227 = arith.constant 0 : index
    %367 = vector.load %arg14[%c5_225, %c0_226, %c0_227] : memref<8x1x32xf32, #tpu.memory_space<vmem>>, vector<1x1x32xf32>
    %368 = vector.shape_cast %367 : vector<1x1x32xf32> to vector<1x32xf32>
    %369 = vector.broadcast %368 : vector<1x32xf32> to vector<16x32xf32>
    %370 = arith.addf %366, %369 : vector<16x32xf32>
    %371 = arith.addf %370, %312 : vector<16x32xf32>
    %c6 = arith.constant 6 : index
    %c0_228 = arith.constant 0 : index
    %c0_229 = arith.constant 0 : index
    %372 = vector.load %arg7[%c6, %c0_228, %c0_229] : memref<8x32x32xf32, #tpu.memory_space<vmem>>, vector<1x32x32xf32>
    %373 = vector.shape_cast %372 : vector<1x32x32xf32> to vector<32x32xf32>
    %cst_230 = arith.constant dense<0.000000e+00> : vector<16x32xf32>
    %374 = tpu.matmul %371, %373, %cst_230 {dimension_numbers = #tpu.dot_dimension_numbers<[1], [0], [0], [1], [0, 0, 1, 1], [], []>} : vector<16x32xf32>, vector<32x32xf32>, vector<16x32xf32> -> vector<16x32xf32>
    %cst_231 = arith.constant 0.000000e+00 : f32
    %375 = vector.broadcast %cst_231 : f32 to vector<16x32xf32>
    %376 = arith.cmpf oge, %374, %375 : vector<16x32xf32>
    %c6_232 = arith.constant 6 : index
    %c0_233 = arith.constant 0 : index
    %c0_234 = arith.constant 0 : index
    %377 = vector.load %arg8[%c6_232, %c0_233, %c0_234] : memref<8x1x32xf32, #tpu.memory_space<vmem>>, vector<1x1x32xf32>
    %378 = vector.shape_cast %377 : vector<1x1x32xf32> to vector<1x32xf32>
    %379 = vector.broadcast %378 : vector<1x32xf32> to vector<16x32xf32>
    %380 = arith.mulf %379, %374 : vector<16x32xf32>
    %381 = arith.select %376, %374, %380 : vector<16x32xi1>, vector<16x32xf32>
    %c6_235 = arith.constant 6 : index
    %c0_236 = arith.constant 0 : index
    %c0_237 = arith.constant 0 : index
    %382 = vector.load %arg9[%c6_235, %c0_236, %c0_237] : memref<8x1x32xf32, #tpu.memory_space<vmem>>, vector<1x1x32xf32>
    %383 = vector.shape_cast %382 : vector<1x1x32xf32> to vector<1x32xf32>
    %384 = vector.broadcast %383 : vector<1x32xf32> to vector<16x32xf32>
    %385 = arith.mulf %381, %384 : vector<16x32xf32>
    %c6_238 = arith.constant 6 : index
    %c0_239 = arith.constant 0 : index
    %c0_240 = arith.constant 0 : index
    %386 = vector.load %arg10[%c6_238, %c0_239, %c0_240] : memref<8x1x32xf32, #tpu.memory_space<vmem>>, vector<1x1x32xf32>
    %387 = vector.shape_cast %386 : vector<1x1x32xf32> to vector<1x32xf32>
    %388 = vector.broadcast %387 : vector<1x32xf32> to vector<16x32xf32>
    %389 = arith.addf %385, %388 : vector<16x32xf32>
    %c2_i32_241 = arith.constant 2 : i32
    %390 = tpu.dynamic_rotate %389 by %c2_i32_241 dim 0 : vector<16x32xf32>, i32 -> vector<16x32xf32>
    %c2_i32_242 = arith.constant 2 : i32
    %391 = vector.broadcast %c2_i32_242 : i32 to vector<16x1xi32>
    %392 = arith.cmpi sge, %17, %391 : vector<16x1xi32>
    %cst_243 = arith.constant 0.000000e+00 : f32
    %393 = vector.shape_cast %392 : vector<16x1xi1> to vector<16x1xi1>
    %394 = vector.broadcast %393 : vector<16x1xi1> to vector<16x32xi1>
    %395 = vector.broadcast %cst_243 : f32 to vector<16x32xf32>
    %396 = arith.select %394, %390, %395 : vector<16x32xi1>, vector<16x32xf32>
    %c1_i32_244 = arith.constant 1 : i32
    %397 = tpu.dynamic_rotate %389 by %c1_i32_244 dim 0 : vector<16x32xf32>, i32 -> vector<16x32xf32>
    %c1_i32_245 = arith.constant 1 : i32
    %398 = vector.broadcast %c1_i32_245 : i32 to vector<16x1xi32>
    %399 = arith.cmpi sge, %17, %398 : vector<16x1xi32>
    %cst_246 = arith.constant 0.000000e+00 : f32
    %400 = vector.shape_cast %399 : vector<16x1xi1> to vector<16x1xi1>
    %401 = vector.broadcast %400 : vector<16x1xi1> to vector<16x32xi1>
    %402 = vector.broadcast %cst_246 : f32 to vector<16x32xf32>
    %403 = arith.select %401, %397, %402 : vector<16x32xi1>, vector<16x32xf32>
    %404 = tpu.concatenate %396, %403, %389 in 1 : vector<16x32xf32>, vector<16x32xf32>, vector<16x32xf32> -> vector<16x96xf32>
    %c6_247 = arith.constant 6 : index
    %c0_248 = arith.constant 0 : index
    %c0_249 = arith.constant 0 : index
    %405 = vector.load %arg11[%c6_247, %c0_248, %c0_249] : memref<8x96x32xf32, #tpu.memory_space<vmem>>, vector<1x96x32xf32>
    %406 = vector.shape_cast %405 : vector<1x96x32xf32> to vector<96x32xf32>
    %cst_250 = arith.constant dense<0.000000e+00> : vector<16x32xf32>
    %407 = tpu.matmul %404, %406, %cst_250 {dimension_numbers = #tpu.dot_dimension_numbers<[1], [0], [0], [1], [0, 0, 1, 1], [], []>} : vector<16x96xf32>, vector<96x32xf32>, vector<16x32xf32> -> vector<16x32xf32>
    %408 = vector.extract_strided_slice %407 {offsets = [0, 0], sizes = [16, 16], strides = [1, 1]} : vector<16x32xf32> to vector<16x16xf32>
    %409 = vector.extract_strided_slice %407 {offsets = [0, 16], sizes = [16, 16], strides = [1, 1]} : vector<16x32xf32> to vector<16x16xf32>
    %410 = arith.negf %409 : vector<16x16xf32>
    %411 = math.exp %410 : vector<16x16xf32>
    %cst_251 = arith.constant 1.000000e+00 : f32
    %412 = vector.broadcast %cst_251 : f32 to vector<16x16xf32>
    %413 = arith.addf %412, %411 : vector<16x16xf32>
    %414 = arith.divf %412, %413 : vector<16x16xf32>
    %415 = arith.mulf %408, %414 : vector<16x16xf32>
    %cst_252 = arith.constant 0.000000e+00 : f32
    %416 = vector.broadcast %cst_252 : f32 to vector<16x16xf32>
    %417 = arith.cmpf oge, %415, %416 : vector<16x16xf32>
    %c6_253 = arith.constant 6 : index
    %c0_254 = arith.constant 0 : index
    %c0_255 = arith.constant 0 : index
    %418 = vector.load %arg12[%c6_253, %c0_254, %c0_255] : memref<8x1x16xf32, #tpu.memory_space<vmem>>, vector<1x1x16xf32>
    %419 = vector.shape_cast %418 : vector<1x1x16xf32> to vector<1x16xf32>
    %420 = vector.broadcast %419 : vector<1x16xf32> to vector<16x16xf32>
    %421 = arith.mulf %420, %415 : vector<16x16xf32>
    %422 = arith.select %417, %415, %421 : vector<16x16xi1>, vector<16x16xf32>
    %c6_256 = arith.constant 6 : index
    %c0_257 = arith.constant 0 : index
    %c0_258 = arith.constant 0 : index
    %423 = vector.load %arg13[%c6_256, %c0_257, %c0_258] : memref<8x16x32xf32, #tpu.memory_space<vmem>>, vector<1x16x32xf32>
    %424 = vector.shape_cast %423 : vector<1x16x32xf32> to vector<16x32xf32>
    %cst_259 = arith.constant dense<0.000000e+00> : vector<16x32xf32>
    %425 = tpu.matmul %422, %424, %cst_259 {dimension_numbers = #tpu.dot_dimension_numbers<[1], [0], [0], [1], [0, 0, 1, 1], [], []>} : vector<16x16xf32>, vector<16x32xf32>, vector<16x32xf32> -> vector<16x32xf32>
    %c6_260 = arith.constant 6 : index
    %c0_261 = arith.constant 0 : index
    %c0_262 = arith.constant 0 : index
    %426 = vector.load %arg14[%c6_260, %c0_261, %c0_262] : memref<8x1x32xf32, #tpu.memory_space<vmem>>, vector<1x1x32xf32>
    %427 = vector.shape_cast %426 : vector<1x1x32xf32> to vector<1x32xf32>
    %428 = vector.broadcast %427 : vector<1x32xf32> to vector<16x32xf32>
    %429 = arith.addf %425, %428 : vector<16x32xf32>
    %430 = arith.addf %429, %371 : vector<16x32xf32>
    %c7 = arith.constant 7 : index
    %c0_263 = arith.constant 0 : index
    %c0_264 = arith.constant 0 : index
    %431 = vector.load %arg7[%c7, %c0_263, %c0_264] : memref<8x32x32xf32, #tpu.memory_space<vmem>>, vector<1x32x32xf32>
    %432 = vector.shape_cast %431 : vector<1x32x32xf32> to vector<32x32xf32>
    %cst_265 = arith.constant dense<0.000000e+00> : vector<16x32xf32>
    %433 = tpu.matmul %430, %432, %cst_265 {dimension_numbers = #tpu.dot_dimension_numbers<[1], [0], [0], [1], [0, 0, 1, 1], [], []>} : vector<16x32xf32>, vector<32x32xf32>, vector<16x32xf32> -> vector<16x32xf32>
    %cst_266 = arith.constant 0.000000e+00 : f32
    %434 = vector.broadcast %cst_266 : f32 to vector<16x32xf32>
    %435 = arith.cmpf oge, %433, %434 : vector<16x32xf32>
    %c7_267 = arith.constant 7 : index
    %c0_268 = arith.constant 0 : index
    %c0_269 = arith.constant 0 : index
    %436 = vector.load %arg8[%c7_267, %c0_268, %c0_269] : memref<8x1x32xf32, #tpu.memory_space<vmem>>, vector<1x1x32xf32>
    %437 = vector.shape_cast %436 : vector<1x1x32xf32> to vector<1x32xf32>
    %438 = vector.broadcast %437 : vector<1x32xf32> to vector<16x32xf32>
    %439 = arith.mulf %438, %433 : vector<16x32xf32>
    %440 = arith.select %435, %433, %439 : vector<16x32xi1>, vector<16x32xf32>
    %c7_270 = arith.constant 7 : index
    %c0_271 = arith.constant 0 : index
    %c0_272 = arith.constant 0 : index
    %441 = vector.load %arg9[%c7_270, %c0_271, %c0_272] : memref<8x1x32xf32, #tpu.memory_space<vmem>>, vector<1x1x32xf32>
    %442 = vector.shape_cast %441 : vector<1x1x32xf32> to vector<1x32xf32>
    %443 = vector.broadcast %442 : vector<1x32xf32> to vector<16x32xf32>
    %444 = arith.mulf %440, %443 : vector<16x32xf32>
    %c7_273 = arith.constant 7 : index
    %c0_274 = arith.constant 0 : index
    %c0_275 = arith.constant 0 : index
    %445 = vector.load %arg10[%c7_273, %c0_274, %c0_275] : memref<8x1x32xf32, #tpu.memory_space<vmem>>, vector<1x1x32xf32>
    %446 = vector.shape_cast %445 : vector<1x1x32xf32> to vector<1x32xf32>
    %447 = vector.broadcast %446 : vector<1x32xf32> to vector<16x32xf32>
    %448 = arith.addf %444, %447 : vector<16x32xf32>
    %c4_i32_276 = arith.constant 4 : i32
    %449 = tpu.dynamic_rotate %448 by %c4_i32_276 dim 0 : vector<16x32xf32>, i32 -> vector<16x32xf32>
    %c4_i32_277 = arith.constant 4 : i32
    %450 = vector.broadcast %c4_i32_277 : i32 to vector<16x1xi32>
    %451 = arith.cmpi sge, %17, %450 : vector<16x1xi32>
    %cst_278 = arith.constant 0.000000e+00 : f32
    %452 = vector.shape_cast %451 : vector<16x1xi1> to vector<16x1xi1>
    %453 = vector.broadcast %452 : vector<16x1xi1> to vector<16x32xi1>
    %454 = vector.broadcast %cst_278 : f32 to vector<16x32xf32>
    %455 = arith.select %453, %449, %454 : vector<16x32xi1>, vector<16x32xf32>
    %c2_i32_279 = arith.constant 2 : i32
    %456 = tpu.dynamic_rotate %448 by %c2_i32_279 dim 0 : vector<16x32xf32>, i32 -> vector<16x32xf32>
    %c2_i32_280 = arith.constant 2 : i32
    %457 = vector.broadcast %c2_i32_280 : i32 to vector<16x1xi32>
    %458 = arith.cmpi sge, %17, %457 : vector<16x1xi32>
    %cst_281 = arith.constant 0.000000e+00 : f32
    %459 = vector.shape_cast %458 : vector<16x1xi1> to vector<16x1xi1>
    %460 = vector.broadcast %459 : vector<16x1xi1> to vector<16x32xi1>
    %461 = vector.broadcast %cst_281 : f32 to vector<16x32xf32>
    %462 = arith.select %460, %456, %461 : vector<16x32xi1>, vector<16x32xf32>
    %463 = tpu.concatenate %455, %462, %448 in 1 : vector<16x32xf32>, vector<16x32xf32>, vector<16x32xf32> -> vector<16x96xf32>
    %c7_282 = arith.constant 7 : index
    %c0_283 = arith.constant 0 : index
    %c0_284 = arith.constant 0 : index
    %464 = vector.load %arg11[%c7_282, %c0_283, %c0_284] : memref<8x96x32xf32, #tpu.memory_space<vmem>>, vector<1x96x32xf32>
    %465 = vector.shape_cast %464 : vector<1x96x32xf32> to vector<96x32xf32>
    %cst_285 = arith.constant dense<0.000000e+00> : vector<16x32xf32>
    %466 = tpu.matmul %463, %465, %cst_285 {dimension_numbers = #tpu.dot_dimension_numbers<[1], [0], [0], [1], [0, 0, 1, 1], [], []>} : vector<16x96xf32>, vector<96x32xf32>, vector<16x32xf32> -> vector<16x32xf32>
    %467 = vector.extract_strided_slice %466 {offsets = [0, 0], sizes = [16, 16], strides = [1, 1]} : vector<16x32xf32> to vector<16x16xf32>
    %468 = vector.extract_strided_slice %466 {offsets = [0, 16], sizes = [16, 16], strides = [1, 1]} : vector<16x32xf32> to vector<16x16xf32>
    %469 = arith.negf %468 : vector<16x16xf32>
    %470 = math.exp %469 : vector<16x16xf32>
    %cst_286 = arith.constant 1.000000e+00 : f32
    %471 = vector.broadcast %cst_286 : f32 to vector<16x16xf32>
    %472 = arith.addf %471, %470 : vector<16x16xf32>
    %473 = arith.divf %471, %472 : vector<16x16xf32>
    %474 = arith.mulf %467, %473 : vector<16x16xf32>
    %cst_287 = arith.constant 0.000000e+00 : f32
    %475 = vector.broadcast %cst_287 : f32 to vector<16x16xf32>
    %476 = arith.cmpf oge, %474, %475 : vector<16x16xf32>
    %c7_288 = arith.constant 7 : index
    %c0_289 = arith.constant 0 : index
    %c0_290 = arith.constant 0 : index
    %477 = vector.load %arg12[%c7_288, %c0_289, %c0_290] : memref<8x1x16xf32, #tpu.memory_space<vmem>>, vector<1x1x16xf32>
    %478 = vector.shape_cast %477 : vector<1x1x16xf32> to vector<1x16xf32>
    %479 = vector.broadcast %478 : vector<1x16xf32> to vector<16x16xf32>
    %480 = arith.mulf %479, %474 : vector<16x16xf32>
    %481 = arith.select %476, %474, %480 : vector<16x16xi1>, vector<16x16xf32>
    %c7_291 = arith.constant 7 : index
    %c0_292 = arith.constant 0 : index
    %c0_293 = arith.constant 0 : index
    %482 = vector.load %arg13[%c7_291, %c0_292, %c0_293] : memref<8x16x32xf32, #tpu.memory_space<vmem>>, vector<1x16x32xf32>
    %483 = vector.shape_cast %482 : vector<1x16x32xf32> to vector<16x32xf32>
    %cst_294 = arith.constant dense<0.000000e+00> : vector<16x32xf32>
    %484 = tpu.matmul %481, %483, %cst_294 {dimension_numbers = #tpu.dot_dimension_numbers<[1], [0], [0], [1], [0, 0, 1, 1], [], []>} : vector<16x16xf32>, vector<16x32xf32>, vector<16x32xf32> -> vector<16x32xf32>
    %c7_295 = arith.constant 7 : index
    %c0_296 = arith.constant 0 : index
    %c0_297 = arith.constant 0 : index
    %485 = vector.load %arg14[%c7_295, %c0_296, %c0_297] : memref<8x1x32xf32, #tpu.memory_space<vmem>>, vector<1x1x32xf32>
    %486 = vector.shape_cast %485 : vector<1x1x32xf32> to vector<1x32xf32>
    %487 = vector.broadcast %486 : vector<1x32xf32> to vector<16x32xf32>
    %488 = arith.addf %484, %487 : vector<16x32xf32>
    %489 = arith.addf %488, %430 : vector<16x32xf32>
    %c0_298 = arith.constant 0 : index
    %c0_299 = arith.constant 0 : index
    %490 = vector.load %arg15[%c0_298, %c0_299] : memref<32x32xf32, #tpu.memory_space<vmem>>, vector<32x32xf32>
    %cst_300 = arith.constant dense<0.000000e+00> : vector<16x32xf32>
    %491 = tpu.matmul %253, %490, %cst_300 {dimension_numbers = #tpu.dot_dimension_numbers<[1], [0], [0], [1], [0, 0, 1, 1], [], []>} : vector<16x32xf32>, vector<32x32xf32>, vector<16x32xf32> -> vector<16x32xf32>
    %c0_301 = arith.constant 0 : index
    %c0_302 = arith.constant 0 : index
    %492 = vector.load %arg16[%c0_301, %c0_302] : memref<32x32xf32, #tpu.memory_space<vmem>>, vector<32x32xf32>
    %cst_303 = arith.constant dense<0.000000e+00> : vector<16x32xf32>
    %493 = tpu.matmul %489, %492, %cst_303 {dimension_numbers = #tpu.dot_dimension_numbers<[1], [0], [0], [1], [0, 0, 1, 1], [], []>} : vector<16x32xf32>, vector<32x32xf32>, vector<16x32xf32> -> vector<16x32xf32>
    %494 = arith.addf %491, %493 : vector<16x32xf32>
    %c0_304 = arith.constant 0 : index
    %c0_305 = arith.constant 0 : index
    %495 = vector.load %arg17[%c0_304, %c0_305] : memref<1x32xf32, #tpu.memory_space<vmem>>, vector<1x32xf32>
    %496 = vector.broadcast %495 : vector<1x32xf32> to vector<16x32xf32>
    %497 = arith.addf %494, %496 : vector<16x32xf32>
    %c0_306 = arith.constant 0 : index
    %c0_307 = arith.constant 0 : index
    %c0_308 = arith.constant 0 : index
    %498 = vector.load %arg18[%c0_306, %c0_307, %c0_308] : memref<1x16x32xf32, #tpu.memory_space<vmem>>, vector<1x16x32xf32>
    %499 = vector.shape_cast %498 : vector<1x16x32xf32> to vector<16x32xf32>
    %500 = vector.shape_cast %497 : vector<16x32xf32> to vector<1x16x32xf32>
    tpu.vector_store %arg18[%c0_306, %c0_307, %c0_308], %500 {strides = array<i32>} : memref<1x16x32xf32, #tpu.memory_space<vmem>>, vector<1x16x32xf32>,
    return
  }
  func.func @transform_0(%arg0: i32) -> (i32, i32, i32) {
    %c0_i32 = arith.constant 0 : i32
    %c0_i32_0 = arith.constant 0 : i32
    %c0_i32_1 = arith.constant 0 : i32
    return %arg0, %c0_i32, %c0_i32_0 : i32, i32, i32
  }
  func.func @transform_1(%arg0: i32) -> (i32, i32, i32, i32) {
    %c0_i32 = arith.constant 0 : i32
    %c0_i32_0 = arith.constant 0 : i32
    %c0_i32_1 = arith.constant 0 : i32
    %c0_i32_2 = arith.constant 0 : i32
    return %arg0, %c0_i32, %c0_i32_0, %c0_i32_1 : i32, i32, i32, i32
  }
  func.func @transform_2(%arg0: i32) -> (i32, i32) {
    %c0_i32 = arith.constant 0 : i32
    %c0_i32_0 = arith.constant 0 : i32
    %c0_i32_1 = arith.constant 0 : i32
    return %c0_i32, %c0_i32_0 : i32, i32
  }
  func.func @transform_3(%arg0: i32) -> (i32, i32) {
    %c0_i32 = arith.constant 0 : i32
    %c0_i32_0 = arith.constant 0 : i32
    %c0_i32_1 = arith.constant 0 : i32
    return %c0_i32, %c0_i32_0 : i32, i32
  }
  func.func @transform_4(%arg0: i32) -> (i32, i32) {
    %c0_i32 = arith.constant 0 : i32
    %c0_i32_0 = arith.constant 0 : i32
    %c0_i32_1 = arith.constant 0 : i32
    return %c0_i32, %c0_i32_0 : i32, i32
  }
  func.func @transform_5(%arg0: i32) -> (i32, i32) {
    %c0_i32 = arith.constant 0 : i32
    %c0_i32_0 = arith.constant 0 : i32
    %c0_i32_1 = arith.constant 0 : i32
    return %c0_i32, %c0_i32_0 : i32, i32
  }
  func.func @transform_6(%arg0: i32) -> (i32, i32, i32) {
    %c0_i32 = arith.constant 0 : i32
    %c0_i32_0 = arith.constant 0 : i32
    %c0_i32_1 = arith.constant 0 : i32
    %c0_i32_2 = arith.constant 0 : i32
    return %c0_i32, %c0_i32_0, %c0_i32_1 : i32, i32, i32
  }
  func.func @transform_7(%arg0: i32) -> (i32, i32, i32) {
    %c0_i32 = arith.constant 0 : i32
    %c0_i32_0 = arith.constant 0 : i32
    %c0_i32_1 = arith.constant 0 : i32
    %c0_i32_2 = arith.constant 0 : i32
    return %c0_i32, %c0_i32_0, %c0_i32_1 : i32, i32, i32
  }
  func.func @transform_8(%arg0: i32) -> (i32, i32, i32) {
    %c0_i32 = arith.constant 0 : i32
    %c0_i32_0 = arith.constant 0 : i32
    %c0_i32_1 = arith.constant 0 : i32
    %c0_i32_2 = arith.constant 0 : i32
    return %c0_i32, %c0_i32_0, %c0_i32_1 : i32, i32, i32
  }
  func.func @transform_9(%arg0: i32) -> (i32, i32, i32) {
    %c0_i32 = arith.constant 0 : i32
    %c0_i32_0 = arith.constant 0 : i32
    %c0_i32_1 = arith.constant 0 : i32
    %c0_i32_2 = arith.constant 0 : i32
    return %c0_i32, %c0_i32_0, %c0_i32_1 : i32, i32, i32
  }
  func.func @transform_10(%arg0: i32) -> (i32, i32, i32) {
    %c0_i32 = arith.constant 0 : i32
    %c0_i32_0 = arith.constant 0 : i32
    %c0_i32_1 = arith.constant 0 : i32
    %c0_i32_2 = arith.constant 0 : i32
    return %c0_i32, %c0_i32_0, %c0_i32_1 : i32, i32, i32
  }
  func.func @transform_11(%arg0: i32) -> (i32, i32, i32) {
    %c0_i32 = arith.constant 0 : i32
    %c0_i32_0 = arith.constant 0 : i32
    %c0_i32_1 = arith.constant 0 : i32
    %c0_i32_2 = arith.constant 0 : i32
    return %c0_i32, %c0_i32_0, %c0_i32_1 : i32, i32, i32
  }
  func.func @transform_12(%arg0: i32) -> (i32, i32, i32) {
    %c0_i32 = arith.constant 0 : i32
    %c0_i32_0 = arith.constant 0 : i32
    %c0_i32_1 = arith.constant 0 : i32
    %c0_i32_2 = arith.constant 0 : i32
    return %c0_i32, %c0_i32_0, %c0_i32_1 : i32, i32, i32
  }
  func.func @transform_13(%arg0: i32) -> (i32, i32, i32) {
    %c0_i32 = arith.constant 0 : i32
    %c0_i32_0 = arith.constant 0 : i32
    %c0_i32_1 = arith.constant 0 : i32
    %c0_i32_2 = arith.constant 0 : i32
    return %c0_i32, %c0_i32_0, %c0_i32_1 : i32, i32, i32
  }
  func.func @transform_14(%arg0: i32) -> (i32, i32) {
    %c0_i32 = arith.constant 0 : i32
    %c0_i32_0 = arith.constant 0 : i32
    %c0_i32_1 = arith.constant 0 : i32
    return %c0_i32, %c0_i32_0 : i32, i32
  }
  func.func @transform_15(%arg0: i32) -> (i32, i32) {
    %c0_i32 = arith.constant 0 : i32
    %c0_i32_0 = arith.constant 0 : i32
    %c0_i32_1 = arith.constant 0 : i32
    return %c0_i32, %c0_i32_0 : i32, i32
  }
  func.func @transform_16(%arg0: i32) -> (i32, i32) {
    %c0_i32 = arith.constant 0 : i32
    %c0_i32_0 = arith.constant 0 : i32
    %c0_i32_1 = arith.constant 0 : i32
    return %c0_i32, %c0_i32_0 : i32, i32
  }
  func.func @transform_17(%arg0: i32) -> (i32, i32, i32) {
    %c0_i32 = arith.constant 0 : i32
    %c0_i32_0 = arith.constant 0 : i32
    %c0_i32_1 = arith.constant 0 : i32
    return %arg0, %c0_i32, %c0_i32_0 : i32, i32, i32
  }
}

</mosaic_0001>

<bundles_post_ra>
// kernel: tpu_custom_call.1
= control target key start
LH: loop header
LB: loop body
LE: loop exit
PB: predicated region body
PF: predicated region fallthrough
CT: control target
= control target key end

     0   :  { %s7593_s0 = inlined_call_operand.hbm [shape: f32[2,16,32], index: 0, kind: input, shape index: {}]   ;;  %s7594_s1 = inlined_call_operand.hbm [shape: f32[2,2,16,16], index: 1, kind: input, shape index: {}]   ;;  %s7595_s2 = inlined_call_operand.hbm [shape: f32[32,32], index: 2, kind: input, shape index: {}]   ;;  %s7596_s3 = inlined_call_operand.hbm [shape: f32[16,32], index: 3, kind: input, shape index: {}]   ;;  %s7597_s4 = inlined_call_operand.hbm [shape: f32[16,32], index: 4, kind: input, shape index: {}]   ;;  %s7598_s5 = inlined_call_operand.hbm [shape: f32[1,32], index: 5, kind: input, shape index: {}]   ;;  %s7599_s6 = inlined_call_operand.hbm [shape: f32[8,32,32], index: 6, kind: input, shape index: {}]   ;;  %s7600_s7 = inlined_call_operand.hbm [shape: f32[8,1,32], index: 7, kind: input, shape index: {}]   ;;  %s7601_s8 = inlined_call_operand.hbm [shape: f32[8,1,32], index: 8, kind: input, shape index: {}]   ;;  %s7602_s9 = inlined_call_operand.hbm [shape: f32[8,1,32], index: 9, kind: input, shape index: {}]   ;;  %s7603_s10 = inlined_call_operand.hbm [shape: f32[8,96,32], index: 10, kind: input, shape index: {}]   ;;  %s7604_s11 = inlined_call_operand.hbm [shape: f32[8,1,16], index: 11, kind: input, shape index: {}]   ;;  %s7605_s12 = inlined_call_operand.hbm [shape: f32[8,16,32], index: 12, kind: input, shape index: {}]   ;;  %s7606_s13 = inlined_call_operand.hbm [shape: f32[8,1,32], index: 13, kind: input, shape index: {}]   ;;  %s7607_s14 = inlined_call_operand.hbm [shape: f32[32,32], index: 14, kind: input, shape index: {}]   ;;  %s7608_s15 = inlined_call_operand.hbm [shape: f32[32,32], index: 15, kind: input, shape index: {}]   ;;  %s7609_s16 = inlined_call_operand.hbm [shape: f32[1,32], index: 16, kind: input, shape index: {}]   ;;  %s7610_s17 = inlined_call_operand.hbm [shape: f32[2,16,32], index: 17, kind: output, shape index: {}]  }
   0x1   :  { %7632 = sst [smem:[#allocation47_spill]] %s7593_s0 }
   0x2   :  { %7633 = sst [smem:[#allocation48_spill]] %s7594_s1 }
   0x3   :  { %7634 = sst [smem:[#allocation49_spill]] %s7595_s2 }
   0x4   :  { %7635 = sst [smem:[#allocation50_spill]] %s7596_s3 }
   0x5   :  { %7636 = sst [smem:[#allocation51_spill]] %s7597_s4 }
   0x6   :  { %7637 = sst [smem:[#allocation52_spill]] %s7598_s5 }
   0x7   :  { %7638 = sst [smem:[#allocation53_spill]] %s7599_s6 }
   0x8   :  { %7639 = sst [smem:[#allocation54_spill]] %s7600_s7 }
   0x9   :  { %7640 = sst [smem:[#allocation55_spill]] %s7601_s8 }
   0xa   :  { %7641 = sst [smem:[#allocation56_spill]] %s7602_s9 }
   0xb   :  { %7642 = sst [smem:[#allocation57_spill]] %s7610_s17 }
   0xc   :  { %22 = vsyncpa [#allocation3], 0 }
   0xd   :  { %24 = vsyncpa [#allocation3 + $0x1], 0 }
   0xe   :  { %25 = vsyncpa [#allocation6], 0 }
   0xf   :  { %27 = vsyncpa [#allocation6 + $0x1], 0 }
  0x10   :  { %28 = vsyncpa [#allocation9], 0 }
  0x11   :  { %29 = vsyncpa [#allocation12], 0 }
  0x12   :  { %30 = vsyncpa [#allocation15], 0 }
  0x13   :  { %31 = vsyncpa [#allocation18], 0 }
  0x14   :  { %32 = vsyncpa [#allocation21], 0 }
  0x15   :  { %33 = vsyncpa [#allocation24], 0 }
  0x16   :  { %34 = vsyncpa [#allocation27], 0 }
  0x17   :  { %35 = vsyncpa [#allocation4], 0 }
  0x18   :  { %37 = vsyncpa [#allocation4 + $0x1], 0  ;;  %s6640_s24 = smov 0   ;;  %s6642_s25 = smov 0  }
  0x19   :  { %s6644_s26 = smov 0   ;;  %s6646_s27 = smov 0  }
  0x1a LB: > { %7643 = sst [smem:[#allocation41_spill]] %s6509_s24  ;;  %s6523_s28 = smov [#allocation7]   ;;  %s6521_s27 = sphi %s6646_s27, %s7053_s27   ;;  %s6517_s26 = sphi %s6644_s26, %s7707_s26   ;;  %s6513_s25 = sphi %s6642_s25, %s7704_s25   ;;  %s6509_s24 = sphi %s6640_s24, %s7706_s24  }
  0x1b   : > { %7644 = sst [smem:[#allocation42_spill]] %s6513_s25  ;;  %s453_s29 = sshll.u32 %s6523_s28, 4  ;;  %s6666_s29 = int_to_ptr.vmem [resolvable:$true] %s453_s29 }
  0x1c   : > { %7645 = sst [smem:[#allocation43_spill]] %s6517_s26  ;;  %s6661_s0 = sadd.s32 4294967295, %s6521_s27  }
  0x1d   : > { %7646 = sst [smem:[#allocation44_spill]] %s6521_s27  ;;  %p4545_p0 = scmp.ge.s32.totalorder %s6521_s27, 1 }
  0x1e   : > { %7647 = sst [smem:[#allocation45_spill]] %s6661_s0  ;;  %p7622_p1 = scmp.eq.s32.totalorder %s6661_s0, 0 }
  0x1f   : > { %p441_p2 = scmp.lt.s32.totalorder %s6521_s27, 3  ;;  %s6524_s18 = smov [#allocation8]  }
  0x20   : > { %s466_s19 = sshll.u32 %s6524_s18, 4  ;;  %s6525_s20 = smov [#allocation11]   ;;  %s6681_s19 = int_to_ptr.vmem [resolvable:$true] %s466_s19 }
  0x21   : > { %p6668_p3 = pnand %p4545_p0, %p441_p2  ;;  %s493_s21 = sshll.u32 %s6525_s20, 4  ;;  %s6683_s21 = int_to_ptr.vmem [resolvable:$true] %s493_s21 }
  0x22   : > { %s7651_s2 = sld [smem:[#allocation49_spill]] }
  0x23   : > { %s7648_s30 = scalar_select %p6668_p3, 1, 0 }
  0x24   : > { %p5730_p5 = pneg %p6668_p3 }
  0x25   : > { %7649 = sst [smem:[#allocation46_spill]] %s7648_s30 }
  0x26   : > { %p6677_p6 = pnand %p5730_p5, %p7622_p1 }
  0x28   : > { %s5939_s28 = scalar_lea.hbm %s7651_s2, 512  ;;  %p6693_p8 = pneg %p6677_p6 }
  0x29   : > { %p5940_p7 = scmp.ne.s32.totalorder %s7651_s2, %s5939_s28  ;;  %p5946_p11 = scmp.lt.u32.totalorder %s5939_s28, %s7651_s2 }
  0x2b   : > { %p5942_p9 = pnand %p6693_p8, %p5940_p7 }
  0x2d   : > { %p5943_p10 = pneg %p5942_p9 }
  0x2f   : > { %p5948_p12 = pnand %p5946_p11, %p5943_p10 }
  0x31   : > { %5951 = shalt.err (!%p5948_p12)
}
  0x32   : > { %s5952_s17 = scalar_lea.vmem %s6666_s29, 512  ;;  %p5960_p5 = scmp.lt.s32.totalorder %s6666_s29, %s6666_s29 }
  0x33   : > { %p5953_p13 = scmp.ne.s32.totalorder %s6666_s29, %s5952_s17  ;;  %p5961_p4 = scmp.lt.s32.totalorder %s5952_s17, %s5952_s17 }
  0x35   : > { %p5955_p0 = pnand %p5953_p13, %p6693_p8  ;;  %p5962_p7 = por %p5961_p4, %p5960_p5 }
  0x37   : > { %p5956_p2 = pneg %p5955_p0 }
  0x39   : > { %p5963_p9 = pnand %p5962_p7, %p5956_p2 }
  0x3b   : > { %5966 = shalt.err (!%p5963_p9)
}
  0x3c   : > { %s7624_s30 = smov 128   ;;  %s7626_s0 = smov 8  }
  0x3d   : > { %5733 = dma.hbm_to_vmem [thread:$0]  (!%p6677_p6), %s7651_s2, 512, %s6666_s29, [#allocation6], %s7624_s30, %s7624_s30, %s7626_s0  }
  0x3e   : > { %s7653_s3 = sld [smem:[#allocation50_spill]] }
  0x44   : > { %s5967_s17 = scalar_lea.hbm %s7653_s3, 256 }
  0x45   : > { %p5968_p4 = scmp.ne.s32.totalorder %s7653_s3, %s5967_s17  ;;  %p5974_p12 = scmp.lt.u32.totalorder %s5967_s17, %s7653_s3 }
  0x47   : > { %p5970_p10 = pnand %p5968_p4, %p6693_p8 }
  0x49   : > { %p5971_p11 = pneg %p5970_p10 }
  0x4b   : > { %p5976_p13 = pnand %p5974_p12, %p5971_p11 }
  0x4d   : > { %5979 = shalt.err (!%p5976_p13)
}
  0x4e   : > { %s5980_s29 = scalar_lea.vmem %s6681_s19, 256  ;;  %p5988_p7 = scmp.lt.s32.totalorder %s6681_s19, %s6681_s19 }
  0x4f   : > { %p5981_p0 = scmp.ne.s32.totalorder %s6681_s19, %s5980_s29  ;;  %p5989_p9 = scmp.lt.s32.totalorder %s5980_s29, %s5980_s29 }
  0x51   : > { %p5983_p2 = pnand %p5981_p0, %p6693_p8  ;;  %p5990_p4 = por %p5989_p9, %p5988_p7 }
  0x53   : > { %p5984_p5 = pneg %p5983_p2 }
  0x55   : > { %p5991_p10 = pnand %p5990_p4, %p5984_p5 }
  0x57   : > { %5994 = shalt.err (!%p5991_p10)
}
  0x58   : > { %5736 = dma.hbm_to_vmem [thread:$0]  (!%p6677_p6), %s7653_s3, 256, %s6681_s19, [#allocation9], %s7624_s30, %s7624_s30, %s7626_s0  }
  0x59   : > { %s7654_s5 = sld [smem:[#allocation52_spill]] }
  0x5f   : > { %s5995_s22 = scalar_lea.hbm %s7654_s5, 16 }
  0x60   : > { %p5996_p11 = scmp.ne.s32.totalorder %s7654_s5, %s5995_s22  ;;  %p6002_p0 = scmp.lt.u32.totalorder %s5995_s22, %s7654_s5 }
  0x62   : > { %p5998_p12 = pnand %p5996_p11, %p6693_p8 }
  0x64   : > { %p5999_p13 = pneg %p5998_p12 }
  0x66   : > { %p6004_p2 = pnand %p6002_p0, %p5999_p13 }
  0x68   : > { %6007 = shalt.err (!%p6004_p2)
}
  0x69   : > { %s6008_s19 = scalar_lea.vmem %s6683_s21, 16  ;;  %s6015_s29 = scalar_lea.vmem %s6683_s21, 32 }
  0x6a   : > { %p6009_p5 = scmp.ne.s32.totalorder %s6683_s21, %s6008_s19  ;;  %p6016_p4 = scmp.lt.s32.totalorder %s6683_s21, %s6683_s21 }
  0x6b   : > { %p6017_p10 = scmp.lt.s32.totalorder %s6015_s29, %s6008_s19 }
  0x6c   : > { %p6011_p7 = pnand %p6009_p5, %p6693_p8 }
  0x6d   : > { %p6018_p11 = por %p6017_p10, %p6016_p4 }
  0x6e   : > { %p6012_p9 = pneg %p6011_p7 }
  0x70   : > { %p6019_p12 = pnand %p6018_p11, %p6012_p9 }
  0x72   : > { %6022 = shalt.err (!%p6019_p12)
}
  0x73   : > { %5742 = dma.hbm_to_vmem [thread:$0]  (!%p6677_p6), %s7654_s5, 16, %s6683_s21, [#allocation12]  }
  0x74   : > { %s6528_s26 = smov [#allocation14]   ;;  %s7655_s7 = sld [smem:[#allocation54_spill]] }
  0x75   : > { %s516_s27 = sshll.u32 %s6528_s26, 4  ;;  %s517_s27 = int_to_ptr.vmem [resolvable:$true] %s516_s27 }
  0x7a   : > { %s6023_s28 = scalar_lea.hbm %s7655_s7, 128 }
  0x7b   : > { %p6024_p13 = scmp.ne.s32.totalorder %s7655_s7, %s6023_s28  ;;  %p6030_p5 = scmp.lt.u32.totalorder %s6023_s28, %s7655_s7 }
  0x7d   : > { %p6026_p0 = pnand %p6024_p13, %p6693_p8 }
  0x7f   : > { %p6027_p2 = pneg %p6026_p0 }
  0x81   : > { %p6032_p7 = pnand %p6030_p5, %p6027_p2 }
  0x83   : > { %6035 = shalt.err (!%p6032_p7)
}
  0x84   : > { %s6036_s21 = scalar_lea.vmem %s517_s27, 128  ;;  %p6044_p11 = scmp.lt.s32.totalorder %s517_s27, %s517_s27 }
  0x85   : > { %p6037_p9 = scmp.ne.s32.totalorder %s517_s27, %s6036_s21  ;;  %p6045_p12 = scmp.lt.s32.totalorder %s6036_s21, %s6036_s21 }
  0x87   : > { %p6039_p4 = pnand %p6037_p9, %p6693_p8  ;;  %p6046_p1 = por %p6045_p12, %p6044_p11 }
  0x89   : > { %p6040_p10 = pneg %p6039_p4 }
  0x8b   : > { %p6047_p3 = pnand %p6046_p1, %p6040_p10 }
  0x8d   : > { %6050 = shalt.err (!%p6047_p3)
}
  0x8e   : > { %s7628_s24 = smov 16   ;;  %s7629_s25 = smov 1  }
  0x8f   : > { %5748 = dma.hbm_to_vmem [thread:$0]  (!%p6677_p6), %s7655_s7, 128, %s517_s27, [#allocation15], %s7628_s24, %s7628_s24, %s7629_s25  }
  0x90   : > { %s6531_s23 = smov [#allocation17]   ;;  %s6532_s20 = smov [#allocation20]  }
  0x91   : > { %s542_s28 = sshll.u32 %s6531_s23, 4  ;;  %s568_s17 = sshll.u32 %s6532_s20, 4  ;;  %s543_s28 = int_to_ptr.vmem [resolvable:$true] %s542_s28  ;;  %s6788_s17 = int_to_ptr.vmem [resolvable:$true] %s568_s17 }
  0x92   : > { %s7656_s9 = sld [smem:[#allocation56_spill]] }
  0x98   : > { %s6051_s21 = scalar_lea.hbm %s7656_s9, 128 }
  0x99   : > { %p6052_p1 = scmp.ne.s32.totalorder %s7656_s9, %s6051_s21  ;;  %p6058_p0 = scmp.lt.u32.totalorder %s6051_s21, %s7656_s9 }
  0x9b   : > { %p6054_p3 = pnand %p6052_p1, %p6693_p8 }
  0x9d   : > { %p6055_p13 = pneg %p6054_p3 }
  0x9f   : > { %p6060_p2 = pnand %p6058_p0, %p6055_p13 }
  0xa1   : > { %6063 = shalt.err (!%p6060_p2)
}
  0xa2   : > { %s6064_s22 = scalar_lea.vmem %s543_s28, 128  ;;  %p6072_p4 = scmp.lt.s32.totalorder %s543_s28, %s543_s28 }
  0xa3   : > { %p6065_p5 = scmp.ne.s32.totalorder %s543_s28, %s6064_s22  ;;  %p6073_p10 = scmp.lt.s32.totalorder %s6064_s22, %s6064_s22 }
  0xa5   : > { %p6067_p7 = pnand %p6065_p5, %p6693_p8  ;;  %p6074_p11 = por %p6073_p10, %p6072_p4 }
  0xa7   : > { %p6068_p9 = pneg %p6067_p7 }
  0xa9   : > { %p6075_p12 = pnand %p6074_p11, %p6068_p9 }
  0xab   : > { %6078 = shalt.err (!%p6075_p12)
}
  0xac   : > { %5754 = dma.hbm_to_vmem [thread:$0]  (!%p6677_p6), %s7656_s9, 128, %s543_s28, [#allocation18], %s7628_s24, %s7628_s24, %s7629_s25  }
  0xad   : > { %s6079_s19 = scalar_lea.hbm %s7604_s11, 128 }
  0xae   : > { %p6080_p1 = scmp.ne.s32.totalorder %s7604_s11, %s6079_s19  ;;  %p6086_p0 = scmp.lt.u32.totalorder %s6079_s19, %s7604_s11 }
  0xb0   : > { %p6082_p3 = pnand %p6080_p1, %p6693_p8 }
  0xb2   : > { %p6083_p13 = pneg %p6082_p3 }
  0xb4   : > { %p6088_p2 = pnand %p6086_p0, %p6083_p13 }
  0xb6   : > { %6091 = shalt.err (!%p6088_p2)
}
  0xb7   : > { %s6092_s28 = scalar_lea.vmem %s6788_s17, 128  ;;  %p6100_p4 = scmp.lt.s32.totalorder %s6788_s17, %s6788_s17 }
  0xb8   : > { %p6093_p5 = scmp.ne.s32.totalorder %s6788_s17, %s6092_s28  ;;  %p6101_p10 = scmp.lt.s32.totalorder %s6092_s28, %s6092_s28 }
  0xba   : > { %p6095_p7 = pnand %p6093_p5, %p6693_p8  ;;  %p6102_p11 = por %p6101_p10, %p6100_p4 }
  0xbc   : > { %p6096_p9 = pneg %p6095_p7 }
  0xbe   : > { %p6103_p12 = pnand %p6102_p11, %p6096_p9 }
  0xc0   : > { %6106 = shalt.err (!%p6103_p12)
}
  0xc1   : > { %5760 = dma.hbm_to_vmem [thread:$0]  (!%p6677_p6), %s7604_s11, 128, %s6788_s17, [#allocation21], %s7628_s24, %s7628_s24, %s7629_s25  }
  0xc2   : > { %s6533_s0 = smov [#allocation23]   ;;  %s6534_s20 = smov [#allocation26]  }
  0xc3   : > { %s594_s23 = sshll.u32 %s6533_s0, 4  ;;  %s620_s19 = sshll.u32 %s6534_s20, 4  ;;  %s595_s23 = int_to_ptr.vmem [resolvable:$true] %s594_s23  ;;  %s6837_s19 = int_to_ptr.vmem [resolvable:$true] %s620_s19 }
  0xc4   : > { %s6107_s26 = scalar_lea.hbm %s7606_s13, 128 }
  0xc5   : > { %p6108_p1 = scmp.ne.s32.totalorder %s7606_s13, %s6107_s26  ;;  %p6114_p0 = scmp.lt.u32.totalorder %s6107_s26, %s7606_s13 }
  0xc7   : > { %p6110_p3 = pnand %p6108_p1, %p6693_p8 }
  0xc9   : > { %p6111_p13 = pneg %p6110_p3 }
  0xcb   : > { %p6116_p2 = pnand %p6114_p0, %p6111_p13 }
  0xcd   : > { %6119 = shalt.err (!%p6116_p2)
}
  0xce   : > { %s6120_s30 = scalar_lea.vmem %s595_s23, 128  ;;  %p6128_p4 = scmp.lt.s32.totalorder %s595_s23, %s595_s23 }
  0xcf   : > { %p6121_p5 = scmp.ne.s32.totalorder %s595_s23, %s6120_s30  ;;  %p6129_p10 = scmp.lt.s32.totalorder %s6120_s30, %s6120_s30 }
  0xd1   : > { %p6123_p7 = pnand %p6121_p5, %p6693_p8  ;;  %p6130_p11 = por %p6129_p10, %p6128_p4 }
  0xd3   : > { %p6124_p9 = pneg %p6123_p7 }
  0xd5   : > { %p6131_p12 = pnand %p6130_p11, %p6124_p9 }
  0xd7   : > { %6134 = shalt.err (!%p6131_p12)
}
  0xd8   : > { %5766 = dma.hbm_to_vmem [thread:$0]  (!%p6677_p6), %s7606_s13, 128, %s595_s23, [#allocation24], %s7628_s24, %s7628_s24, %s7629_s25  }
  0xd9   : > { %s6135_s26 = scalar_lea.hbm %s7608_s15, 512 }
  0xda   : > { %p6136_p1 = scmp.ne.s32.totalorder %s7608_s15, %s6135_s26  ;;  %p6142_p0 = scmp.lt.u32.totalorder %s6135_s26, %s7608_s15 }
  0xdc   : > { %p6138_p3 = pnand %p6136_p1, %p6693_p8 }
  0xde   : > { %p6139_p13 = pneg %p6138_p3 }
  0xe0   : > { %p6144_p2 = pnand %p6142_p0, %p6139_p13 }
  0xe2   : > { %6147 = shalt.err (!%p6144_p2)
}
  0xe3   : > { %s6148_s23 = scalar_lea.vmem %s6837_s19, 512  ;;  %p6156_p4 = scmp.lt.s32.totalorder %s6837_s19, %s6837_s19 }
  0xe4   : > { %p6149_p5 = scmp.ne.s32.totalorder %s6837_s19, %s6148_s23  ;;  %p6157_p10 = scmp.lt.s32.totalorder %s6148_s23, %s6148_s23 }
  0xe6   : > { %p6151_p7 = pnand %p6149_p5, %p6693_p8  ;;  %p6158_p11 = por %p6157_p10, %p6156_p4 }
  0xe8   : > { %p6152_p9 = pneg %p6151_p7 }
  0xea   : > { %p6159_p12 = pnand %p6158_p11, %p6152_p9 }
  0xec   : > { %6162 = shalt.err (!%p6159_p12)
}
  0xed   : > { %s7657_s30 = smov 8   ;;  %s7658_s0 = smov 128  }
  0xee   : > { %5772 = dma.hbm_to_vmem [thread:$0]  (!%p6677_p6), %s7608_s15, 512, %s6837_s19, [#allocation27], %s7658_s0, %s7658_s0, %s7657_s30  }
  0xef   : > { %s6535_s21 = smov [#allocation10]   ;;  %s6536_s27 = smov [#allocation13]  }
  0xf0   : > { %s479_s26 = sshll.u32 %s6535_s21, 4  ;;  %s503_s28 = sshll.u32 %s6536_s27, 4  ;;  %s480_s26 = int_to_ptr.vmem [resolvable:$true] %s479_s26  ;;  %s6886_s28 = int_to_ptr.vmem [resolvable:$true] %s503_s28 }
  0xf1   : > { %s7659_s4 = sld [smem:[#allocation51_spill]] }
  0xf7   : > { %s6163_s23 = scalar_lea.hbm %s7659_s4, 256 }
  0xf8   : > { %p6164_p1 = scmp.ne.s32.totalorder %s7659_s4, %s6163_s23  ;;  %p6170_p0 = scmp.lt.u32.totalorder %s6163_s23, %s7659_s4 }
  0xfa   : > { %p6166_p3 = pnand %p6164_p1, %p6693_p8 }
  0xfc   : > { %p6167_p13 = pneg %p6166_p3 }
  0xfe   : > { %p6172_p2 = pnand %p6170_p0, %p6167_p13 }
 0x100   : > { %6175 = shalt.err (!%p6172_p2)
}
 0x101   : > { %s6176_s29 = scalar_lea.vmem %s480_s26, 256  ;;  %p6184_p4 = scmp.lt.s32.totalorder %s480_s26, %s480_s26 }
 0x102   : > { %p6177_p5 = scmp.ne.s32.totalorder %s480_s26, %s6176_s29  ;;  %p6185_p10 = scmp.lt.s32.totalorder %s6176_s29, %s6176_s29 }
 0x104   : > { %p6179_p7 = pnand %p6177_p5, %p6693_p8  ;;  %p6186_p11 = por %p6185_p10, %p6184_p4 }
 0x106   : > { %p6180_p9 = pneg %p6179_p7 }
 0x108   : > { %p6187_p12 = pnand %p6186_p11, %p6180_p9 }
 0x10a   : > { %6190 = shalt.err (!%p6187_p12)
}
 0x10b   : > { %5739 = dma.hbm_to_vmem [thread:$0]  (!%p6677_p6), %s7659_s4, 256, %s480_s26, [#allocation9], %s7658_s0, %s7658_s0, %s7657_s30  }
 0x10c   : > { %s7660_s6 = sld [smem:[#allocation53_spill]] }
 0x112   : > { %s6191_s22 = scalar_lea.hbm %s7660_s6, 4096 }
 0x113   : > { %p6192_p1 = scmp.ne.s32.totalorder %s7660_s6, %s6191_s22  ;;  %p6198_p0 = scmp.lt.u32.totalorder %s6191_s22, %s7660_s6 }
 0x115   : > { %p6194_p3 = pnand %p6192_p1, %p6693_p8 }
 0x117   : > { %p6195_p13 = pneg %p6194_p3 }
 0x119   : > { %p6200_p2 = pnand %p6198_p0, %p6195_p13 }
 0x11b   : > { %6203 = shalt.err (!%p6200_p2)
}
 0x11c   : > { %s6204_s26 = scalar_lea.vmem %s6886_s28, 4096  ;;  %p6212_p4 = scmp.lt.s32.totalorder %s6886_s28, %s6886_s28 }
 0x11d   : > { %p6205_p5 = scmp.ne.s32.totalorder %s6886_s28, %s6204_s26  ;;  %p6213_p10 = scmp.lt.s32.totalorder %s6204_s26, %s6204_s26 }
 0x11f   : > { %p6207_p7 = pnand %p6205_p5, %p6693_p8  ;;  %p6214_p11 = por %p6213_p10, %p6212_p4 }
 0x121   : > { %p6208_p9 = pneg %p6207_p7 }
 0x123   : > { %p6215_p12 = pnand %p6214_p11, %p6208_p9 }
 0x125   : > { %6218 = shalt.err (!%p6215_p12)
}
 0x126   : > { %5745 = dma.hbm_to_vmem [thread:$0]  (!%p6677_p6), %s7660_s6, 4096, %s6886_s28, [#allocation12], %s7658_s0, %s7658_s0, %s7657_s30  }
 0x127   : > { %s6537_s25 = smov [#allocation16]   ;;  %s6538_s27 = smov [#allocation19]  }
 0x128   : > { %s529_s21 = sshll.u32 %s6537_s25, 4  ;;  %s555_s22 = sshll.u32 %s6538_s27, 4  ;;  %s530_s21 = int_to_ptr.vmem [resolvable:$true] %s529_s21  ;;  %s6935_s22 = int_to_ptr.vmem [resolvable:$true] %s555_s22 }
 0x129   : > { %s7661_s8 = sld [smem:[#allocation55_spill]] }
 0x12f   : > { %s6219_s20 = scalar_lea.hbm %s7661_s8, 128 }
 0x130   : > { %p6220_p1 = scmp.ne.s32.totalorder %s7661_s8, %s6219_s20  ;;  %p6226_p0 = scmp.lt.u32.totalorder %s6219_s20, %s7661_s8 }
 0x132   : > { %p6222_p3 = pnand %p6220_p1, %p6693_p8 }
 0x134   : > { %p6223_p13 = pneg %p6222_p3 }
 0x136   : > { %p6228_p2 = pnand %p6226_p0, %p6223_p13 }
 0x138   : > { %6231 = shalt.err (!%p6228_p2)
}
 0x139   : > { %s6232_s24 = scalar_lea.vmem %s530_s21, 128  ;;  %p6240_p4 = scmp.lt.s32.totalorder %s530_s21, %s530_s21 }
 0x13a   : > { %p6233_p5 = scmp.ne.s32.totalorder %s530_s21, %s6232_s24  ;;  %p6241_p10 = scmp.lt.s32.totalorder %s6232_s24, %s6232_s24 }
 0x13c   : > { %p6235_p7 = pnand %p6233_p5, %p6693_p8  ;;  %p6242_p11 = por %p6241_p10, %p6240_p4 }
 0x13e   : > { %p6236_p9 = pneg %p6235_p7 }
 0x140   : > { %p6243_p12 = pnand %p6242_p11, %p6236_p9 }
 0x142   : > { %6246 = shalt.err (!%p6243_p12)
}
 0x143   : > { %s7662_s25 = smov 1   ;;  %s7663_s27 = smov 16  }
 0x144   : > { %5751 = dma.hbm_to_vmem [thread:$0]  (!%p6677_p6), %s7661_s8, 128, %s530_s21, [#allocation15], %s7663_s27, %s7663_s27, %s7662_s25  }
 0x145   : > { %s6247_s26 = scalar_lea.hbm %s7603_s10, 12288 }
 0x146   : > { %p6248_p1 = scmp.ne.s32.totalorder %s7603_s10, %s6247_s26  ;;  %p6254_p0 = scmp.lt.u32.totalorder %s6247_s26, %s7603_s10 }
 0x148   : > { %p6250_p3 = pnand %p6248_p1, %p6693_p8 }
 0x14a   : > { %p6251_p13 = pneg %p6250_p3 }
 0x14c   : > { %p6256_p2 = pnand %p6254_p0, %p6251_p13 }
 0x14e   : > { %6259 = shalt.err (!%p6256_p2)
}
 0x14f   : > { %s6260_s21 = scalar_lea.vmem %s6935_s22, 12288  ;;  %p6268_p4 = scmp.lt.s32.totalorder %s6935_s22, %s6935_s22 }
 0x150   : > { %p6261_p5 = scmp.ne.s32.totalorder %s6935_s22, %s6260_s21  ;;  %p6269_p10 = scmp.lt.s32.totalorder %s6260_s21, %s6260_s21 }
 0x152   : > { %p6263_p7 = pnand %p6261_p5, %p6693_p8  ;;  %p6270_p11 = por %p6269_p10, %p6268_p4 }
 0x154   : > { %p6264_p9 = pneg %p6263_p7 }
 0x156   : > { %p6271_p12 = pnand %p6270_p11, %p6264_p9 }
 0x158   : > { %6274 = shalt.err (!%p6271_p12)
}
 0x159   : > { %5757 = dma.hbm_to_vmem [thread:$0]  (!%p6677_p6), %s7603_s10, 12288, %s6935_s22, [#allocation18], %s7658_s0, %s7658_s0, %s7657_s30  }
 0x15a   : > { %s6539_s27 = smov [#allocation22]   ;;  %s6540_s23 = smov [#allocation25]  }
 0x15b   : > { %s581_s17 = sshll.u32 %s6539_s27, 4  ;;  %s607_s20 = sshll.u32 %s6540_s23, 4  ;;  %s582_s17 = int_to_ptr.vmem [resolvable:$true] %s581_s17  ;;  %s6984_s20 = int_to_ptr.vmem [resolvable:$true] %s607_s20 }
 0x15c   : > { %s6275_s29 = scalar_lea.hbm %s7605_s12, 2048 }
 0x15d   : > { %p6276_p1 = scmp.ne.s32.totalorder %s7605_s12, %s6275_s29  ;;  %p6282_p0 = scmp.lt.u32.totalorder %s6275_s29, %s7605_s12 }
 0x15f   : > { %p6278_p3 = pnand %p6276_p1, %p6693_p8 }
 0x161   : > { %p6279_p13 = pneg %p6278_p3 }
 0x163   : > { %p6284_p2 = pnand %p6282_p0, %p6279_p13 }
 0x165   : > { %6287 = shalt.err (!%p6284_p2)
}
 0x166   : > { %s6288_s2 = scalar_lea.vmem %s582_s17, 2048  ;;  %p6296_p4 = scmp.lt.s32.totalorder %s582_s17, %s582_s17 }
 0x167   : > { %p6289_p5 = scmp.ne.s32.totalorder %s582_s17, %s6288_s2  ;;  %p6297_p10 = scmp.lt.s32.totalorder %s6288_s2, %s6288_s2 }
 0x169   : > { %p6291_p7 = pnand %p6289_p5, %p6693_p8  ;;  %p6298_p11 = por %p6297_p10, %p6296_p4 }
 0x16b   : > { %p6292_p9 = pneg %p6291_p7 }
 0x16d   : > { %p6299_p12 = pnand %p6298_p11, %p6292_p9 }
 0x16f   : > { %6302 = shalt.err (!%p6299_p12)
}
 0x170   : > { %5763 = dma.hbm_to_vmem [thread:$0]  (!%p6677_p6), %s7605_s12, 2048, %s582_s17, [#allocation21], %s7658_s0, %s7658_s0, %s7657_s30  }
 0x171   : > { %s6303_s26 = scalar_lea.hbm %s7607_s14, 512 }
 0x172   : > { %p6304_p1 = scmp.ne.s32.totalorder %s7607_s14, %s6303_s26  ;;  %p6310_p0 = scmp.lt.u32.totalorder %s6303_s26, %s7607_s14 }
 0x174   : > { %p6306_p3 = pnand %p6304_p1, %p6693_p8 }
 0x176   : > { %p6307_p13 = pneg %p6306_p3 }
 0x178   : > { %p6312_p2 = pnand %p6310_p0, %p6307_p13 }
 0x17a   : > { %6315 = shalt.err (!%p6312_p2)
}
 0x17b   : > { %s6316_s17 = scalar_lea.vmem %s6984_s20, 512  ;;  %p6324_p4 = scmp.lt.s32.totalorder %s6984_s20, %s6984_s20 }
 0x17c   : > { %p6317_p5 = scmp.ne.s32.totalorder %s6984_s20, %s6316_s17  ;;  %p6325_p10 = scmp.lt.s32.totalorder %s6316_s17, %s6316_s17 }
 0x17e   : > { %p6319_p7 = pnand %p6317_p5, %p6693_p8  ;;  %p6326_p11 = por %p6325_p10, %p6324_p4 }
 0x180   : > { %p6320_p9 = pneg %p6319_p7 }
 0x182   : > { %p6327_p12 = pnand %p6326_p11, %p6320_p9 }
 0x184   : > { %6330 = shalt.err (!%p6327_p12)
}
 0x185   : > { %5769 = dma.hbm_to_vmem [thread:$0]  (!%p6677_p6), %s7607_s14, 512, %s6984_s20, [#allocation24], %s7658_s0, %s7658_s0, %s7657_s30  }
 0x186   : > { %s6541_s25 = smov [#allocation28]   ;;  %s6331_s26 = scalar_lea.hbm %s7609_s16, 16 }
 0x187   : > { %s634_s27 = sshll.u32 %s6541_s25, 4  ;;  %p6332_p1 = scmp.ne.s32.totalorder %s7609_s16, %s6331_s26  ;;  %s635_s27 = int_to_ptr.vmem [resolvable:$true] %s634_s27 }
 0x188   : > { %p6338_p0 = scmp.lt.u32.totalorder %s6331_s26, %s7609_s16 }
 0x189   : > { %p6334_p3 = pnand %p6332_p1, %p6693_p8 }
 0x18b   : > { %p6335_p13 = pneg %p6334_p3 }
 0x18d   : > { %p6340_p2 = pnand %p6338_p0, %p6335_p13 }
 0x18f   : > { %6343 = shalt.err (!%p6340_p2)
}
 0x190   : > { %s6344_s20 = scalar_lea.vmem %s635_s27, 16  ;;  %s6351_s17 = scalar_lea.vmem %s635_s27, 32 }
 0x191   : > { %p6345_p5 = scmp.ne.s32.totalorder %s635_s27, %s6344_s20  ;;  %p6352_p4 = scmp.lt.s32.totalorder %s635_s27, %s635_s27 }
 0x192   : > { %p6353_p10 = scmp.lt.s32.totalorder %s6351_s17, %s6344_s20 }
 0x193   : > { %p6347_p7 = pnand %p6345_p5, %p6693_p8 }
 0x194   : > { %p6354_p11 = por %p6353_p10, %p6352_p4 }
 0x195   : > { %p6348_p9 = pneg %p6347_p7 }
 0x197   : > { %p6355_p12 = pnand %p6354_p11, %p6348_p9 }
 0x199   : > { %6358 = shalt.err (!%p6355_p12)
}
 0x19a   : > { %s7664_s25 = sld [smem:[#allocation44_spill]]  ;;  %s7665_s23 = sld [smem:[#allocation43_spill]] }
 0x19b   : > { %s7666_s19 = sld [smem:[#allocation42_spill]]  ;;  %s7667_s18 = sld [smem:[#allocation41_spill]] }
 0x19c   : > { %s7668_s26 = sld [smem:[#allocation45_spill]] }
 0x19d   : > { %5775 = dma.hbm_to_vmem [thread:$0]  (!%p6677_p6), %s7609_s16, 16, %s635_s27, [#allocation27]  }
 0x1a0   : > { %s4544_s29 = sadd.s32 4294967294, %s7664_s25   ;;  %s7053_s27 = sadd.s32 1, %s7664_s25  }
 0x1a1   : > { %s50_s1 = sadd.s32 1, %s7665_s23  ;;  %s47_s28 = ssub.s32 %s7664_s25, %s7053_s27 }
 0x1a2   : > { %p57_p8 = scmp.ne.s32.totalorder %s7665_s23, %s7666_s19  ;;  %p48_p1 = scmp.eq.s32.totalorder %s47_s28, 0 }
 0x1a3   : > { %p58_p3 = scmp.eq.s32.totalorder %s7664_s25, 0  ;;  %p63_p13 = scmp.ne.s32.totalorder %s7666_s19, %s7667_s18 }
 0x1a4   : > { %p428_p0 = scmp.eq.s32.totalorder %s7668_s26, 1  ;;  %p7669_p5 = scmp.eq.s32.totalorder %s7668_s26, 0 }
 0x1a5   : > { %s7065_s24 = scalar_select %p48_p1, %s7665_s23, %s50_s1  }
 0x1a6   : > { %p59_p2 = por %p58_p3, %p57_p8  ;;  %p7069_p7 = por %p7669_p5, %p63_p13 }
 0x1a7   : > { %p7073_p6 = por %p428_p0, %p57_p8  ;;  %p434_p9 = scmp.eq.s32.totalorder %s4544_s29, 1 }
 0x1a8   : > { %p5802_p4 = scmp.lt.s32.totalorder %s7664_s25, 2  ;;  %s7079_s17 = sand.u32 1, %s7665_s23  }
 0x1a9   : > { %s7671_s20 = scalar_select %p7073_p6, 1, 0 }
 0x1aa   : > { %p7081_p10 = por %p434_p9, %p63_p13  ;;  %s4562_s2 = sshll.u32 %s7079_s17, 4 }
 0x1ab   : > { %s4710_s19 = sshll.u32 %s7664_s25, 8  ;;  %s7673_s1 = sld [smem:[#allocation47_spill]] }
 0x1ac   : > { %s7672_s22 = scalar_select %p7081_p10, 1, 0 }
 0x1ad   : > { %s649_s29 = scalar_lea.vmem [#allocation2], %s4562_s2  ;;  %p7092_p11 = pnand %p5802_p4, %p59_p2 }
 0x1ae   : > { %s656_s23 = sshll.u32 %s649_s29, 4  ;;  %s646_s5 = scalar_lea.sflag [#allocation3], %s7079_s17  ;;  %s7096_s23 = int_to_ptr.vmem [resolvable:$true] %s656_s23 }
 0x1af   : > { %p6361_p8 = pneg %p7092_p11 }
 0x1b1   : > { %s7090_s28 = scalar_lea.hbm %s7673_s1, %s4710_s19  ;;  %s6364_s18 = scalar_lea.hbm %s7673_s1, 512 }
 0x1b2   : > { %s6359_s6 = scalar_lea.hbm %s7090_s28, 256  ;;  %p6365_p13 = scmp.lt.u32.totalorder %s7090_s28, %s7673_s1 }
 0x1b3   : > { %p6360_p12 = scmp.ne.s32.totalorder %s7090_s28, %s6359_s6  ;;  %p6366_p0 = scmp.lt.u32.totalorder %s6364_s18, %s6359_s6 }
 0x1b4   : > { %p6368_p5 = scmp.lt.u32.totalorder %s6359_s6, %s7090_s28 }
 0x1b5   : > { %p6362_p1 = pnand %p6361_p8, %p6360_p12  ;;  %p6367_p2 = por %p6366_p0, %p6365_p13 }
 0x1b7   : > { %p6363_p3 = pneg %p6362_p1  ;;  %p6369_p9 = por %p6368_p5, %p6367_p2 }
 0x1b9   : > { %p6370_p4 = pnand %p6369_p9, %p6363_p3 }
 0x1bb   : > { %6373 = shalt.err (!%p6370_p4)
}
 0x1bc   : > { %s6374_s4 = scalar_lea.vmem %s7096_s23, 256  ;;  %s6542_s2 = smov [#allocation2]  }
 0x1bd   : > { %p6375_p12 = scmp.ne.s32.totalorder %s7096_s23, %s6374_s4  ;;  %s6379_s19 = sshll.u32 %s6542_s2, 4  ;;  %s6380_s19 = int_to_ptr.vmem [resolvable:$false] %s6379_s19 }
 0x1be   : > { %s6381_s26 = scalar_lea.vmem %s6380_s19, 512  ;;  %p6382_p6 = scmp.lt.s32.totalorder %s7096_s23, %s6380_s19 }
 0x1bf   : > { %p6377_p1 = pnand %p6375_p12, %p6361_p8  ;;  %p6383_p13 = scmp.lt.s32.totalorder %s6381_s26, %s6374_s4 }
 0x1c1   : > { %p6378_p10 = pneg %p6377_p1  ;;  %p6384_p0 = por %p6383_p13, %p6382_p6 }
 0x1c3   : > { %p6385_p2 = pnand %p6384_p0, %p6378_p10 }
 0x1c5   : > { %6388 = shalt.err (!%p6385_p2)
}
 0x1c6   : > { %5779 = dma.hbm_to_vmem [thread:$0]  (!%p7092_p11), %s7090_s28, 256, %s7096_s23, %s646_s5, %s7658_s0, %s7658_s0, %s7657_s30  }
 0x1c7   : > { %s4565_s6 = sshll.u32 %s7079_s17, 5  ;;  %s4711_s18 = sshll.u32 %s7664_s25, 9 }
 0x1c8   : > { %s7675_s2 = sld [smem:[#allocation48_spill]]  ;;  %s670_s26 = scalar_lea.vmem [#allocation5], %s4565_s6 }
 0x1c9   : > { %s677_s1 = sshll.u32 %s670_s26, 4  ;;  %s7676_s7 = sand.u32 1, %s7664_s25   ;;  %s7137_s1 = int_to_ptr.vmem [resolvable:$true] %s677_s1 }
 0x1ca   : > { %s7141_s8 = scalar_lea.sflag [#allocation6], %s7676_s7 }
 0x1ce   : > { %s7135_s19 = scalar_lea.hbm %s7675_s2, %s4711_s18  ;;  %s6394_s28 = scalar_lea.hbm %s7675_s2, 1024 }
 0x1cf   : > { %s6389_s9 = scalar_lea.hbm %s7135_s19, 512  ;;  %p6395_p5 = scmp.lt.u32.totalorder %s7135_s19, %s7675_s2 }
 0x1d0   : > { %p6390_p6 = scmp.ne.s32.totalorder %s7135_s19, %s6389_s9  ;;  %p6396_p9 = scmp.lt.u32.totalorder %s6394_s28, %s6389_s9 }
 0x1d1   : > { %p6398_p12 = scmp.lt.u32.totalorder %s6389_s9, %s7135_s19 }
 0x1d2   : > { %p6392_p10 = pnand %p6390_p6, %p6361_p8  ;;  %p6397_p4 = por %p6396_p9, %p6395_p5 }
 0x1d4   : > { %p6393_p3 = pneg %p6392_p10  ;;  %p6399_p1 = por %p6398_p12, %p6397_p4 }
 0x1d6   : > { %p6400_p13 = pnand %p6399_p1, %p6393_p3 }
 0x1d8   : > { %6403 = shalt.err (!%p6400_p13)
}
 0x1d9   : > { %s6404_s7 = scalar_lea.vmem %s7137_s1, 512  ;;  %s6543_s25 = smov [#allocation5]  }
 0x1da   : > { %p6405_p0 = scmp.ne.s32.totalorder %s7137_s1, %s6404_s7  ;;  %s6409_s6 = sshll.u32 %s6543_s25, 4  ;;  %s6410_s6 = int_to_ptr.vmem [resolvable:$false] %s6409_s6 }
 0x1db   : > { %s6411_s4 = scalar_lea.vmem %s6410_s6, 1024  ;;  %p6412_p10 = scmp.lt.s32.totalorder %s7137_s1, %s6410_s6 }
 0x1dc   : > { %p6407_p2 = pnand %p6405_p0, %p6361_p8  ;;  %p6413_p5 = scmp.lt.s32.totalorder %s6411_s4, %s6404_s7 }
 0x1de   : > { %p6408_p6 = pneg %p6407_p2  ;;  %p6414_p9 = por %p6413_p5, %p6412_p10 }
 0x1e0   : > { %p6415_p4 = pnand %p6414_p9, %p6408_p6 }
 0x1e2   : > { %6418 = shalt.err (!%p6415_p4)
}
 0x1e3   : > { %5782 = dma.hbm_to_vmem [thread:$0]  (!%p7092_p11), %s7135_s19, 512, %s7137_s1, %s7141_s8, %s7658_s0, %s7658_s0, %s7657_s30  }
 0x1e4   : > { %s7677_s9 = sld [smem:[#allocation46_spill]] }
 0x1ea   : > { %p7678_p8 = scmp.ne.s32.totalorder %s7677_s9, 0 }
 0x1eb   : > { %s7679_s29 = sld [smem:[#allocation42_spill]] (!%p7678_p8) }
 0x1ec   : > { %689 = sbr.rel (%p7678_p8) target bundleno = 8186 (0x1ffa), region = 88 }
 0x1f1   : > { %s7173_s26 = sand.u32 (!%p7678_p8), 1, %s7679_s29  }
 0x1f2   : > { %s4569_s5 = sshll.u32 (!%p7678_p8), %s7173_s26, 4  ;;  %s692_s17 = scalar_lea.sflag (!%p7678_p8), [#allocation3], %s7173_s26 }
 0x1f3   : > { %s7179_s3 = scalar_lea.vmem [#allocation2], %s4569_s5 }
 0x1f4   : > { %6464 = dma.done.wait (%p7069_p7), %s692_s17, 256  }
 0x1f5   : > { %6466 = vsyncadd (%p7069_p7), %s692_s17, 4294967040  ;;  %s7680_s8 = sld [smem:[#allocation45_spill]]  ;;  %s4570_s0 = sshll.u32 %s7173_s26, 5 }
 0x1f6   : > { %s7187_s19 = scalar_lea.vmem [#allocation5], %s4570_s0 }
 0x1fb   : > { %s700_s30 = sand.u32 1, %s7680_s8  }
 0x1fc   : > { %s701_s1 = scalar_lea.sflag [#allocation6], %s700_s30 }
 0x1fd   : > { %6468 = dma.done.wait (%p7069_p7), %s701_s1, 512  }
 0x1fe   : > { %6470 = vsyncadd (%p7069_p7), %s701_s1, 4294966784  ;;  %p7681_p11 = scmp.eq.s32.totalorder %s7680_s8, 0 }
 0x200   : > { %6472 = dma.done.wait (%p7681_p11), [#allocation6], 512   ;;  %p7682_p3 = pmov %p7681_p11 }
 0x202   : > { %6474 = vsyncadd (%p7682_p3), [#allocation6], 4294966784  ;;  %p7683_p12 = pmov %p7682_p3 }
 0x203   : > { %p7684_p1 = pmov %p7682_p3 }
 0x204   : > { %6476 = dma.done.wait (%p7683_p12), [#allocation9], 512  }
 0x205   : > { %6478 = vsyncadd (%p7684_p1), [#allocation9], 4294966784  ;;  %p7685_p13 = pmov %p7684_p1 }
 0x206   : > { %p7686_p0 = pmov %p7684_p1 }
 0x207   : > { %6480 = dma.done.wait (%p7685_p13), [#allocation12], 4112  }
 0x208   : > { %6482 = vsyncadd (%p7686_p0), [#allocation12], 4294963184  ;;  %p7687_p7 = pmov %p7686_p0 }
 0x209   : > { %p7688_p2 = pmov %p7686_p0 }
 0x20a   : > { %6484 = dma.done.wait (%p7687_p7), [#allocation15], 256  }
 0x20b   : > { %6486 = vsyncadd (%p7688_p2), [#allocation15], 4294967040  ;;  %p7689_p6 = pmov %p7686_p0 }
 0x20c   : > { %p7690_p10 = pmov %p7686_p0 }
 0x20d   : > { %6488 = dma.done.wait (%p7689_p6), [#allocation18], 12416  }
 0x20e   : > { %6490 = vsyncadd (%p7690_p10), [#allocation18], 4294954880  ;;  %p7691_p5 = pmov %p7686_p0 }
 0x20f   : > { %p7692_p9 = pmov %p7686_p0 }
 0x210   : > { %6492 = dma.done.wait (%p7691_p5), [#allocation21], 2176  }
 0x211   : > { %6494 = vsyncadd (%p7692_p9), [#allocation21], 4294965120  ;;  %p7693_p4 = pmov %p7686_p0 }
 0x212   : > { %p7694_p8 = pmov %p7686_p0 }
 0x213   : > { %6496 = dma.done.wait (%p7693_p4), [#allocation24], 640  }
 0x214   : > { %6498 = vsyncadd (%p7694_p8), [#allocation24], 4294966656  ;;  %p7695_p11 = pmov %p7686_p0 }
 0x215   : > { %p7696_p3 = pmov %p7686_p0 }
 0x216   : > { %6500 = dma.done.wait (%p7695_p11), [#allocation27], 528  }
 0x217   : > { %6502 = vsyncadd (%p7696_p3), [#allocation27], 4294966768  ;;  %vm833_vm0 = vcmask 130048   ;;  %v831_v0 = vld [vmem:[#allocation8] sm:$0xff]  ;;  %v832_v1 = vld [vmem:[#allocation8 + $0x8] sm:$0xff]  ;;  %vm915_vm1 = vcmask 261120   ;;  %v1091_v48 = vlaneseq }
 0x218   : > { %v822_v2 = vld [vmem:[%s7187_s19] sm:$0xff]  ;;  %v5338_v3 = vpack.c.bf16 %v832_v1, %v831_v0  ;;  %v828_v5 = vld [vmem:[#allocation7 + $0x8] sm:$0xff]  ;;  %v829_v7 = vld [vmem:[#allocation7 + $0x10] sm:$0xff]  ;;  %s6544_s21 = smov 64   ;;  %s6545_s28 = smov 32   ;;  %vm1254_vm8 = vcmask 523264  }
 0x219   : > { %4935 = vmatprep.mubr.msk.f32.mxu0 %vm833_vm0, %v822_v2  ;;  %v827_v4 = vld [vmem:[#allocation7] sm:$0xff]  ;;  %v830_v8 = vld [vmem:[#allocation7 + $0x18] sm:$0xff]  ;;  %v823_v9 = vld [vmem:[%s7187_s19 + $0x8] sm:$0xff]  ;;  %v7245_v58 = vshrl.u32 %v1091_v48, 7  ;;  %vm1269_vm9 = vcmask 785408   ;;  %s6546_s23 = smov 112  }
 0x21a   : > { %v5342_v6 = vpack.c.bf16 %v828_v5, %v827_v4  ;;  %5339 = vmatprep.subr.bf16.mxu0 %v5338_v3  ;;  %v1094_v10 = vld [vmem:[#allocation13] sm:$0xff]  ;;  %v5346_v11 = vpack.c.bf16 %v830_v8, %v829_v7  ;;  %v1095_v13 = vld [vmem:[#allocation13 + $0x8] sm:$0xff]  ;;  %v998_v15 = vld [vmem:[#allocation10 + $0x8] sm:$0xff]  ;;  %s819_s18 = scalar_lea.vmem [#allocation29], %s4569_s5  ;;  %s4712_s25 = sshll.u32 %s7680_s8, 8 }
 0x21b   : > { %5341 = vmatpush3.bf16.msra.mxu0 %v5338_v3  ;;  %v820_v12 = vld [vmem:[%s7179_s3] sm:$0xff]  ;;  %v5354_v16 = vpack.c.bf16 %v1095_v13, %v1094_v10  ;;  %v821_v18 = vld [vmem:[%s7179_s3 + $0x8] sm:$0xff]  ;;  %vm1212_vm4 = vcmp.lt.s32.totalorder %v7245_v58, 2  ;;  %vm1225_vm5 = vcmp.lt.s32.totalorder %v7245_v58, 1  ;;  %vm1228_vm6 = vcmp.ge.s32.totalorder %v7245_v58, 1  ;;  %s4306_s7 = sshll.u32 %s819_s18, 4  ;;  %s7542_s7 = int_to_ptr.vmem [resolvable:$true] %s4306_s7 }
 0x21c   : > { %5343 = vmatprep.subr.bf16.mxu0 %v5342_v6  ;;  %v997_v14 = vld [vmem:[#allocation10] sm:$0xff]  ;;  %v4588_v20 = vld [vmem:[%s7187_s19 + $0x18] sm:$0xff]  ;;  %v4595_v24 = vld [vmem:[#allocation11] ss:$0 sm:$0xff]  ;;  %vm1215_vm7 = vcmp.ge.s32.totalorder %v7245_v58, 2  ;;  %vm1600_vm14 = vcmp.lt.s32.totalorder %v7245_v58, 4 }
 0x21d   : > { %v5350_v17 = vpack.c.bf16 %v998_v15, %v997_v14  ;;  %5355 = vmatprep.subr.bf16.mxu1 %v5354_v16  ;;  %v4587_v19 = vld [vmem:[%s7187_s19 + $0x10] sm:$0xff]  ;;  %v1097_v22 = vld [vmem:[#allocation13 + $0x18] sm:$0xff]  ;;  %v1258_v30 = vld [vmem:[#allocation19 + $0x8] sm:$0xff]  ;;  %vm1603_vm15 = vcmp.ge.s32.totalorder %v7245_v58, 4  ;;  %s7697_s9 = sld [smem:[#allocation57_spill]]  ;;  %s4293_s5 = scalar_lea.sflag [#allocation4], %s7173_s26 }
 0x21e   : > { %4936 = vmatmul.mubr.msk.f32.vlgmr.msra.gmra.mrb[0].mxu0 %vm833_vm0, %v823_v9  ;;  %5357 = vmatpush3.bf16.msra.mxu1 %v5354_v16  ;;  %v1096_v21 = vld [vmem:[#allocation13 + $0x10] sm:$0xff]  ;;  %v1257_v29 = vld [vmem:[#allocation19] sm:$0xff]  ;;  %v1259_v31 = vld [vmem:[#allocation19 + $0x10] sm:$0xff]  ;;  %s6419_s17 = scalar_lea.vmem %s7542_s7, 256  ;;  %p7698_p1 = scmp.ne.s32.totalorder %s7671_s20, 0 }
 0x21f   : > { %5345 = vmatpush3.bf16.msra.mxu0 %v5342_v6  ;;  %4946 = vmatprep.mubr.msk.f32.mxu0 %vm915_vm1, %v820_v12  ;;  %v5358_v23 = vpack.c.bf16 %v1097_v22, %v1096_v21  ;;  %v5362_v32 = vpack.c.bf16 %v1258_v30, %v1257_v29  ;;  %v1260_v33 = vld [vmem:[#allocation19 + $0x18] sm:$0xff]  ;;  %v1261_v35 = vld [vmem:[#allocation19 + $0x20] sm:$0xff]  ;;  %v1262_v36 = vld [vmem:[#allocation19 + $0x28] sm:$0xff]  ;;  %p6420_p12 = scmp.ne.s32.totalorder %s7542_s7, %s6419_s17  ;;  %s6547_s3 = smov [#allocation29]  }
 0x220   : > { %5347 = vmatprep.subr.bf16.mxu0 %v5346_v11  ;;  %v5366_v34 = vpack.c.bf16 %v1260_v33, %v1259_v31  ;;  %v5370_v37 = vpack.c.bf16 %v1262_v36, %v1261_v35  ;;  %v1263_v38 = vld [vmem:[#allocation19 + $0x30] sm:$0xff]  ;;  %v1264_v39 = vld [vmem:[#allocation19 + $0x38] sm:$0xff]  ;;  %v1265_v41 = vld [vmem:[#allocation19 + $0x40] sm:$0xff]  ;;  %s6423_s8 = sshll.u32 %s6547_s3, 4  ;;  %s6424_s8 = int_to_ptr.vmem [resolvable:$false] %s6423_s8 }
 0x221   : > { %5359 = vmatprep.subr.bf16.mxu1 %v5358_v23  ;;  %v5374_v40 = vpack.c.bf16 %v1264_v39, %v1263_v38  ;;  %v1266_v42 = vld [vmem:[#allocation19 + $0x48] sm:$0xff]  ;;  %v1267_v45 = vld [vmem:[#allocation19 + $0x50] sm:$0xff]  ;;  %v1268_v46 = vld [vmem:[#allocation19 + $0x58] sm:$0xff]  ;;  %p6421_p13 = pnand %p6420_p12, %p7698_p1  ;;  %s6425_s30 = scalar_lea.vmem %s6424_s8, 512 }
 0x222   : > { %5361 = vmatpush3.bf16.msra.mxu1 %v5358_v23  ;;  %v5378_v43 = vpack.c.bf16 %v1266_v42, %v1265_v41  ;;  %v4598_v44 = vld [vmem:[#allocation14] ss:$0 sm:$0xff]  ;;  %v5382_v49 = vpack.c.bf16 %v1268_v46, %v1267_v45  ;;  %v4599_v51 = vld [vmem:[#allocation16] ss:$0 sm:$0xff]  ;;  %v4600_v55 = vld [vmem:[#allocation17] ss:$0 sm:$0xff]  ;;  %p6426_p7 = scmp.lt.s32.totalorder %s7542_s7, %s6424_s8  ;;  %p6427_p2 = scmp.lt.s32.totalorder %s6425_s30, %s6419_s17 }
 0x223   : > { %5349 = vmatpush3.bf16.msra.mxu0 %v5346_v11  ;;  %5363 = vmatprep.subr.bf16.mxu1 %v5362_v32  ;;  %v1386_v23 = vld [vmem:[#allocation22] sm:$0xff]  ;;  %v1480_v30 = vld [vmem:[#allocation13 + $0x28] sm:$0xff]  ;;  %s7547_s29 = scalar_lea.hbm %s7697_s9, %s4712_s25  ;;  %p6422_p0 = pneg %p6421_p13 }
 0x224   : > { %5351 = vmatprep.subr.bf16.mxu0 %v5350_v17  ;;  %v1479_v29 = vld [vmem:[#allocation13 + $0x20] sm:$0xff]  ;;  %p6428_p6 = por %p6427_p2, %p6426_p7 }
 0x225   : > { %v5390_v31 = vpack.c.bf16 %v1480_v30, %v1479_v29  ;;  %v4606_v46 = vld [vmem:[#allocation23] ss:$0 sm:$0xff] }
 0x226   : > { %4947 = vmatmul.mubr.msk.f32.vlgmr.msra.gmra.mrb[0].mxu0 %vm915_vm1, %v821_v18  ;;  %p6429_p10 = pnand %p6428_p6, %p6422_p0 }
 0x227   : > { %5353 = vmatpush3.bf16.msra.mxu0 %v5350_v17  ;;  %4953 = vmatprep.mubr.msk.f32.mxu0 %vm833_vm0, %v4587_v19 }
 0x22e   : > { %4954 = vmatmul.mubr.msk.f32.vlgmr.msra.gmra.mrb[0].mxu0 %vm833_vm0, %v4588_v20 }
 0x301   : > { %v4955_v25 = vpop.f32.mrb[0].mxu0 }
 0x302   : > { %v1071_v26 = vpop.f32.mrb[1].mxu0  ;;  %v7239_v28 = vadd.f32 %v4955_v25, %v4595_v24 }
 0x303   : > { %v7237_v27 = vadd.f32 %v4595_v24, %v1071_v26  ;;  %v1387_v24 = vld [vmem:[#allocation22 + $0x8] sm:$0xff] }
 0x304   : > { %v5386_v26 = vpack.c.bf16 %v1387_v24, %v1386_v23 }
 0x305   : > { %4964 = vmatprep.mubr.msk.f32.mxu1 %vm915_vm1, %v7237_v27 }
 0x306   : > { %4965 = vmatmul.mubr.msk.f32.vlgmr.msra.gmra.mrb[0].mxu1 %vm915_vm1, %v7239_v28  ;;  %5387 = vmatprep.subr.bf16.mxu0 %v5386_v26 }
 0x307   : > { %5365 = vmatpush3.bf16.msra.mxu1 %v5362_v32  ;;  %5389 = vmatpush3.bf16.msra.mxu0 %v5386_v26 }
 0x308   : > { %5367 = vmatprep.subr.bf16.mxu1 %v5366_v34  ;;  %5391 = vmatprep.subr.bf16.mxu0 %v5390_v31 }
 0x30b   : > { %5369 = vmatpush3.bf16.msra.mxu1 %v5366_v34  ;;  %v4605_v34 = vld [vmem:[#allocation20] ss:$0 sm:$0xff] }
 0x30c   : > { %5371 = vmatprep.subr.bf16.mxu1 %v5370_v37 }
 0x30f   : > { %5373 = vmatpush3.bf16.msra.mxu1 %v5370_v37 }
 0x310   : > { %5375 = vmatprep.subr.bf16.mxu1 %v5374_v40 }
 0x313   : > { %5377 = vmatpush3.bf16.msra.mxu1 %v5374_v40 }
 0x314   : > { %5379 = vmatprep.subr.bf16.mxu1 %v5378_v43 }
 0x317   : > { %5381 = vmatpush3.bf16.msra.mxu1 %v5378_v43  ;;  %v1481_v43 = vld [vmem:[#allocation13 + $0x30] sm:$0xff] }
 0x318   : > { %5383 = vmatprep.subr.bf16.mxu1 %v5382_v49 }
 0x31b   : > { %5385 = vmatpush3.bf16.msra.mxu1 %v5382_v49 }
 0x3d9   : > { %v4966_v47 = vpop.f32.mrb[0].mxu1 }
 0x3da   : > { %vm1180_vm2 = vcmp.ge.f32.partialorder %v4966_v47, 0.0  ;;  %v1189_v50 = vmul.f32 %v4966_v47, %v4598_v44  ;;  %v1170_v52 = vpop.f32.mrb[1].mxu1 }
 0x3db   : > { %vm1179_vm3 = vcmp.ge.f32.partialorder %v1170_v52, 0.0  ;;  %v1188_v53 = vmul.f32 %v4598_v44, %v1170_v52  ;;  %v1482_v44 = vld [vmem:[#allocation13 + $0x38] sm:$0xff] }
 0x3dc   : > { %v1191_v54 = vsel %vm1180_vm2, %v4966_v47, %v1189_v50  ;;  %v5394_v45 = vpack.c.bf16 %v1482_v44, %v1481_v43 }
 0x3dd   : > { %v1200_v56 = vmul.f32 %v4599_v51, %v1191_v54  ;;  %v1190_v57 = vsel %vm1179_vm3, %v1170_v52, %v1188_v53  ;;  %v1638_v53 = vld [vmem:[#allocation19 + $0x60] sm:$0xff]  ;;  %v1639_v54 = vld [vmem:[#allocation19 + $0x68] sm:$0xff] }
 0x3de   : > { %v1199_v59 = vmul.f32 %v4599_v51, %v1190_v57  ;;  %v1641_v57 = vld [vmem:[#allocation19 + $0x78] sm:$0xff] }
 0x3df   : > { %v1209_v60 = vadd.f32 %v4600_v55, %v1200_v56  ;;  %v5398_v56 = vpack.c.bf16 %v1639_v54, %v1638_v53  ;;  %v1862_v54 = vld [vmem:[#allocation13 + $0x40] sm:$0xff] }
 0x3e0   : > { %v1208_v61 = vadd.f32 %v4600_v55, %v1199_v59  ;;  %v1640_v55 = vld [vmem:[#allocation19 + $0x70] sm:$0xff] }
 0x3e1   : > { %v1211_v62 = vrot.slane %v1209_v60, 6  ;;  %v1224_v63 = vrot.slane %v1209_v60, 7  ;;  %v5402_v59 = vpack.c.bf16 %v1641_v57, %v1640_v55  ;;  %v1863_v55 = vld [vmem:[#allocation13 + $0x48] sm:$0xff] }
 0x3e2   : > { %1246 = vrot.lane.b32.xlu1 %v1208_v61, %s6544_s21  ;;  %v1210_v0 = vrot.slane %v1208_v61, 6  ;;  %v1223_v1 = vrot.slane %v1208_v61, 7  ;;  %v1643_v61 = vld [vmem:[#allocation19 + $0x88] sm:$0xff] }
 0x3e4   : > { %v1227_v2 = vsel %vm1225_vm5, %v1224_v63, %v1223_v1  ;;  %v1226_v3 = vsel %vm1225_vm5, %v1223_v1, %v1224_v63  ;;  %v1214_v4 = vsel %vm1212_vm4, %v1211_v62, %v1210_v0  ;;  %v1213_v5 = vsel %vm1212_vm4, %v1210_v0, %v1211_v62  ;;  %v1644_v63 = vld [vmem:[#allocation19 + $0x90] sm:$0xff]  ;;  %v1645_v0 = vld [vmem:[#allocation19 + $0x98] sm:$0xff] }
 0x3e5   : > { %v1234_v6 = vsel %vm1228_vm6, %v1227_v2, 0.0  ;;  %v1221_v9 = vsel %vm1215_vm7, %v1214_v4, 0.0  ;;  %v5410_v1 = vpack.c.bf16 %v1645_v0, %v1644_v63  ;;  %v1646_v2 = vld [vmem:[#allocation19 + $0xa0] sm:$0xff] }
 0x3e6   : > { %1248 = vrot.lane.b32.xlu1 %v1209_v60, %s6544_s21  ;;  %1238 = vrot.lane.b32.xlu0 %v1234_v6, %s6545_s28  ;;  %v1642_v60 = vld [vmem:[#allocation19 + $0x80] sm:$0xff]  ;;  %v1648_v6 = vld [vmem:[#allocation19 + $0xb0] sm:$0xff] }
 0x3e7   : > { %v5406_v62 = vpack.c.bf16 %v1643_v61, %v1642_v60  ;;  %v4618_v60 = vld [vmem:[#allocation20 + $0x1] ss:$0 sm:$0xff] }
 0x3ea   : > { %1240 = vrot.lane.b32.xlu0 %v1226_v3, %s6545_s28  ;;  %v1647_v3 = vld [vmem:[#allocation19 + $0xa8] sm:$0xff] }
 0x3eb   : > { %v5414_v4 = vpack.c.bf16 %v1647_v3, %v1646_v2 }
 0x454   : > { %v1247_v7 = vpop.permute.xlu1 %1246 }
 0x458   : > { %v1239_v8 = vpop.permute.xlu0 %1238  ;;  %v1249_v13 = vpop.permute.xlu1 %1248 }
 0x459   : > { %v1252_v10 = vsel %vm915_vm1, %v1221_v9, %v1239_v8 }
 0x45a   : > { %v1255_v11 = vsel %vm1254_vm8, %v1252_v10, %v1247_v7  ;;  %v1649_v7 = vld [vmem:[#allocation19 + $0xb8] sm:$0xff] }
 0x45b   : > { %4991 = vmatprep.mubr.msk.f32.mxu1 %vm1269_vm9, %v1255_v11  ;;  %v5418_v9 = vpack.c.bf16 %v1649_v7, %v1648_v6  ;;  %v4612_v11 = vld [vmem:[#allocation16 + $0x1] ss:$0 sm:$0xff]  ;;  %v1865_v6 = vld [vmem:[#allocation13 + $0x58] sm:$0xff] }
 0x45c   : > { %v1241_v12 = vpop.permute.xlu0 %1240 }
 0x45d   : > { %v1253_v14 = vsel %vm915_vm1, %v1213_v5, %v1241_v12  ;;  %v4611_v5 = vld [vmem:[#allocation14 + $0x1] ss:$0 sm:$0xff] }
 0x45e   : > { %v1256_v15 = vsel %vm1254_vm8, %v1253_v14, %v1249_v13 }
 0x45f   : > { %4992 = vmatmul.mubr.msk.f32.vlgmr.msra.gmra.mrb[2].mxu1 %vm1269_vm9, %v1256_v15  ;;  %v4613_v15 = vld [vmem:[#allocation17 + $0x1] ss:$0 sm:$0xff] }
 0x532   : > { %v4993_v16 = vpop.f32.mrb[2].mxu1 }
 0x533   : > { %v4604_v17 = vmul.f32 -1.442695, %v4993_v16  ;;  %v1342_v18 = vpop.f32.mrb[3].mxu1 }
 0x534   : > { %v4603_v19 = vmul.f32 -1.442695, %v1342_v18 }
 0x535   : > { %5875 = vpow2.f32 %v4604_v17 }
 0x536   : > { %5877 = vpow2.f32 %v4603_v19 }
 0x53f   : > { %v5876_v20 = vpop.eup %5875 }
 0x540   : > { %v5878_v21 = vpop.eup %5877  ;;  %v1358_v22 = vadd.f32 1.0, %v5876_v20 }
 0x541   : > { %v1357_v25 = vadd.f32 1.0, %v5878_v21 }
 0x542   : > { %5879 = vrcp.f32 %v1358_v22 }
 0x543   : > { %5881 = vrcp.f32 %v1357_v25 }
 0x54c   : > { %v5880_v32 = vpop.eup %5879 }
 0x54d   : > { %v5882_v33 = vpop.eup %5881  ;;  %1367 = vrot.lane.b32.xlu1 %v5880_v32, %s6546_s23 }
 0x54e   : > { %1365 = vrot.lane.b32.xlu0 %v5882_v33, %s6546_s23 }
 0x5bf   : > { %v1368_v35 = vpop.permute.xlu1 %1367 }
 0x5c0   : > { %v1372_v36 = vmul.f32 %v4993_v16, %v1368_v35  ;;  %v1366_v37 = vpop.permute.xlu0 %1365 }
 0x5c1   : > { %v1371_v38 = vmul.f32 %v1366_v37, %v1342_v18 }
 0x5c2   : > { %v1383_v39 = vmul.f32 %v4605_v34, %v1372_v36  ;;  %vm1374_vm10 = vcmp.ge.f32.partialorder %v1372_v36, 0.0 }
 0x5c3   : > { %vm1373_vm11 = vcmp.ge.f32.partialorder %v1371_v38, 0.0  ;;  %v1382_v40 = vmul.f32 %v4605_v34, %v1371_v38 }
 0x5c4   : > { %v1385_v42 = vsel %vm1374_vm10, %v1372_v36, %v1383_v39 }
 0x5c5   : > { %v1384_v41 = vsel %vm1373_vm11, %v1371_v38, %v1382_v40 }
 0x5c6   : > { %4998 = vmatprep.mubr.msk.f32.mxu0 %vm833_vm0, %v1384_v41 }
 0x5c7   : > { %4999 = vmatmul.mubr.msk.f32.vlgmr.msra.gmra.mrb[2].mxu0 %vm833_vm0, %v1385_v42 }
 0x5c8   : > { %5393 = vmatpush3.bf16.msra.mxu0 %v5390_v31 }
 0x5c9   : > { %5395 = vmatprep.subr.bf16.mxu0 %v5394_v45 }
 0x5cc   : > { %5397 = vmatpush3.bf16.msra.mxu0 %v5394_v45 }
 0x5cd   : > { %5399 = vmatprep.subr.bf16.mxu0 %v5398_v56 }
 0x69a   : > { %v5000_v47 = vpop.f32.mrb[2].mxu0 }
 0x69b   : > { %v1473_v48 = vadd.f32 %v5000_v47, %v4606_v46  ;;  %v1467_v49 = vpop.f32.mrb[3].mxu0 }
 0x69c   : > { %v1468_v50 = vadd.f32 %v4606_v46, %v1467_v49  ;;  %v1769_v49 = vld [vmem:[#allocation22 + $0x18] sm:$0xff] }
 0x69d   : > { %v7281_v52 = vadd.f32 %v1473_v48, %v7239_v28  ;;  %v1768_v48 = vld [vmem:[#allocation22 + $0x10] sm:$0xff] }
 0x69e   : > { %v7278_v51 = vadd.f32 %v1468_v50, %v7237_v27  ;;  %v5422_v53 = vpack.c.bf16 %v1769_v49, %v1768_v48 }
 0x6a0   : > { %5009 = vmatprep.mubr.msk.f32.mxu0 %vm915_vm1, %v7278_v51  ;;  %5423 = vmatprep.subr.bf16.mxu1 %v5422_v53 }
 0x6a1   : > { %5010 = vmatmul.mubr.msk.f32.vlgmr.msra.gmra.mrb[4].mxu0 %vm915_vm1, %v7281_v52  ;;  %5425 = vmatpush3.bf16.msra.mxu1 %v5422_v53 }
 0x6a2   : > { %5401 = vmatpush3.bf16.msra.mxu0 %v5398_v56  ;;  %v5426_v56 = vpack.c.bf16 %v1863_v55, %v1862_v54 }
 0x6a3   : > { %5403 = vmatprep.subr.bf16.mxu0 %v5402_v59 }
 0x6a4   : > { %5427 = vmatprep.subr.bf16.mxu1 %v5426_v56 }
 0x6a6   : > { %5405 = vmatpush3.bf16.msra.mxu0 %v5402_v59 }
 0x6a7   : > { %5407 = vmatprep.subr.bf16.mxu0 %v5406_v62 }
 0x6aa   : > { %5409 = vmatpush3.bf16.msra.mxu0 %v5406_v62 }
 0x6ab   : > { %5411 = vmatprep.subr.bf16.mxu0 %v5410_v1 }
 0x6ae   : > { %5413 = vmatpush3.bf16.msra.mxu0 %v5410_v1 }
 0x6af   : > { %5415 = vmatprep.subr.bf16.mxu0 %v5414_v4 }
 0x6b2   : > { %5417 = vmatpush3.bf16.msra.mxu0 %v5414_v4 }
 0x6b3   : > { %5419 = vmatprep.subr.bf16.mxu0 %v5418_v9 }
 0x6b6   : > { %5421 = vmatpush3.bf16.msra.mxu0 %v5418_v9 }
 0x774   : > { %v5011_v8 = vpop.f32.mrb[4].mxu0 }
 0x775   : > { %vm1565_vm12 = vcmp.ge.f32.partialorder %v5011_v8, 0.0  ;;  %v1575_v10 = vmul.f32 %v5011_v8, %v4611_v5  ;;  %v1555_v12 = vpop.f32.mrb[5].mxu0 }
 0x776   : > { %vm1564_vm13 = vcmp.ge.f32.partialorder %v1555_v12, 0.0  ;;  %v1574_v13 = vmul.f32 %v4611_v5, %v1555_v12  ;;  %v1864_v5 = vld [vmem:[#allocation13 + $0x50] sm:$0xff] }
 0x777   : > { %v1577_v14 = vsel %vm1565_vm12, %v5011_v8, %v1575_v10  ;;  %v5430_v7 = vpack.c.bf16 %v1865_v6, %v1864_v5  ;;  %v4619_v8 = vld [vmem:[#allocation23 + $0x1] ss:$0 sm:$0xff] }
 0x778   : > { %v1587_v16 = vmul.f32 %v4612_v11, %v1577_v14  ;;  %v1576_v17 = vsel %vm1564_vm13, %v1555_v12, %v1574_v13 }
 0x779   : > { %v1586_v18 = vmul.f32 %v4612_v11, %v1576_v17  ;;  %v2016_v17 = vld [vmem:[#allocation19 + $0xd0] sm:$0xff] }
 0x77a   : > { %v1597_v19 = vadd.f32 %v4613_v15, %v1587_v16  ;;  %v2015_v16 = vld [vmem:[#allocation19 + $0xc8] sm:$0xff] }
 0x77b   : > { %v1596_v20 = vadd.f32 %v4613_v15, %v1586_v18  ;;  %v2014_v15 = vld [vmem:[#allocation19 + $0xc0] sm:$0xff] }
 0x77c   : > { %v1612_v21 = vrot.slane %v1597_v19, 6  ;;  %v1599_v22 = vrot.slane %v1597_v19, 4  ;;  %v5434_v18 = vpack.c.bf16 %v2015_v16, %v2014_v15  ;;  %v2238_v16 = vld [vmem:[#allocation13 + $0x60] sm:$0xff] }
 0x77d   : > { %v1611_v23 = vrot.slane %v1596_v20, 6  ;;  %v1598_v24 = vrot.slane %v1596_v20, 4 }
 0x77f   : > { %v1613_v25 = vsel %vm1212_vm4, %v1611_v23, %v1612_v21  ;;  %v1614_v26 = vsel %vm1212_vm4, %v1612_v21, %v1611_v23  ;;  %v1601_v29 = vsel %vm1600_vm14, %v1598_v24, %v1599_v22  ;;  %v1602_v30 = vsel %vm1600_vm14, %v1599_v22, %v1598_v24  ;;  %v2018_v21 = vld [vmem:[#allocation19 + $0xe0] sm:$0xff]  ;;  %v2019_v22 = vld [vmem:[#allocation19 + $0xe8] sm:$0xff]  ;;  %v2021_v23 = vld [vmem:[#allocation19 + $0xf8] sm:$0xff] }
 0x780   : > { %1621 = vrot.lane.b32.xlu1 %v1613_v25, %s6545_s28  ;;  %v1615_v31 = vsel %vm1215_vm7, %v1614_v26, 0.0  ;;  %v1609_v34 = vsel %vm1603_vm15, %v1602_v30, 0.0  ;;  %v2022_v25 = vld [vmem:[#allocation19 + $0x100] sm:$0xff]  ;;  %v2023_v26 = vld [vmem:[#allocation19 + $0x108] sm:$0xff] }
 0x781   : > { %1619 = vrot.lane.b32.xlu0 %v1615_v31, %s6545_s28  ;;  %v4624_v30 = vld [vmem:[#allocation14 + $0x2] ss:$0 sm:$0xff]  ;;  %v2024_v31 = vld [vmem:[#allocation19 + $0x110] sm:$0xff] }
 0x784   : > { %1629 = vrot.lane.b32.xlu1 %v1597_v19, %s6544_s21  ;;  %v2017_v19 = vld [vmem:[#allocation19 + $0xd8] sm:$0xff] }
 0x785   : > { %1627 = vrot.lane.b32.xlu0 %v1596_v20, %s6544_s21  ;;  %v5438_v20 = vpack.c.bf16 %v2017_v19, %v2016_v17  ;;  %v2239_v17 = vld [vmem:[#allocation13 + $0x68] sm:$0xff] }
 0x7f2   : > { %v1622_v32 = vpop.permute.xlu1 %1621 }
 0x7f3   : > { %v1620_v33 = vpop.permute.xlu0 %1619  ;;  %v1634_v38 = vsel %vm915_vm1, %v1601_v29, %v1622_v32  ;;  %v5450_v29 = vpack.c.bf16 %v2023_v26, %v2022_v25  ;;  %v2025_v32 = vld [vmem:[#allocation19 + $0x118] sm:$0xff] }
 0x7f4   : > { %v1633_v36 = vsel %vm915_vm1, %v1609_v34, %v1620_v33  ;;  %v5454_v34 = vpack.c.bf16 %v2025_v32, %v2024_v31  ;;  %v2241_v31 = vld [vmem:[#allocation13 + $0x78] sm:$0xff] }
 0x7f6   : > { %v1630_v35 = vpop.permute.xlu1 %1629 }
 0x7f7   : > { %v1628_v37 = vpop.permute.xlu0 %1627  ;;  %v1636_v40 = vsel %vm1254_vm8, %v1634_v38, %v1630_v35 }
 0x7f8   : > { %v1635_v39 = vsel %vm1254_vm8, %v1633_v36, %v1628_v37  ;;  %v4625_v36 = vld [vmem:[#allocation16 + $0x2] ss:$0 sm:$0xff] }
 0x7f9   : > { %5036 = vmatprep.mubr.msk.f32.mxu0 %vm1269_vm9, %v1635_v39 }
 0x7fa   : > { %5037 = vmatmul.mubr.msk.f32.vlgmr.msra.gmra.mrb[6].mxu0 %vm1269_vm9, %v1636_v40  ;;  %v4626_v40 = vld [vmem:[#allocation17 + $0x2] ss:$0 sm:$0xff] }
 0x8cd   : > { %v5038_v41 = vpop.f32.mrb[6].mxu0 }
 0x8ce   : > { %v4617_v42 = vmul.f32 -1.442695, %v5038_v41  ;;  %v1722_v43 = vpop.f32.mrb[7].mxu0 }
 0x8cf   : > { %v4616_v44 = vmul.f32 -1.442695, %v1722_v43 }
 0x8d0   : > { %5883 = vpow2.f32 %v4617_v42 }
 0x8d1   : > { %5885 = vpow2.f32 %v4616_v44 }
 0x8da   : > { %v5884_v45 = vpop.eup %5883 }
 0x8db   : > { %v5886_v46 = vpop.eup %5885  ;;  %v1738_v47 = vadd.f32 1.0, %v5884_v45 }
 0x8dc   : > { %v1737_v50 = vadd.f32 1.0, %v5886_v46 }
 0x8dd   : > { %5887 = vrcp.f32 %v1738_v47 }
 0x8de   : > { %5889 = vrcp.f32 %v1737_v50 }
 0x8e7   : > { %v5888_v57 = vpop.eup %5887 }
 0x8e8   : > { %v5890_v59 = vpop.eup %5889  ;;  %1747 = vrot.lane.b32.xlu1 %v5888_v57, %s6546_s23 }
 0x8e9   : > { %1745 = vrot.lane.b32.xlu0 %v5890_v59, %s6546_s23 }
 0x95a   : > { %v1748_v61 = vpop.permute.xlu1 %1747 }
 0x95b   : > { %v1752_v62 = vmul.f32 %v5038_v41, %v1748_v61  ;;  %v1746_v63 = vpop.permute.xlu0 %1745 }
 0x95c   : > { %v1751_v0 = vmul.f32 %v1746_v63, %v1722_v43 }
 0x95d   : > { %v1764_v1 = vmul.f32 %v4618_v60, %v1752_v62  ;;  %vm1754_vm2 = vcmp.ge.f32.partialorder %v1752_v62, 0.0 }
 0x95e   : > { %vm1753_vm3 = vcmp.ge.f32.partialorder %v1751_v0, 0.0  ;;  %v1763_v2 = vmul.f32 %v4618_v60, %v1751_v0 }
 0x95f   : > { %v1766_v4 = vsel %vm1754_vm2, %v1752_v62, %v1764_v1 }
 0x960   : > { %v1765_v3 = vsel %vm1753_vm3, %v1751_v0, %v1763_v2 }
 0x961   : > { %5043 = vmatprep.mubr.msk.f32.mxu1 %vm833_vm0, %v1765_v3 }
 0x962   : > { %5044 = vmatmul.mubr.msk.f32.vlgmr.msra.gmra.mrb[4].mxu1 %vm833_vm0, %v1766_v4 }
 0x963   : > { %5429 = vmatpush3.bf16.msra.mxu1 %v5426_v56 }
 0x964   : > { %5431 = vmatprep.subr.bf16.mxu1 %v5430_v7 }
 0x967   : > { %5433 = vmatpush3.bf16.msra.mxu1 %v5430_v7 }
 0x968   : > { %5435 = vmatprep.subr.bf16.mxu1 %v5434_v18 }
 0xa35   : > { %v5045_v9 = vpop.f32.mrb[4].mxu1 }
 0xa36   : > { %v1856_v10 = vadd.f32 %v5045_v9, %v4619_v8  ;;  %v1850_v11 = vpop.f32.mrb[5].mxu1 }
 0xa37   : > { %v1851_v12 = vadd.f32 %v4619_v8, %v1850_v11  ;;  %v2145_v11 = vld [vmem:[#allocation22 + $0x28] sm:$0xff] }
 0xa38   : > { %v7319_v14 = vadd.f32 %v1856_v10, %v7281_v52  ;;  %v2020_v52 = vld [vmem:[#allocation19 + $0xf0] sm:$0xff]  ;;  %v2144_v10 = vld [vmem:[#allocation22 + $0x20] sm:$0xff] }
 0xa39   : > { %v7316_v13 = vadd.f32 %v1851_v12, %v7278_v51  ;;  %v5442_v51 = vpack.c.bf16 %v2019_v22, %v2018_v21  ;;  %v5446_v24 = vpack.c.bf16 %v2021_v23, %v2020_v52  ;;  %v5458_v15 = vpack.c.bf16 %v2145_v11, %v2144_v10  ;;  %v4631_v21 = vld [vmem:[#allocation20 + $0x2] ss:$0 sm:$0xff] }
 0xa3b   : > { %5054 = vmatprep.mubr.msk.f32.mxu1 %vm915_vm1, %v7316_v13  ;;  %5459 = vmatprep.subr.bf16.mxu0 %v5458_v15 }
 0xa3c   : > { %5055 = vmatmul.mubr.msk.f32.vlgmr.msra.gmra.mrb[6].mxu1 %vm915_vm1, %v7319_v14  ;;  %5461 = vmatpush3.bf16.msra.mxu0 %v5458_v15 }
 0xa3d   : > { %5437 = vmatpush3.bf16.msra.mxu1 %v5434_v18  ;;  %v5462_v18 = vpack.c.bf16 %v2239_v17, %v2238_v16 }
 0xa3e   : > { %5439 = vmatprep.subr.bf16.mxu1 %v5438_v20 }
 0xa3f   : > { %5463 = vmatprep.subr.bf16.mxu0 %v5462_v18 }
 0xa41   : > { %5441 = vmatpush3.bf16.msra.mxu1 %v5438_v20 }
 0xa42   : > { %5443 = vmatprep.subr.bf16.mxu1 %v5442_v51 }
 0xa45   : > { %5445 = vmatpush3.bf16.msra.mxu1 %v5442_v51 }
 0xa46   : > { %5447 = vmatprep.subr.bf16.mxu1 %v5446_v24 }
 0xa49   : > { %5449 = vmatpush3.bf16.msra.mxu1 %v5446_v24 }
 0xa4a   : > { %5451 = vmatprep.subr.bf16.mxu1 %v5450_v29 }
 0xa4d   : > { %5453 = vmatpush3.bf16.msra.mxu1 %v5450_v29 }
 0xa4e   : > { %5455 = vmatprep.subr.bf16.mxu1 %v5454_v34 }
 0xa51   : > { %5457 = vmatpush3.bf16.msra.mxu1 %v5454_v34 }
 0xb0f   : > { %v5056_v33 = vpop.f32.mrb[6].mxu1 }
 0xb10   : > { %vm1948_vm10 = vcmp.ge.f32.partialorder %v5056_v33, 0.0  ;;  %v1958_v35 = vmul.f32 %v5056_v33, %v4624_v30  ;;  %v1938_v37 = vpop.f32.mrb[7].mxu1 }
 0xb11   : > { %vm1947_vm11 = vcmp.ge.f32.partialorder %v1938_v37, 0.0  ;;  %v1957_v38 = vmul.f32 %v4624_v30, %v1938_v37  ;;  %v2240_v30 = vld [vmem:[#allocation13 + $0x70] sm:$0xff] }
 0xb12   : > { %v1960_v39 = vsel %vm1948_vm10, %v5056_v33, %v1958_v35  ;;  %v5466_v32 = vpack.c.bf16 %v2241_v31, %v2240_v30  ;;  %v4632_v33 = vld [vmem:[#allocation23 + $0x2] ss:$0 sm:$0xff] }
 0xb13   : > { %v1970_v41 = vmul.f32 %v4625_v36, %v1960_v39  ;;  %v1959_v42 = vsel %vm1947_vm11, %v1938_v37, %v1957_v38 }
 0xb14   : > { %v1969_v43 = vmul.f32 %v4625_v36, %v1959_v42  ;;  %v2392_v42 = vld [vmem:[#allocation19 + $0x130] sm:$0xff] }
 0xb15   : > { %v1980_v44 = vadd.f32 %v4626_v40, %v1970_v41  ;;  %v2391_v41 = vld [vmem:[#allocation19 + $0x128] sm:$0xff] }
 0xb16   : > { %v1979_v45 = vadd.f32 %v4626_v40, %v1969_v43  ;;  %v2390_v40 = vld [vmem:[#allocation19 + $0x120] sm:$0xff] }
 0xb17   : > { %v1988_v46 = vrot.slane %v1980_v44, 7  ;;  %v1982_v47 = vrot.slane %v1980_v44, 6  ;;  %v5470_v43 = vpack.c.bf16 %v2391_v41, %v2390_v40  ;;  %v2614_v41 = vld [vmem:[#allocation13 + $0x80] sm:$0xff] }
 0xb18   : > { %v1987_v48 = vrot.slane %v1979_v45, 7  ;;  %v1981_v49 = vrot.slane %v1979_v45, 6 }
 0xb1a   : > { %v1989_v50 = vsel %vm1225_vm5, %v1987_v48, %v1988_v46  ;;  %v1990_v53 = vsel %vm1225_vm5, %v1988_v46, %v1987_v48  ;;  %v1983_v54 = vsel %vm1212_vm4, %v1981_v49, %v1982_v47  ;;  %v1984_v55 = vsel %vm1212_vm4, %v1982_v47, %v1981_v49  ;;  %v2394_v46 = vld [vmem:[#allocation19 + $0x140] sm:$0xff]  ;;  %v2395_v47 = vld [vmem:[#allocation19 + $0x148] sm:$0xff]  ;;  %v2397_v48 = vld [vmem:[#allocation19 + $0x158] sm:$0xff] }
 0xb1b   : > { %1997 = vrot.lane.b32.xlu1 %v1989_v50, %s6545_s28  ;;  %v1991_v56 = vsel %vm1228_vm6, %v1990_v53, 0.0  ;;  %v1985_v60 = vsel %vm1215_vm7, %v1984_v55, 0.0  ;;  %v2398_v50 = vld [vmem:[#allocation19 + $0x160] sm:$0xff]  ;;  %v2399_v53 = vld [vmem:[#allocation19 + $0x168] sm:$0xff] }
 0xb1c   : > { %1995 = vrot.lane.b32.xlu0 %v1991_v56, %s6545_s28  ;;  %v4637_v55 = vld [vmem:[#allocation14 + $0x3] ss:$0 sm:$0xff]  ;;  %v2400_v56 = vld [vmem:[#allocation19 + $0x170] sm:$0xff] }
 0xb1f   : > { %2005 = vrot.lane.b32.xlu1 %v1980_v44, %s6544_s21  ;;  %v2393_v44 = vld [vmem:[#allocation19 + $0x138] sm:$0xff] }
 0xb20   : > { %2003 = vrot.lane.b32.xlu0 %v1979_v45, %s6544_s21  ;;  %v5474_v45 = vpack.c.bf16 %v2393_v44, %v2392_v42  ;;  %v2615_v42 = vld [vmem:[#allocation13 + $0x88] sm:$0xff] }
 0xb8d   : > { %v1998_v57 = vpop.permute.xlu1 %1997 }
 0xb8e   : > { %v1996_v59 = vpop.permute.xlu0 %1995  ;;  %v2010_v0 = vsel %vm915_vm1, %v1983_v54, %v1998_v57  ;;  %v5486_v54 = vpack.c.bf16 %v2399_v53, %v2398_v50  ;;  %v2401_v57 = vld [vmem:[#allocation19 + $0x178] sm:$0xff]  ;;  %v2617_v53 = vld [vmem:[#allocation13 + $0x98] sm:$0xff] }
 0xb8f   : > { %v2009_v62 = vsel %vm915_vm1, %v1985_v60, %v1996_v59  ;;  %v5490_v60 = vpack.c.bf16 %v2401_v57, %v2400_v56  ;;  %v2616_v50 = vld [vmem:[#allocation13 + $0x90] sm:$0xff] }
 0xb90   : > { %v5502_v56 = vpack.c.bf16 %v2617_v53, %v2616_v50 }
 0xb91   : > { %v2006_v61 = vpop.permute.xlu1 %2005 }
 0xb92   : > { %v2004_v63 = vpop.permute.xlu0 %2003  ;;  %v2012_v2 = vsel %vm1254_vm8, %v2010_v0, %v2006_v61 }
 0xb93   : > { %v2011_v1 = vsel %vm1254_vm8, %v2009_v62, %v2004_v63  ;;  %v4638_v62 = vld [vmem:[#allocation16 + $0x3] ss:$0 sm:$0xff] }
 0xb94   : > { %5081 = vmatprep.mubr.msk.f32.mxu1 %vm1269_vm9, %v2011_v1 }
 0xb95   : > { %5082 = vmatmul.mubr.msk.f32.vlgmr.msra.gmra.mrb[8].mxu1 %vm1269_vm9, %v2012_v2  ;;  %v4639_v2 = vld [vmem:[#allocation17 + $0x3] ss:$0 sm:$0xff] }
 0xc68   : > { %v5083_v3 = vpop.f32.mrb[8].mxu1 }
 0xc69   : > { %v4630_v4 = vmul.f32 -1.442695, %v5083_v3  ;;  %v2098_v5 = vpop.f32.mrb[9].mxu1 }
 0xc6a   : > { %v4629_v6 = vmul.f32 -1.442695, %v2098_v5 }
 0xc6b   : > { %5891 = vpow2.f32 %v4630_v4 }
 0xc6c   : > { %5893 = vpow2.f32 %v4629_v6 }
 0xc75   : > { %v5892_v7 = vpop.eup %5891 }
 0xc76   : > { %v5894_v8 = vpop.eup %5893  ;;  %v2114_v9 = vadd.f32 1.0, %v5892_v7 }
 0xc77   : > { %v2113_v12 = vadd.f32 1.0, %v5894_v8 }
 0xc78   : > { %5895 = vrcp.f32 %v2114_v9 }
 0xc79   : > { %5897 = vrcp.f32 %v2113_v12 }
 0xc82   : > { %v5896_v19 = vpop.eup %5895 }
 0xc83   : > { %v5898_v20 = vpop.eup %5897  ;;  %2123 = vrot.lane.b32.xlu1 %v5896_v19, %s6546_s23 }
 0xc84   : > { %2121 = vrot.lane.b32.xlu0 %v5898_v20, %s6546_s23 }
 0xcf5   : > { %v2124_v22 = vpop.permute.xlu1 %2123 }
 0xcf6   : > { %v2128_v51 = vmul.f32 %v5083_v3, %v2124_v22  ;;  %v2122_v52 = vpop.permute.xlu0 %2121 }
 0xcf7   : > { %v2127_v23 = vmul.f32 %v2122_v52, %v2098_v5 }
 0xcf8   : > { %v2140_v24 = vmul.f32 %v4631_v21, %v2128_v51  ;;  %vm2130_vm12 = vcmp.ge.f32.partialorder %v2128_v51, 0.0 }
 0xcf9   : > { %vm2129_vm13 = vcmp.ge.f32.partialorder %v2127_v23, 0.0  ;;  %v2139_v25 = vmul.f32 %v4631_v21, %v2127_v23 }
 0xcfa   : > { %v2142_v29 = vsel %vm2130_vm12, %v2128_v51, %v2140_v24 }
 0xcfb   : > { %v2141_v26 = vsel %vm2129_vm13, %v2127_v23, %v2139_v25 }
 0xcfc   : > { %5088 = vmatprep.mubr.msk.f32.mxu0 %vm833_vm0, %v2141_v26 }
 0xcfd   : > { %5089 = vmatmul.mubr.msk.f32.vlgmr.msra.gmra.mrb[8].mxu0 %vm833_vm0, %v2142_v29 }
 0xcfe   : > { %5465 = vmatpush3.bf16.msra.mxu0 %v5462_v18 }
 0xcff   : > { %5467 = vmatprep.subr.bf16.mxu0 %v5466_v32 }
 0xd02   : > { %5469 = vmatpush3.bf16.msra.mxu0 %v5466_v32 }
 0xd03   : > { %5471 = vmatprep.subr.bf16.mxu0 %v5470_v43 }
 0xdd0   : > { %v5090_v34 = vpop.f32.mrb[8].mxu0 }
 0xdd1   : > { %v2232_v35 = vadd.f32 %v5090_v34, %v4632_v33  ;;  %v2226_v36 = vpop.f32.mrb[9].mxu0  ;;  %v2521_v34 = vld [vmem:[#allocation22 + $0x38] sm:$0xff] }
 0xdd2   : > { %v2227_v37 = vadd.f32 %v4632_v33, %v2226_v36  ;;  %v2520_v33 = vld [vmem:[#allocation22 + $0x30] sm:$0xff] }
 0xdd3   : > { %v7355_v39 = vadd.f32 %v2232_v35, %v7319_v14  ;;  %v2396_v14 = vld [vmem:[#allocation19 + $0x150] sm:$0xff] }
 0xdd4   : > { %v7352_v38 = vadd.f32 %v2227_v37, %v7316_v13  ;;  %v5478_v13 = vpack.c.bf16 %v2395_v47, %v2394_v46  ;;  %v5482_v49 = vpack.c.bf16 %v2397_v48, %v2396_v14  ;;  %v5494_v37 = vpack.c.bf16 %v2521_v34, %v2520_v33  ;;  %v4644_v46 = vld [vmem:[#allocation20 + $0x3] ss:$0 sm:$0xff] }
 0xdd6   : > { %5099 = vmatprep.mubr.msk.f32.mxu0 %vm915_vm1, %v7352_v38  ;;  %5495 = vmatprep.subr.bf16.mxu1 %v5494_v37 }
 0xdd7   : > { %5100 = vmatmul.mubr.msk.f32.vlgmr.msra.gmra.mrb[10].mxu0 %vm915_vm1, %v7355_v39  ;;  %5497 = vmatpush3.bf16.msra.mxu1 %v5494_v37 }
 0xdd8   : > { %5473 = vmatpush3.bf16.msra.mxu0 %v5470_v43  ;;  %v5498_v43 = vpack.c.bf16 %v2615_v42, %v2614_v41 }
 0xdd9   : > { %5475 = vmatprep.subr.bf16.mxu0 %v5474_v45 }
 0xdda   : > { %5499 = vmatprep.subr.bf16.mxu1 %v5498_v43 }
 0xddc   : > { %5477 = vmatpush3.bf16.msra.mxu0 %v5474_v45 }
 0xddd   : > { %5479 = vmatprep.subr.bf16.mxu0 %v5478_v13 }
 0xde0   : > { %5481 = vmatpush3.bf16.msra.mxu0 %v5478_v13 }
 0xde1   : > { %5483 = vmatprep.subr.bf16.mxu0 %v5482_v49 }
 0xde4   : > { %5485 = vmatpush3.bf16.msra.mxu0 %v5482_v49 }
 0xde5   : > { %5487 = vmatprep.subr.bf16.mxu0 %v5486_v54 }
 0xde8   : > { %5489 = vmatpush3.bf16.msra.mxu0 %v5486_v54 }
 0xde9   : > { %5491 = vmatprep.subr.bf16.mxu0 %v5490_v60 }
 0xdec   : > { %5493 = vmatpush3.bf16.msra.mxu0 %v5490_v60  ;;  %v2761_v60 = vld [vmem:[#allocation19 + $0x188] sm:$0xff] }
 0xeaa   : > { %v5101_v59 = vpop.f32.mrb[10].mxu0 }
 0xeab   : > { %vm2324_vm2 = vcmp.ge.f32.partialorder %v5101_v59, 0.0  ;;  %v2334_v61 = vmul.f32 %v5101_v59, %v4637_v55  ;;  %v2314_v63 = vpop.f32.mrb[11].mxu0 }
 0xeac   : > { %vm2323_vm3 = vcmp.ge.f32.partialorder %v2314_v63, 0.0  ;;  %v2333_v0 = vmul.f32 %v4637_v55, %v2314_v63 }
 0xead   : > { %v2336_v1 = vsel %vm2324_vm2, %v5101_v59, %v2334_v61  ;;  %v2760_v59 = vld [vmem:[#allocation19 + $0x180] sm:$0xff]  ;;  %v2762_v61 = vld [vmem:[#allocation19 + $0x190] sm:$0xff] }
 0xeae   : > { %v2346_v3 = vmul.f32 %v4638_v62, %v2336_v1  ;;  %v2335_v4 = vsel %vm2323_vm3, %v2314_v63, %v2333_v0  ;;  %v2763_v63 = vld [vmem:[#allocation19 + $0x198] sm:$0xff]  ;;  %v2764_v1 = vld [vmem:[#allocation19 + $0x1a0] sm:$0xff] }
 0xeaf   : > { %v2345_v5 = vmul.f32 %v4638_v62, %v2335_v4  ;;  %v5506_v62 = vpack.c.bf16 %v2761_v60, %v2760_v59  ;;  %v5510_v0 = vpack.c.bf16 %v2763_v63, %v2762_v61  ;;  %v2766_v4 = vld [vmem:[#allocation19 + $0x1b0] sm:$0xff] }
 0xeb0   : > { %v2356_v6 = vadd.f32 %v4639_v2, %v2346_v3  ;;  %v2891_v59 = vld [vmem:[#allocation22 + $0x48] sm:$0xff] }
 0xeb1   : > { %v2355_v7 = vadd.f32 %v4639_v2, %v2345_v5  ;;  %v2765_v2 = vld [vmem:[#allocation19 + $0x1a8] sm:$0xff]  ;;  %v2767_v5 = vld [vmem:[#allocation19 + $0x1b8] sm:$0xff]  ;;  %v2985_v63 = vld [vmem:[#allocation13 + $0xa8] sm:$0xff] }
 0xeb2   : > { %v2364_v8 = vrot.slane %v2356_v6, 6  ;;  %v2358_v9 = vrot.slane %v2356_v6, 4  ;;  %v5514_v3 = vpack.c.bf16 %v2765_v2, %v2764_v1 }
 0xeb3   : > { %v2363_v10 = vrot.slane %v2355_v7, 6  ;;  %v2357_v11 = vrot.slane %v2355_v7, 4 }
 0xeb5   : > { %v2365_v12 = vsel %vm1212_vm4, %v2363_v10, %v2364_v8  ;;  %v2366_v15 = vsel %vm1212_vm4, %v2364_v8, %v2363_v10  ;;  %v2359_v16 = vsel %vm1600_vm14, %v2357_v11, %v2358_v9  ;;  %v2360_v17 = vsel %vm1600_vm14, %v2358_v9, %v2357_v11  ;;  %v2769_v8 = vld [vmem:[#allocation19 + $0x1c8] sm:$0xff] }
 0xeb6   : > { %2373 = vrot.lane.b32.xlu1 %v2365_v12, %s6545_s28  ;;  %v2367_v18 = vsel %vm1215_vm7, %v2366_v15, 0.0  ;;  %v2361_v21 = vsel %vm1603_vm15, %v2360_v17, 0.0  ;;  %v4650_v12 = vld [vmem:[#allocation14 + $0x4] ss:$0 sm:$0xff]  ;;  %v2770_v15 = vld [vmem:[#allocation19 + $0x1d0] sm:$0xff] }
 0xeb7   : > { %2371 = vrot.lane.b32.xlu0 %v2367_v18, %s6545_s28 }
 0xeba   : > { %2381 = vrot.lane.b32.xlu1 %v2356_v6, %s6544_s21  ;;  %v5518_v6 = vpack.c.bf16 %v2767_v5, %v2766_v4 }
 0xebb   : > { %2379 = vrot.lane.b32.xlu0 %v2355_v7, %s6544_s21  ;;  %v2768_v7 = vld [vmem:[#allocation19 + $0x1c0] sm:$0xff] }
 0xebc   : > { %v5522_v9 = vpack.c.bf16 %v2769_v8, %v2768_v7 }
 0xf28   : > { %v2374_v19 = vpop.permute.xlu1 %2373 }
 0xf29   : > { %v2372_v20 = vpop.permute.xlu0 %2371  ;;  %v2386_v23 = vsel %vm915_vm1, %v2359_v16, %v2374_v19  ;;  %v2771_v16 = vld [vmem:[#allocation19 + $0x1d8] sm:$0xff] }
 0xf2a   : > { %v2385_v51 = vsel %vm915_vm1, %v2361_v21, %v2372_v20  ;;  %v5526_v18 = vpack.c.bf16 %v2771_v16, %v2770_v15  ;;  %v4651_v20 = vld [vmem:[#allocation16 + $0x4] ss:$0 sm:$0xff]  ;;  %v2986_v16 = vld [vmem:[#allocation13 + $0xb0] sm:$0xff] }
 0xf2c   : > { %v2382_v22 = vpop.permute.xlu1 %2381 }
 0xf2d   : > { %v2380_v52 = vpop.permute.xlu0 %2379  ;;  %v2388_v25 = vsel %vm1254_vm8, %v2386_v23, %v2382_v22 }
 0xf2e   : > { %v2387_v24 = vsel %vm1254_vm8, %v2385_v51, %v2380_v52  ;;  %v4652_v52 = vld [vmem:[#allocation17 + $0x4] ss:$0 sm:$0xff] }
 0xf2f   : > { %5126 = vmatprep.mubr.msk.f32.mxu0 %vm1269_vm9, %v2387_v24 }
 0xf30   : > { %5127 = vmatmul.mubr.msk.f32.vlgmr.msra.gmra.mrb[12].mxu0 %vm1269_vm9, %v2388_v25 }
0x1003   : > { %v5128_v26 = vpop.f32.mrb[12].mxu0 }
0x1004   : > { %v4643_v29 = vmul.f32 -1.442695, %v5128_v26  ;;  %v2474_v30 = vpop.f32.mrb[13].mxu0 }
0x1005   : > { %v4642_v31 = vmul.f32 -1.442695, %v2474_v30 }
0x1006   : > { %5899 = vpow2.f32 %v4643_v29 }
0x1007   : > { %5901 = vpow2.f32 %v4642_v31 }
0x1010   : > { %v5900_v32 = vpop.eup %5899 }
0x1011   : > { %v5902_v35 = vpop.eup %5901  ;;  %v2490_v36 = vadd.f32 1.0, %v5900_v32 }
0x1012   : > { %v2489_v40 = vadd.f32 1.0, %v5902_v35 }
0x1013   : > { %5903 = vrcp.f32 %v2490_v36 }
0x1014   : > { %5905 = vrcp.f32 %v2489_v40 }
0x101d   : > { %v5904_v44 = vpop.eup %5903 }
0x101e   : > { %v5906_v45 = vpop.eup %5905  ;;  %2499 = vrot.lane.b32.xlu1 %v5904_v44, %s6546_s23 }
0x101f   : > { %2497 = vrot.lane.b32.xlu0 %v5906_v45, %s6546_s23 }
0x1090   : > { %v2500_v47 = vpop.permute.xlu1 %2499 }
0x1091   : > { %v2504_v13 = vmul.f32 %v5128_v26, %v2500_v47  ;;  %v2498_v14 = vpop.permute.xlu0 %2497 }
0x1092   : > { %v2503_v48 = vmul.f32 %v2498_v14, %v2474_v30 }
0x1093   : > { %v2516_v49 = vmul.f32 %v4644_v46, %v2504_v13  ;;  %vm2506_vm10 = vcmp.ge.f32.partialorder %v2504_v13, 0.0 }
0x1094   : > { %vm2505_vm11 = vcmp.ge.f32.partialorder %v2503_v48, 0.0  ;;  %v2515_v54 = vmul.f32 %v4644_v46, %v2503_v48 }
0x1095   : > { %v2518_v57 = vsel %vm2506_vm10, %v2504_v13, %v2516_v49 }
0x1096   : > { %v2517_v55 = vsel %vm2505_vm11, %v2503_v48, %v2515_v54 }
0x1097   : > { %5133 = vmatprep.mubr.msk.f32.mxu1 %vm833_vm0, %v2517_v55 }
0x1098   : > { %5134 = vmatmul.mubr.msk.f32.vlgmr.msra.gmra.mrb[10].mxu1 %vm833_vm0, %v2518_v57  ;;  %v2890_v57 = vld [vmem:[#allocation22 + $0x40] sm:$0xff] }
0x1099   : > { %5501 = vmatpush3.bf16.msra.mxu1 %v5498_v43  ;;  %5144 = vmatprep.mubr.msk.f32.mxu1 %vm915_vm1, %v7237_v27  ;;  %v5530_v61 = vpack.c.bf16 %v2891_v59, %v2890_v57 }
0x109a   : > { %5503 = vmatprep.subr.bf16.mxu1 %v5502_v56 }
0x109b   : > { %5531 = vmatprep.subr.bf16.mxu0 %v5530_v61 }
0x109c   : > { %5533 = vmatpush3.bf16.msra.mxu0 %v5530_v61 }
0x109d   : > { %5505 = vmatpush3.bf16.msra.mxu1 %v5502_v56 }
0x109e   : > { %5507 = vmatprep.subr.bf16.mxu1 %v5506_v62 }
0x10a0   : > { %5145 = vmatmul.mubr.msk.f32.vlgmr.msra.gmra.mrb[12].mxu1 %vm915_vm1, %v7239_v28 }
0x10a1   : > { %5509 = vmatpush3.bf16.msra.mxu1 %v5506_v62  ;;  %v2984_v62 = vld [vmem:[#allocation13 + $0xa0] sm:$0xff] }
0x10a2   : > { %5511 = vmatprep.subr.bf16.mxu1 %v5510_v0 }
0x10a5   : > { %5513 = vmatpush3.bf16.msra.mxu1 %v5510_v0  ;;  %v5534_v0 = vpack.c.bf16 %v2985_v63, %v2984_v62 }
0x10a6   : > { %5515 = vmatprep.subr.bf16.mxu1 %v5514_v3 }
0x10a7   : > { %5535 = vmatprep.subr.bf16.mxu0 %v5534_v0 }
0x10a9   : > { %5517 = vmatpush3.bf16.msra.mxu1 %v5514_v3  ;;  %v4657_v3 = vld [vmem:[#allocation20 + $0x4] ss:$0 sm:$0xff] }
0x10aa   : > { %5519 = vmatprep.subr.bf16.mxu1 %v5518_v6 }
0x10ad   : > { %5521 = vmatpush3.bf16.msra.mxu1 %v5518_v6 }
0x10ae   : > { %5523 = vmatprep.subr.bf16.mxu1 %v5522_v9 }
0x10b1   : > { %5525 = vmatpush3.bf16.msra.mxu1 %v5522_v9 }
0x10b2   : > { %5527 = vmatprep.subr.bf16.mxu1 %v5526_v18 }
0x10b5   : > { %5529 = vmatpush3.bf16.msra.mxu1 %v5526_v18 }
0x116b   : > { %v7391_v10 = vpop.f32.mrb[10].mxu1 }
0x116c   : > { %v7393_v11 = vpop.f32.mrb[11].mxu1 }
0x1173   : > { %v5146_v17 = vpop.f32.mrb[12].mxu1 }
0x1174   : > { %vm2694_vm12 = vcmp.ge.f32.partialorder %v5146_v17, 0.0  ;;  %v2704_v19 = vmul.f32 %v5146_v17, %v4650_v12  ;;  %v2684_v21 = vpop.f32.mrb[13].mxu1 }
0x1175   : > { %vm2693_vm13 = vcmp.ge.f32.partialorder %v2684_v21, 0.0  ;;  %v2703_v22 = vmul.f32 %v4650_v12, %v2684_v21 }
0x1176   : > { %v2706_v51 = vsel %vm2694_vm12, %v5146_v17, %v2704_v19  ;;  %v2987_v17 = vld [vmem:[#allocation13 + $0xb8] sm:$0xff]  ;;  %v4658_v19 = vld [vmem:[#allocation23 + $0x4] ss:$0 sm:$0xff] }
0x1177   : > { %v2716_v23 = vmul.f32 %v4651_v20, %v2706_v51  ;;  %v2705_v24 = vsel %vm2693_vm13, %v2684_v21, %v2703_v22  ;;  %v5538_v18 = vpack.c.bf16 %v2987_v17, %v2986_v16 }
0x1178   : > { %v2715_v25 = vmul.f32 %v4651_v20, %v2705_v24  ;;  %v3136_v24 = vld [vmem:[#allocation19 + $0x1e0] sm:$0xff] }
0x1179   : > { %v2726_v26 = vadd.f32 %v4652_v52, %v2716_v23 }
0x117a   : > { %v2725_v29 = vadd.f32 %v4652_v52, %v2715_v25  ;;  %v3137_v25 = vld [vmem:[#allocation19 + $0x1e8] sm:$0xff] }
0x117b   : > { %v2734_v30 = vrot.slane %v2726_v26, 7  ;;  %v2728_v31 = vrot.slane %v2726_v26, 6 }
0x117c   : > { %v2733_v32 = vrot.slane %v2725_v29, 7  ;;  %v2727_v33 = vrot.slane %v2725_v29, 6 }
0x117e   : > { %v2735_v34 = vsel %vm1225_vm5, %v2733_v32, %v2734_v30  ;;  %v2736_v35 = vsel %vm1225_vm5, %v2734_v30, %v2733_v32  ;;  %v2729_v36 = vsel %vm1212_vm4, %v2727_v33, %v2728_v31  ;;  %v2730_v37 = vsel %vm1212_vm4, %v2728_v31, %v2727_v33  ;;  %v3139_v30 = vld [vmem:[#allocation19 + $0x1f8] sm:$0xff]  ;;  %v3140_v32 = vld [vmem:[#allocation19 + $0x200] sm:$0xff]  ;;  %v3141_v33 = vld [vmem:[#allocation19 + $0x208] sm:$0xff] }
0x117f   : > { %2743 = vrot.lane.b32.xlu1 %v2735_v34, %s6545_s28  ;;  %v2737_v40 = vsel %vm1228_vm6, %v2736_v35, 0.0  ;;  %v2731_v43 = vsel %vm1215_vm7, %v2730_v37, 0.0  ;;  %v3143_v34 = vld [vmem:[#allocation19 + $0x218] sm:$0xff]  ;;  %v3145_v37 = vld [vmem:[#allocation19 + $0x228] sm:$0xff] }
0x1180   : > { %2741 = vrot.lane.b32.xlu0 %v2737_v40, %s6545_s28 }
0x1183   : > { %2751 = vrot.lane.b32.xlu1 %v2726_v26, %s6544_s21  ;;  %v3138_v26 = vld [vmem:[#allocation19 + $0x1f0] sm:$0xff] }
0x1184   : > { %2749 = vrot.lane.b32.xlu0 %v2725_v29, %s6544_s21  ;;  %v5542_v29 = vpack.c.bf16 %v3137_v25, %v3136_v24  ;;  %v5546_v31 = vpack.c.bf16 %v3139_v30, %v3138_v26  ;;  %v3267_v24 = vld [vmem:[#allocation22 + $0x58] sm:$0xff]  ;;  %v3361_v30 = vld [vmem:[#allocation13 + $0xc8] sm:$0xff] }
0x11f1   : > { %v2744_v41 = vpop.permute.xlu1 %2743 }
0x11f2   : > { %v2742_v42 = vpop.permute.xlu0 %2741  ;;  %v2756_v47 = vsel %vm915_vm1, %v2729_v36, %v2744_v41  ;;  %v3144_v36 = vld [vmem:[#allocation19 + $0x220] sm:$0xff]  ;;  %v4663_v41 = vld [vmem:[#allocation14 + $0x5] ss:$0 sm:$0xff] }
0x11f3   : > { %v2755_v45 = vsel %vm915_vm1, %v2731_v43, %v2742_v42  ;;  %v5558_v40 = vpack.c.bf16 %v3145_v37, %v3144_v36  ;;  %v3146_v42 = vld [vmem:[#allocation19 + $0x230] sm:$0xff]  ;;  %v3147_v43 = vld [vmem:[#allocation19 + $0x238] sm:$0xff] }
0x11f5   : > { %v2752_v44 = vpop.permute.xlu1 %2751 }
0x11f6   : > { %v2750_v46 = vpop.permute.xlu0 %2749  ;;  %v2758_v14 = vsel %vm1254_vm8, %v2756_v47, %v2752_v44  ;;  %v4664_v47 = vld [vmem:[#allocation16 + $0x5] ss:$0 sm:$0xff] }
0x11f7   : > { %v2757_v13 = vsel %vm1254_vm8, %v2755_v45, %v2750_v46  ;;  %v5562_v45 = vpack.c.bf16 %v3147_v43, %v3146_v42  ;;  %v3362_v43 = vld [vmem:[#allocation13 + $0xd0] sm:$0xff] }
0x11f8   : > { %5171 = vmatprep.mubr.msk.f32.mxu1 %vm1269_vm9, %v2757_v13 }
0x11f9   : > { %5172 = vmatmul.mubr.msk.f32.vlgmr.msra.gmra.mrb[14].mxu1 %vm1269_vm9, %v2758_v14 }
0x12cc   : > { %v5173_v48 = vpop.f32.mrb[14].mxu1 }
0x12cd   : > { %v4656_v49 = vmul.f32 -1.442695, %v5173_v48  ;;  %v2844_v50 = vpop.f32.mrb[15].mxu1 }
0x12ce   : > { %v4655_v53 = vmul.f32 -1.442695, %v2844_v50 }
0x12cf   : > { %5907 = vpow2.f32 %v4656_v49  ;;  %v4665_v49 = vld [vmem:[#allocation17 + $0x5] ss:$0 sm:$0xff] }
0x12d0   : > { %5909 = vpow2.f32 %v4655_v53 }
0x12d9   : > { %v5908_v54 = vpop.eup %5907 }
0x12da   : > { %v5910_v55 = vpop.eup %5909  ;;  %v2860_v56 = vadd.f32 1.0, %v5908_v54 }
0x12db   : > { %v2859_v60 = vadd.f32 1.0, %v5910_v55 }
0x12dc   : > { %5911 = vrcp.f32 %v2860_v56 }
0x12dd   : > { %5913 = vrcp.f32 %v2859_v60 }
0x12e6   : > { %v5912_v1 = vpop.eup %5911 }
0x12e7   : > { %v5914_v2 = vpop.eup %5913  ;;  %2869 = vrot.lane.b32.xlu1 %v5912_v1, %s6546_s23 }
0x12e8   : > { %2867 = vrot.lane.b32.xlu0 %v5914_v2, %s6546_s23 }
0x1359   : > { %v2870_v4 = vpop.permute.xlu1 %2869 }
0x135a   : > { %v2874_v5 = vmul.f32 %v5173_v48, %v2870_v4  ;;  %v2868_v6 = vpop.permute.xlu0 %2867 }
0x135b   : > { %v2873_v7 = vmul.f32 %v2868_v6, %v2844_v50 }
0x135c   : > { %v2886_v8 = vmul.f32 %v4657_v3, %v2874_v5  ;;  %vm2876_vm2 = vcmp.ge.f32.partialorder %v2874_v5, 0.0 }
0x135d   : > { %vm2875_vm3 = vcmp.ge.f32.partialorder %v2873_v7, 0.0  ;;  %v2885_v9 = vmul.f32 %v4657_v3, %v2873_v7 }
0x135e   : > { %v2888_v15 = vsel %vm2876_vm2, %v2874_v5, %v2886_v8 }
0x135f   : > { %v2887_v12 = vsel %vm2875_vm3, %v2873_v7, %v2885_v9 }
0x1360   : > { %5178 = vmatprep.mubr.msk.f32.mxu0 %vm833_vm0, %v2887_v12 }
0x1361   : > { %5179 = vmatmul.mubr.msk.f32.vlgmr.msra.gmra.mrb[14].mxu0 %vm833_vm0, %v2888_v15 }
0x1362   : > { %5537 = vmatpush3.bf16.msra.mxu0 %v5534_v0 }
0x1363   : > { %5539 = vmatprep.subr.bf16.mxu0 %v5538_v18 }
0x1366   : > { %5541 = vmatpush3.bf16.msra.mxu0 %v5538_v18 }
0x1367   : > { %5543 = vmatprep.subr.bf16.mxu0 %v5542_v29 }
0x1434   : > { %v5180_v20 = vpop.f32.mrb[14].mxu0 }
0x1435   : > { %v2978_v21 = vadd.f32 %v5180_v20, %v4658_v19  ;;  %v2972_v22 = vpop.f32.mrb[15].mxu0 }
0x1436   : > { %v2973_v51 = vadd.f32 %v4658_v19, %v2972_v22 }
0x1437   : > { %v7425_v23 = vadd.f32 %v2978_v21, %v7239_v28  ;;  %v3142_v28 = vld [vmem:[#allocation19 + $0x210] sm:$0xff] }
0x1438   : > { %v7422_v52 = vadd.f32 %v2973_v51, %v7237_v27  ;;  %v5550_v27 = vpack.c.bf16 %v3141_v33, %v3140_v32  ;;  %v5554_v35 = vpack.c.bf16 %v3143_v34, %v3142_v28  ;;  %v3266_v51 = vld [vmem:[#allocation22 + $0x50] sm:$0xff] }
0x1439   : > { %v5566_v26 = vpack.c.bf16 %v3267_v24, %v3266_v51 }
0x143a   : > { %5189 = vmatprep.mubr.msk.f32.mxu0 %vm915_vm1, %v7422_v52 }
0x143b   : > { %5190 = vmatmul.mubr.msk.f32.vlgmr.msra.gmra.mrb[16].mxu0 %vm915_vm1, %v7425_v23  ;;  %5567 = vmatprep.subr.bf16.mxu1 %v5566_v26 }
0x143c   : > { %5545 = vmatpush3.bf16.msra.mxu0 %v5542_v29  ;;  %5569 = vmatpush3.bf16.msra.mxu1 %v5566_v26  ;;  %v3360_v29 = vld [vmem:[#allocation13 + $0xc0] sm:$0xff] }
0x143d   : > { %5547 = vmatprep.subr.bf16.mxu0 %v5546_v31 }
0x1440   : > { %5549 = vmatpush3.bf16.msra.mxu0 %v5546_v31  ;;  %v5570_v31 = vpack.c.bf16 %v3361_v30, %v3360_v29 }
0x1441   : > { %5551 = vmatprep.subr.bf16.mxu0 %v5550_v27 }
0x1442   : > { %5571 = vmatprep.subr.bf16.mxu1 %v5570_v31 }
0x1444   : > { %5553 = vmatpush3.bf16.msra.mxu0 %v5550_v27  ;;  %v4670_v27 = vld [vmem:[#allocation20 + $0x5] ss:$0 sm:$0xff] }
0x1445   : > { %5555 = vmatprep.subr.bf16.mxu0 %v5554_v35 }
0x1448   : > { %5557 = vmatpush3.bf16.msra.mxu0 %v5554_v35 }
0x1449   : > { %5559 = vmatprep.subr.bf16.mxu0 %v5558_v40 }
0x144c   : > { %5561 = vmatpush3.bf16.msra.mxu0 %v5558_v40 }
0x144d   : > { %5563 = vmatprep.subr.bf16.mxu0 %v5562_v45 }
0x1450   : > { %5565 = vmatpush3.bf16.msra.mxu0 %v5562_v45 }
0x150e   : > { %v5191_v44 = vpop.f32.mrb[16].mxu0 }
0x150f   : > { %vm3070_vm10 = vcmp.ge.f32.partialorder %v5191_v44, 0.0  ;;  %v3080_v46 = vmul.f32 %v5191_v44, %v4663_v41  ;;  %v3060_v13 = vpop.f32.mrb[17].mxu0 }
0x1510   : > { %vm3069_vm11 = vcmp.ge.f32.partialorder %v3060_v13, 0.0  ;;  %v3079_v14 = vmul.f32 %v4663_v41, %v3060_v13 }
0x1511   : > { %v3082_v48 = vsel %vm3070_vm10, %v5191_v44, %v3080_v46  ;;  %v3363_v44 = vld [vmem:[#allocation13 + $0xd8] sm:$0xff]  ;;  %v4671_v46 = vld [vmem:[#allocation23 + $0x5] ss:$0 sm:$0xff] }
0x1512   : > { %v3092_v50 = vmul.f32 %v4664_v47, %v3082_v48  ;;  %v3081_v53 = vsel %vm3069_vm11, %v3060_v13, %v3079_v14  ;;  %v5574_v45 = vpack.c.bf16 %v3363_v44, %v3362_v43 }
0x1513   : > { %v3091_v54 = vmul.f32 %v4664_v47, %v3081_v53  ;;  %v3512_v53 = vld [vmem:[#allocation19 + $0x240] sm:$0xff] }
0x1514   : > { %v3102_v55 = vadd.f32 %v4665_v49, %v3092_v50 }
0x1515   : > { %v3101_v56 = vadd.f32 %v4665_v49, %v3091_v54  ;;  %v3513_v54 = vld [vmem:[#allocation19 + $0x248] sm:$0xff] }
0x1516   : > { %v3110_v57 = vrot.slane %v3102_v55, 6  ;;  %v3104_v59 = vrot.slane %v3102_v55, 4 }
0x1517   : > { %v3109_v60 = vrot.slane %v3101_v56, 6  ;;  %v3103_v61 = vrot.slane %v3101_v56, 4 }
0x1519   : > { %v3111_v62 = vsel %vm1212_vm4, %v3109_v60, %v3110_v57  ;;  %v3112_v63 = vsel %vm1212_vm4, %v3110_v57, %v3109_v60  ;;  %v3105_v0 = vsel %vm1600_vm14, %v3103_v61, %v3104_v59  ;;  %v3106_v1 = vsel %vm1600_vm14, %v3104_v59, %v3103_v61  ;;  %v3515_v57 = vld [vmem:[#allocation19 + $0x258] sm:$0xff]  ;;  %v3516_v60 = vld [vmem:[#allocation19 + $0x260] sm:$0xff]  ;;  %v3517_v61 = vld [vmem:[#allocation19 + $0x268] sm:$0xff] }
0x151a   : > { %3119 = vrot.lane.b32.xlu1 %v3111_v62, %s6545_s28  ;;  %v3113_v2 = vsel %vm1215_vm7, %v3112_v63, 0.0  ;;  %v3107_v5 = vsel %vm1603_vm15, %v3106_v1, 0.0  ;;  %v3519_v62 = vld [vmem:[#allocation19 + $0x278] sm:$0xff]  ;;  %v3521_v1 = vld [vmem:[#allocation19 + $0x288] sm:$0xff] }
0x151b   : > { %3117 = vrot.lane.b32.xlu0 %v3113_v2, %s6545_s28 }
0x151e   : > { %3127 = vrot.lane.b32.xlu1 %v3102_v55, %s6544_s21  ;;  %v3514_v55 = vld [vmem:[#allocation19 + $0x250] sm:$0xff] }
0x151f   : > { %3125 = vrot.lane.b32.xlu0 %v3101_v56, %s6544_s21  ;;  %v5578_v56 = vpack.c.bf16 %v3513_v54, %v3512_v53  ;;  %v5582_v59 = vpack.c.bf16 %v3515_v57, %v3514_v55  ;;  %v3643_v53 = vld [vmem:[#allocation22 + $0x68] sm:$0xff] }
0x1520   : > { %v3737_v57 = vld [vmem:[#allocation13 + $0xe8] sm:$0xff] }
0x158c   : > { %v3120_v3 = vpop.permute.xlu1 %3119 }
0x158d   : > { %v3118_v4 = vpop.permute.xlu0 %3117  ;;  %v3132_v9 = vsel %vm915_vm1, %v3105_v0, %v3120_v3  ;;  %v3520_v0 = vld [vmem:[#allocation19 + $0x280] sm:$0xff]  ;;  %v4676_v3 = vld [vmem:[#allocation14 + $0x6] ss:$0 sm:$0xff] }
0x158e   : > { %v3131_v7 = vsel %vm915_vm1, %v3107_v5, %v3118_v4  ;;  %v5594_v2 = vpack.c.bf16 %v3521_v1, %v3520_v0  ;;  %v3522_v4 = vld [vmem:[#allocation19 + $0x290] sm:$0xff]  ;;  %v3523_v5 = vld [vmem:[#allocation19 + $0x298] sm:$0xff] }
0x1590   : > { %v3128_v6 = vpop.permute.xlu1 %3127 }
0x1591   : > { %v3126_v8 = vpop.permute.xlu0 %3125  ;;  %v3134_v15 = vsel %vm1254_vm8, %v3132_v9, %v3128_v6  ;;  %v4677_v9 = vld [vmem:[#allocation16 + $0x6] ss:$0 sm:$0xff] }
0x1592   : > { %v3133_v12 = vsel %vm1254_vm8, %v3131_v7, %v3126_v8  ;;  %v5598_v7 = vpack.c.bf16 %v3523_v5, %v3522_v4  ;;  %v3738_v5 = vld [vmem:[#allocation13 + $0xf0] sm:$0xff] }
0x1593   : > { %5216 = vmatprep.mubr.msk.f32.mxu0 %vm1269_vm9, %v3133_v12 }
0x1594   : > { %5217 = vmatmul.mubr.msk.f32.vlgmr.msra.gmra.mrb[18].mxu0 %vm1269_vm9, %v3134_v15 }
0x1667   : > { %v5218_v16 = vpop.f32.mrb[18].mxu0 }
0x1668   : > { %v4669_v17 = vmul.f32 -1.442695, %v5218_v16  ;;  %v3220_v18 = vpop.f32.mrb[19].mxu0 }
0x1669   : > { %v4668_v19 = vmul.f32 -1.442695, %v3220_v18 }
0x166a   : > { %5915 = vpow2.f32 %v4669_v17  ;;  %v4678_v17 = vld [vmem:[#allocation17 + $0x6] ss:$0 sm:$0xff] }
0x166b   : > { %5917 = vpow2.f32 %v4668_v19 }
0x1674   : > { %v5916_v20 = vpop.eup %5915 }
0x1675   : > { %v5918_v21 = vpop.eup %5917  ;;  %v3236_v22 = vadd.f32 1.0, %v5916_v20 }
0x1676   : > { %v3235_v25 = vadd.f32 1.0, %v5918_v21 }
0x1677   : > { %5919 = vrcp.f32 %v3236_v22 }
0x1678   : > { %5921 = vrcp.f32 %v3235_v25 }
0x1681   : > { %v5920_v32 = vpop.eup %5919 }
0x1682   : > { %v5922_v33 = vpop.eup %5921  ;;  %3245 = vrot.lane.b32.xlu1 %v5920_v32, %s6546_s23 }
0x1683   : > { %3243 = vrot.lane.b32.xlu0 %v5922_v33, %s6546_s23 }
0x16f4   : > { %v3246_v28 = vpop.permute.xlu1 %3245 }
0x16f5   : > { %v3250_v34 = vmul.f32 %v5218_v16, %v3246_v28  ;;  %v3244_v35 = vpop.permute.xlu0 %3243 }
0x16f6   : > { %v3249_v36 = vmul.f32 %v3244_v35, %v3220_v18 }
0x16f7   : > { %v3262_v37 = vmul.f32 %v4670_v27, %v3250_v34  ;;  %vm3252_vm12 = vcmp.ge.f32.partialorder %v3250_v34, 0.0 }
0x16f8   : > { %vm3251_vm13 = vcmp.ge.f32.partialorder %v3249_v36, 0.0  ;;  %v3261_v40 = vmul.f32 %v4670_v27, %v3249_v36 }
0x16f9   : > { %v3264_v42 = vsel %vm3252_vm12, %v3250_v34, %v3262_v37 }
0x16fa   : > { %v3263_v41 = vsel %vm3251_vm13, %v3249_v36, %v3261_v40 }
0x16fb   : > { %5223 = vmatprep.mubr.msk.f32.mxu1 %vm833_vm0, %v3263_v41 }
0x16fc   : > { %5224 = vmatmul.mubr.msk.f32.vlgmr.msra.gmra.mrb[16].mxu1 %vm833_vm0, %v3264_v42 }
0x16fd   : > { %5573 = vmatpush3.bf16.msra.mxu1 %v5570_v31 }
0x16fe   : > { %5575 = vmatprep.subr.bf16.mxu1 %v5574_v45 }
0x1701   : > { %5577 = vmatpush3.bf16.msra.mxu1 %v5574_v45 }
0x1702   : > { %5579 = vmatprep.subr.bf16.mxu1 %v5578_v56 }
0x17cf   : > { %v5225_v47 = vpop.f32.mrb[16].mxu1 }
0x17d0   : > { %v3354_v13 = vadd.f32 %v5225_v47, %v4671_v46  ;;  %v3348_v14 = vpop.f32.mrb[17].mxu1 }
0x17d1   : > { %v3349_v48 = vadd.f32 %v4671_v46, %v3348_v14 }
0x17d2   : > { %v7461_v50 = vadd.f32 %v3354_v13, %v7425_v23  ;;  %v3518_v23 = vld [vmem:[#allocation19 + $0x270] sm:$0xff] }
0x17d3   : > { %v7458_v49 = vadd.f32 %v3349_v48, %v7422_v52  ;;  %v5586_v52 = vpack.c.bf16 %v3517_v61, %v3516_v60  ;;  %v5590_v63 = vpack.c.bf16 %v3519_v62, %v3518_v23  ;;  %v3642_v48 = vld [vmem:[#allocation22 + $0x60] sm:$0xff] }
0x17d4   : > { %v5602_v55 = vpack.c.bf16 %v3643_v53, %v3642_v48 }
0x17d5   : > { %5234 = vmatprep.mubr.msk.f32.mxu1 %vm915_vm1, %v7458_v49 }
0x17d6   : > { %5235 = vmatmul.mubr.msk.f32.vlgmr.msra.gmra.mrb[18].mxu1 %vm915_vm1, %v7461_v50  ;;  %5603 = vmatprep.subr.bf16.mxu0 %v5602_v55 }
0x17d7   : > { %5581 = vmatpush3.bf16.msra.mxu1 %v5578_v56  ;;  %5605 = vmatpush3.bf16.msra.mxu0 %v5602_v55  ;;  %v3736_v56 = vld [vmem:[#allocation13 + $0xe0] sm:$0xff] }
0x17d8   : > { %5583 = vmatprep.subr.bf16.mxu1 %v5582_v59 }
0x17db   : > { %5585 = vmatpush3.bf16.msra.mxu1 %v5582_v59  ;;  %v5606_v59 = vpack.c.bf16 %v3737_v57, %v3736_v56 }
0x17dc   : > { %5587 = vmatprep.subr.bf16.mxu1 %v5586_v52 }
0x17dd   : > { %5607 = vmatprep.subr.bf16.mxu0 %v5606_v59 }
0x17df   : > { %5589 = vmatpush3.bf16.msra.mxu1 %v5586_v52  ;;  %v4683_v52 = vld [vmem:[#allocation20 + $0x6] ss:$0 sm:$0xff] }
0x17e0   : > { %5591 = vmatprep.subr.bf16.mxu1 %v5590_v63 }
0x17e3   : > { %5593 = vmatpush3.bf16.msra.mxu1 %v5590_v63 }
0x17e4   : > { %5595 = vmatprep.subr.bf16.mxu1 %v5594_v2 }
0x17e7   : > { %5597 = vmatpush3.bf16.msra.mxu1 %v5594_v2 }
0x17e8   : > { %5599 = vmatprep.subr.bf16.mxu1 %v5598_v7 }
0x17eb   : > { %5601 = vmatpush3.bf16.msra.mxu1 %v5598_v7 }
0x18a9   : > { %v5236_v6 = vpop.f32.mrb[18].mxu1 }
0x18aa   : > { %vm3446_vm2 = vcmp.ge.f32.partialorder %v5236_v6, 0.0  ;;  %v3456_v8 = vmul.f32 %v5236_v6, %v4676_v3  ;;  %v3436_v12 = vpop.f32.mrb[19].mxu1 }
0x18ab   : > { %vm3445_vm3 = vcmp.ge.f32.partialorder %v3436_v12, 0.0  ;;  %v3455_v15 = vmul.f32 %v4676_v3, %v3436_v12 }
0x18ac   : > { %v3458_v16 = vsel %vm3446_vm2, %v5236_v6, %v3456_v8  ;;  %v3739_v6 = vld [vmem:[#allocation13 + $0xf8] sm:$0xff]  ;;  %v4684_v8 = vld [vmem:[#allocation23 + $0x6] ss:$0 sm:$0xff] }
0x18ad   : > { %v3468_v18 = vmul.f32 %v4677_v9, %v3458_v16  ;;  %v3457_v19 = vsel %vm3445_vm3, %v3436_v12, %v3455_v15  ;;  %v5610_v7 = vpack.c.bf16 %v3739_v6, %v3738_v5 }
0x18ae   : > { %v3467_v20 = vmul.f32 %v4677_v9, %v3457_v19  ;;  %v3888_v19 = vld [vmem:[#allocation19 + $0x2a0] sm:$0xff] }
0x18af   : > { %v3478_v21 = vadd.f32 %v4678_v17, %v3468_v18 }
0x18b0   : > { %v3477_v22 = vadd.f32 %v4678_v17, %v3467_v20  ;;  %v3889_v20 = vld [vmem:[#allocation19 + $0x2a8] sm:$0xff] }
0x18b1   : > { %v3486_v51 = vrot.slane %v3478_v21, 7  ;;  %v3480_v24 = vrot.slane %v3478_v21, 6 }
0x18b2   : > { %v3485_v25 = vrot.slane %v3477_v22, 7  ;;  %v3479_v26 = vrot.slane %v3477_v22, 6 }
0x18b4   : > { %v3487_v29 = vsel %vm1225_vm5, %v3485_v25, %v3486_v51  ;;  %v3488_v30 = vsel %vm1225_vm5, %v3486_v51, %v3485_v25  ;;  %v3481_v31 = vsel %vm1212_vm4, %v3479_v26, %v3480_v24  ;;  %v3482_v32 = vsel %vm1212_vm4, %v3480_v24, %v3479_v26  ;;  %v3891_v51 = vld [vmem:[#allocation19 + $0x2b8] sm:$0xff]  ;;  %v3892_v25 = vld [vmem:[#allocation19 + $0x2c0] sm:$0xff]  ;;  %v3893_v26 = vld [vmem:[#allocation19 + $0x2c8] sm:$0xff] }
0x18b5   : > { %3495 = vrot.lane.b32.xlu1 %v3487_v29, %s6545_s28  ;;  %v3489_v33 = vsel %vm1228_vm6, %v3488_v30, 0.0  ;;  %v3483_v34 = vsel %vm1215_vm7, %v3482_v32, 0.0  ;;  %v3895_v29 = vld [vmem:[#allocation19 + $0x2d8] sm:$0xff]  ;;  %v3897_v32 = vld [vmem:[#allocation19 + $0x2e8] sm:$0xff] }
0x18b6   : > { %3493 = vrot.lane.b32.xlu0 %v3489_v33, %s6545_s28 }
0x18b9   : > { %3503 = vrot.lane.b32.xlu1 %v3478_v21, %s6544_s21  ;;  %v3890_v21 = vld [vmem:[#allocation19 + $0x2b0] sm:$0xff] }
0x18ba   : > { %3501 = vrot.lane.b32.xlu0 %v3477_v22, %s6544_s21  ;;  %v5614_v22 = vpack.c.bf16 %v3889_v20, %v3888_v19  ;;  %v5618_v24 = vpack.c.bf16 %v3891_v51, %v3890_v21  ;;  %v4115_v21 = vld [vmem:[#allocation26] sm:$0xff] }
0x1927   : > { %v3496_v27 = vpop.permute.xlu1 %3495 }
0x1928   : > { %v3494_v28 = vpop.permute.xlu0 %3493  ;;  %v3508_v40 = vsel %vm915_vm1, %v3481_v31, %v3496_v27  ;;  %v3896_v31 = vld [vmem:[#allocation19 + $0x2e0] sm:$0xff]  ;;  %v4689_v27 = vld [vmem:[#allocation14 + $0x7] ss:$0 sm:$0xff] }
0x1929   : > { %v3507_v36 = vsel %vm915_vm1, %v3483_v34, %v3494_v28  ;;  %v5630_v33 = vpack.c.bf16 %v3897_v32, %v3896_v31  ;;  %v3898_v28 = vld [vmem:[#allocation19 + $0x2f0] sm:$0xff]  ;;  %v3899_v34 = vld [vmem:[#allocation19 + $0x2f8] sm:$0xff] }
0x192b   : > { %v3504_v35 = vpop.permute.xlu1 %3503 }
0x192c   : > { %v3502_v37 = vpop.permute.xlu0 %3501  ;;  %v3510_v42 = vsel %vm1254_vm8, %v3508_v40, %v3504_v35  ;;  %v4690_v40 = vld [vmem:[#allocation16 + $0x7] ss:$0 sm:$0xff] }
0x192d   : > { %v3509_v41 = vsel %vm1254_vm8, %v3507_v36, %v3502_v37  ;;  %v5634_v36 = vpack.c.bf16 %v3899_v34, %v3898_v28  ;;  %v4117_v28 = vld [vmem:[#allocation26 + $0x10] sm:$0xff]  ;;  %v4118_v34 = vld [vmem:[#allocation26 + $0x18] sm:$0xff] }
0x192e   : > { %5261 = vmatprep.mubr.msk.f32.mxu1 %vm1269_vm9, %v3509_v41 }
0x192f   : > { %5262 = vmatmul.mubr.msk.f32.vlgmr.msra.gmra.mrb[20].mxu1 %vm1269_vm9, %v3510_v42 }
0x1a02   : > { %v5263_v43 = vpop.f32.mrb[20].mxu1 }
0x1a03   : > { %v4682_v44 = vmul.f32 -1.442695, %v5263_v43  ;;  %v3596_v45 = vpop.f32.mrb[21].mxu1 }
0x1a04   : > { %v4681_v46 = vmul.f32 -1.442695, %v3596_v45 }
0x1a05   : > { %5923 = vpow2.f32 %v4682_v44  ;;  %v4691_v44 = vld [vmem:[#allocation17 + $0x7] ss:$0 sm:$0xff] }
0x1a06   : > { %5925 = vpow2.f32 %v4681_v46 }
0x1a0f   : > { %v5924_v47 = vpop.eup %5923 }
0x1a10   : > { %v5926_v13 = vpop.eup %5925  ;;  %v3612_v14 = vadd.f32 1.0, %v5924_v47 }
0x1a11   : > { %v3611_v54 = vadd.f32 1.0, %v5926_v13 }
0x1a12   : > { %5927 = vrcp.f32 %v3612_v14 }
0x1a13   : > { %5929 = vrcp.f32 %v3611_v54 }
0x1a1c   : > { %v5928_v60 = vpop.eup %5927 }
0x1a1d   : > { %v5930_v61 = vpop.eup %5929  ;;  %3621 = vrot.lane.b32.xlu1 %v5928_v60, %s6546_s23 }
0x1a1e   : > { %3619 = vrot.lane.b32.xlu0 %v5930_v61, %s6546_s23 }
0x1a8f   : > { %v3622_v23 = vpop.permute.xlu1 %3621 }
0x1a90   : > { %v3626_v62 = vmul.f32 %v5263_v43, %v3622_v23  ;;  %v3620_v63 = vpop.permute.xlu0 %3619 }
0x1a91   : > { %v3625_v0 = vmul.f32 %v3620_v63, %v3596_v45 }
0x1a92   : > { %v3638_v1 = vmul.f32 %v4683_v52, %v3626_v62  ;;  %vm3628_vm5 = vcmp.ge.f32.partialorder %v3626_v62, 0.0 }
0x1a93   : > { %vm3627_vm6 = vcmp.ge.f32.partialorder %v3625_v0, 0.0  ;;  %v3637_v2 = vmul.f32 %v4683_v52, %v3625_v0 }
0x1a94   : > { %v3640_v4 = vsel %vm3628_vm5, %v3626_v62, %v3638_v1 }
0x1a95   : > { %v3639_v3 = vsel %vm3627_vm6, %v3625_v0, %v3637_v2 }
0x1a96   : > { %5268 = vmatprep.mubr.msk.f32.mxu0 %vm833_vm0, %v3639_v3 }
0x1a97   : > { %5269 = vmatmul.mubr.msk.f32.vlgmr.msra.gmra.mrb[20].mxu0 %vm833_vm0, %v3640_v4 }
0x1a98   : > { %5609 = vmatpush3.bf16.msra.mxu0 %v5606_v59 }
0x1a99   : > { %5611 = vmatprep.subr.bf16.mxu0 %v5610_v7 }
0x1a9c   : > { %5613 = vmatpush3.bf16.msra.mxu0 %v5610_v7 }
0x1a9d   : > { %5615 = vmatprep.subr.bf16.mxu0 %v5614_v22 }
0x1b6a   : > { %v5270_v9 = vpop.f32.mrb[20].mxu0 }
0x1b6b   : > { %v3730_v12 = vadd.f32 %v5270_v9, %v4684_v8  ;;  %v3724_v15 = vpop.f32.mrb[21].mxu0 }
0x1b6c   : > { %v3725_v16 = vadd.f32 %v4684_v8, %v3724_v15  ;;  %v4018_v15 = vld [vmem:[#allocation22 + $0x70] sm:$0xff] }
0x1b6d   : > { %v7497_v18 = vadd.f32 %v3730_v12, %v7461_v50  ;;  %v3894_v50 = vld [vmem:[#allocation19 + $0x2d0] sm:$0xff] }
0x1b6e   : > { %v7494_v17 = vadd.f32 %v3725_v16, %v7458_v49  ;;  %v5622_v49 = vpack.c.bf16 %v3893_v26, %v3892_v25  ;;  %v5626_v30 = vpack.c.bf16 %v3895_v29, %v3894_v50  ;;  %v4019_v16 = vld [vmem:[#allocation22 + $0x78] sm:$0xff] }
0x1b6f   : > { %v5638_v20 = vpack.c.bf16 %v4019_v16, %v4018_v15  ;;  %v4696_v26 = vld [vmem:[#allocation20 + $0x7] ss:$0 sm:$0xff] }
0x1b70   : > { %5279 = vmatprep.mubr.msk.f32.mxu0 %vm915_vm1, %v7494_v17 }
0x1b71   : > { %5280 = vmatmul.mubr.msk.f32.vlgmr.msra.gmra.mrb[22].mxu0 %vm915_vm1, %v7497_v18  ;;  %5639 = vmatprep.subr.bf16.mxu1 %v5638_v20 }
0x1b72   : > { %5617 = vmatpush3.bf16.msra.mxu0 %v5614_v22  ;;  %5641 = vmatpush3.bf16.msra.mxu1 %v5638_v20  ;;  %v4116_v22 = vld [vmem:[#allocation26 + $0x8] sm:$0xff] }
0x1b73   : > { %5619 = vmatprep.subr.bf16.mxu0 %v5618_v24  ;;  %v5642_v51 = vpack.c.bf16 %v4116_v22, %v4115_v21 }
0x1b75   : > { %5643 = vmatprep.subr.bf16.mxu1 %v5642_v51 }
0x1b76   : > { %5621 = vmatpush3.bf16.msra.mxu0 %v5618_v24 }
0x1b77   : > { %5623 = vmatprep.subr.bf16.mxu0 %v5622_v49 }
0x1b7a   : > { %5625 = vmatpush3.bf16.msra.mxu0 %v5622_v49 }
0x1b7b   : > { %5627 = vmatprep.subr.bf16.mxu0 %v5626_v30 }
0x1b7e   : > { %5629 = vmatpush3.bf16.msra.mxu0 %v5626_v30 }
0x1b7f   : > { %5631 = vmatprep.subr.bf16.mxu0 %v5630_v33 }
0x1b82   : > { %5633 = vmatpush3.bf16.msra.mxu0 %v5630_v33 }
0x1b83   : > { %5635 = vmatprep.subr.bf16.mxu0 %v5634_v36 }
0x1b86   : > { %5637 = vmatpush3.bf16.msra.mxu0 %v5634_v36  ;;  %v4111_v36 = vld [vmem:[#allocation25] sm:$0xff] }
0x1c44   : > { %v5281_v35 = vpop.f32.mrb[22].mxu0 }
0x1c45   : > { %vm3822_vm10 = vcmp.ge.f32.partialorder %v5281_v35, 0.0  ;;  %v3832_v37 = vmul.f32 %v5281_v35, %v4689_v27  ;;  %v3812_v41 = vpop.f32.mrb[23].mxu0 }
0x1c46   : > { %vm3821_vm11 = vcmp.ge.f32.partialorder %v3812_v41, 0.0  ;;  %v3831_v42 = vmul.f32 %v4689_v27, %v3812_v41 }
0x1c47   : > { %v3834_v43 = vsel %vm3822_vm10, %v5281_v35, %v3832_v37  ;;  %v5646_v35 = vpack.c.bf16 %v4118_v34, %v4117_v28  ;;  %v4112_v37 = vld [vmem:[#allocation25 + $0x8] sm:$0xff] }
0x1c48   : > { %v3844_v45 = vmul.f32 %v4690_v40, %v3834_v43  ;;  %v3833_v46 = vsel %vm3821_vm11, %v3812_v41, %v3831_v42  ;;  %v4697_v41 = vld [vmem:[#allocation23 + $0x7] ss:$0 sm:$0xff]  ;;  %v4645_v42 = vld [vmem:[#allocation23 + $0x3] ss:$0 sm:$0xff] }
0x1c49   : > { %v3843_v47 = vmul.f32 %v4690_v40, %v3833_v46  ;;  %v5650_v40 = vpack.c.bf16 %v4112_v37, %v4111_v36  ;;  %v2603_v46 = vadd.f32 %v4645_v42, %v7393_v11  ;;  %v2608_v11 = vadd.f32 %v7391_v10, %v4645_v42 }
0x1c4a   : > { %v3854_v13 = vadd.f32 %v4691_v44, %v3844_v45 }
0x1c4b   : > { %v3853_v14 = vadd.f32 %v4691_v44, %v3843_v47 }
0x1c4c   : > { %v3862_v48 = vrot.slane %v3854_v13, 6  ;;  %v3856_v53 = vrot.slane %v3854_v13, 4 }
0x1c4d   : > { %v3861_v54 = vrot.slane %v3853_v14, 6  ;;  %v3855_v55 = vrot.slane %v3853_v14, 4 }
0x1c4f   : > { %v3863_v56 = vsel %vm1212_vm4, %v3861_v54, %v3862_v48  ;;  %v3864_v57 = vsel %vm1212_vm4, %v3862_v48, %v3861_v54  ;;  %v3857_v59 = vsel %vm1600_vm14, %v3855_v55, %v3856_v53  ;;  %v3858_v60 = vsel %vm1600_vm14, %v3856_v53, %v3855_v55 }
0x1c50   : > { %3871 = vrot.lane.b32.xlu1 %v3863_v56, %s6545_s28  ;;  %v3865_v61 = vsel %vm1215_vm7, %v3864_v57, 0.0  ;;  %v3859_v62 = vsel %vm1603_vm15, %v3858_v60, 0.0  ;;  %v2611_v55 = vadd.f32 %v2603_v46, %v7352_v38  ;;  %v4704_v38 = vld [vmem:[#allocation28] ss:$0 sm:$0xff] }
0x1c51   : > { %3869 = vrot.lane.b32.xlu0 %v3865_v61, %s6545_s28 }
0x1c54   : > { %3879 = vrot.lane.b32.xlu1 %v3854_v13, %s6544_s21  ;;  %v4113_v13 = vld [vmem:[#allocation25 + $0x10] sm:$0xff] }
0x1c55   : > { %3877 = vrot.lane.b32.xlu0 %v3853_v14, %s6544_s21  ;;  %v4114_v14 = vld [vmem:[#allocation25 + $0x18] sm:$0xff] }
0x1c56   : > { %v5654_v54 = vpack.c.bf16 %v4114_v14, %v4113_v13 }
0x1cc2   : > { %v3872_v52 = vpop.permute.xlu1 %3871 }
0x1cc3   : > { %v3870_v23 = vpop.permute.xlu0 %3869  ;;  %v3884_v2 = vsel %vm915_vm1, %v3857_v59, %v3872_v52 }
0x1cc4   : > { %v3883_v0 = vsel %vm915_vm1, %v3859_v62, %v3870_v23 }
0x1cc6   : > { %v3880_v63 = vpop.permute.xlu1 %3879 }
0x1cc7   : > { %v3878_v1 = vpop.permute.xlu0 %3877  ;;  %v3886_v4 = vsel %vm1254_vm8, %v3884_v2, %v3880_v63 }
0x1cc8   : > { %v3885_v3 = vsel %vm1254_vm8, %v3883_v0, %v3878_v1 }
0x1cc9   : > { %5306 = vmatprep.mubr.msk.f32.mxu0 %vm1269_vm9, %v3885_v3 }
0x1cca   : > { %5307 = vmatmul.mubr.msk.f32.vlgmr.msra.gmra.mrb[24].mxu0 %vm1269_vm9, %v3886_v4 }
0x1d9d   : > { %v5308_v5 = vpop.f32.mrb[24].mxu0 }
0x1d9e   : > { %v4695_v6 = vmul.f32 -1.442695, %v5308_v5  ;;  %v3972_v7 = vpop.f32.mrb[25].mxu0 }
0x1d9f   : > { %v4694_v8 = vmul.f32 -1.442695, %v3972_v7 }
0x1da0   : > { %5931 = vpow2.f32 %v4695_v6 }
0x1da1   : > { %5933 = vpow2.f32 %v4694_v8 }
0x1daa   : > { %v5932_v58 = vpop.eup %5931 }
0x1dab   : > { %v5934_v9 = vpop.eup %5933  ;;  %v3988_v12 = vadd.f32 1.0, %v5932_v58 }
0x1dac   : > { %v3987_v19 = vadd.f32 1.0, %v5934_v9 }
0x1dad   : > { %5935 = vrcp.f32 %v3988_v12 }
0x1dae   : > { %5937 = vrcp.f32 %v3987_v19 }
0x1db7   : > { %v5936_v24 = vpop.eup %5935 }
0x1db8   : > { %v5938_v25 = vpop.eup %5937  ;;  %3997 = vrot.lane.b32.xlu1 %v5936_v24, %s6546_s23 }
0x1db9   : > { %3995 = vrot.lane.b32.xlu0 %v5938_v25, %s6546_s23 }
0x1e2a   : > { %v3998_v49 = vpop.permute.xlu1 %3997 }
0x1e2b   : > { %v4002_v50 = vmul.f32 %v5308_v5, %v3998_v49  ;;  %v3996_v29 = vpop.permute.xlu0 %3995 }
0x1e2c   : > { %v4001_v30 = vmul.f32 %v3996_v29, %v3972_v7 }
0x1e2d   : > { %v4014_v31 = vmul.f32 %v4696_v26, %v4002_v50  ;;  %vm4004_vm4 = vcmp.ge.f32.partialorder %v4002_v50, 0.0 }
0x1e2e   : > { %vm4003_vm7 = vcmp.ge.f32.partialorder %v4001_v30, 0.0  ;;  %v4013_v32 = vmul.f32 %v4696_v26, %v4001_v30 }
0x1e2f   : > { %v4016_v27 = vsel %vm4004_vm4, %v4002_v50, %v4014_v31 }
0x1e30   : > { %v4015_v33 = vsel %vm4003_vm7, %v4001_v30, %v4013_v32 }
0x1e31   : > { %5313 = vmatprep.mubr.msk.f32.mxu1 %vm833_vm0, %v4015_v33 }
0x1e32   : > { %5314 = vmatmul.mubr.msk.f32.vlgmr.msra.gmra.mrb[22].mxu1 %vm833_vm0, %v4016_v27 }
0x1e33   : > { %5645 = vmatpush3.bf16.msra.mxu1 %v5642_v51 }
0x1e34   : > { %5647 = vmatprep.subr.bf16.mxu1 %v5646_v35 }
0x1e37   : > { %5649 = vmatpush3.bf16.msra.mxu1 %v5646_v35 }
0x1e38   : > { %5651 = vmatprep.subr.bf16.mxu1 %v5650_v40 }
0x1f05   : > { %v5315_v43 = vpop.f32.mrb[22].mxu1 }
0x1f06   : > { %v4106_v44 = vadd.f32 %v5315_v43, %v4697_v41  ;;  %v4100_v45 = vpop.f32.mrb[23].mxu1 }
0x1f07   : > { %v4101_v47 = vadd.f32 %v4697_v41, %v4100_v45 }
0x1f08   : > { %v4110_v53 = vadd.f32 %v4106_v44, %v7497_v18 }
0x1f09   : > { %v4109_v48 = vadd.f32 %v4101_v47, %v7494_v17  ;;  %v2612_v17 = vadd.f32 %v2608_v11, %v7355_v39 }
0x1f0b   : > { %5324 = vmatprep.mubr.msk.f32.mxu1 %vm915_vm1, %v4109_v48 }
0x1f0c   : > { %5325 = vmatmul.mubr.msk.f32.vlgmr.msra.gmra.mrb[24].mxu1 %vm915_vm1, %v4110_v53 }
0x1f0d   : > { %5653 = vmatpush3.bf16.msra.mxu1 %v5650_v40  ;;  %5335 = vmatprep.mubr.msk.f32.mxu1 %vm915_vm1, %v2611_v55 }
0x1f0e   : > { %5655 = vmatprep.subr.bf16.mxu1 %v5654_v54 }
0x1f11   : > { %5657 = vmatpush3.bf16.msra.mxu1 %v5654_v54 }
0x1f14   : > { %5336 = vmatmul.mubr.msk.f32.vlgmr.msra.gmra.mrb[24].mxu1 %vm915_vm1, %v2612_v17 }
0x1fe7   : > { %v5337_v18 = vpop.f32.mrb[24].mxu1 }
0x1fe8   : > { %v4289_v10 = vadd.f32 %v5337_v18, %v4704_v38  ;;  %v4272_v56 = vpop.f32.mrb[25].mxu1 }
0x1fe9   : > { %v4288_v39 = vadd.f32 %v4704_v38, %v4272_v56 }
0x1fea   : > { %4291 = vst.msk [vmem:[%s819_s18 + $0x8] sm:$0xff] %vm915_vm1, %v4289_v10 }
0x1feb   : > { %4290 = vst.msk [vmem:[%s819_s18] sm:$0xff] %vm915_vm1, %v4288_v39 }
0x1fec   : > { %6432 = shalt.err (!%p6429_p10)
}
0x1fed   : > { %s6433_s0 = scalar_lea.hbm %s7547_s29, 256  ;;  %s6437_s21 = scalar_lea.hbm %s7697_s9, 512 }
0x1fee   : > { %p6434_p5 = scmp.ne.s32.totalorder %s7547_s29, %s6433_s0  ;;  %p6438_p8 = scmp.lt.u32.totalorder %s7547_s29, %s7697_s9 }
0x1fef   : > { %p6439_p11 = scmp.lt.u32.totalorder %s6437_s21, %s6433_s0  ;;  %p6441_p12 = scmp.lt.u32.totalorder %s6433_s0, %s7547_s29 }
0x1ff0   : > { %p6435_p9 = pnand %p6434_p5, %p7698_p1 }
0x1ff1   : > { %p6440_p3 = por %p6439_p11, %p6438_p8 }
0x1ff2   : > { %p6436_p4 = pneg %p6435_p9 }
0x1ff3   : > { %p6442_p13 = por %p6441_p12, %p6440_p3 }
0x1ff5   : > { %p6443_p0 = pnand %p6442_p13, %p6436_p4 }
0x1ff7   : > { %6446 = shalt.err (!%p6443_p0)
}
0x1ff8   : > { %s6548_s18 = smov 128   ;;  %s6549_s25 = smov 8  }
0x1ff9   : > { %5728 = dma.vmem_to_hbm [thread:$0]  (%p7698_p1), %s7542_s7, 256, %s7547_s29, %s4293_s5, %s6548_s18, %s6548_s18, %s6549_s25  }
0x1ffa PF: > { %s7699_s6 = sld [smem:[#allocation41_spill]]  ;;  %s7700_s4 = sld [smem:[#allocation44_spill]] }
0x1ffb   : > { %p7701_p7 = scmp.ne.s32.totalorder %s7672_s22, 0 }
0x2000   : > { %s4321_s17 = sand.u32 1, %s7699_s6   ;;  %p7702_p2 = scmp.ge.s32.totalorder %s7700_s4, 2 }
0x2001   : > { %s4322_s3 = scalar_lea.sflag [#allocation4], %s4321_s17 }
0x2002   : > { %p5784_p6 = pnand %p7702_p2, %p7701_p7 }
0x2004   : > { %6504 = dma.done.wait (!%p5784_p6), %s4322_s3, 256  }
0x2005   : > { %6506 = vsyncadd (!%p5784_p6), %s4322_s3, 4294967040  ;;  %s7703_s8 = sld [smem:[#allocation42_spill]]  ;;  %s7704_s25 = sld [smem:[#allocation43_spill]] }
0x2006   : > { %s7705_s30 = smov %s7065_s24  ;;  %p40_p10 = scmp.ge.s32.totalorder %s7053_s27, 4  }
0x2007   : > { %s7707_s26 = smov %s7705_s30 }
0x2008   :  { %42 = sbr.rel (!%p40_p10) target bundleno = 26 (0x1a), region = 263 }
0x200b   : > { %s7706_s24 = smov %s7703_s8 }
0x200f   :  { %4327 = vsyncpa [#allocation3], 1 }
0x2010   :  { %4329 = vsyncpa [#allocation3 + $0x1], 1 }
0x2011   :  { %4330 = vsyncpa [#allocation6], 1 }
0x2012   :  { %4332 = vsyncpa [#allocation6 + $0x1], 1 }
0x2013   :  { %4333 = vsyncpa [#allocation9], 1 }
0x2014   :  { %4334 = vsyncpa [#allocation12], 1 }
0x2015   :  { %4335 = vsyncpa [#allocation15], 1 }
0x2016   :  { %4336 = vsyncpa [#allocation18], 1 }
0x2017   :  { %4337 = vsyncpa [#allocation21], 1 }
0x2018   :  { %4338 = vsyncpa [#allocation24], 1 }
0x2019   :  { %4339 = vsyncpa [#allocation27], 1 }
0x201a   :  { %4340 = vsyncpa [#allocation4], 1 }
0x201b   :  { %4342 = vsyncpa [#allocation4 + $0x1], 1 }

</bundles_post_ra>
